<compile_context>
chip_gen: v6e
topology: v6e:2x2x1
jax: 0.10.0
libtpu: 0.0.40
codegen_flags: <defaults>
</compile_context>

<pallas_src>
import math

import jax
import jax.numpy as jnp
from jax import lax
from jax.experimental import pallas as pl
from jax.experimental.pallas import tpu as pltpu

# ----------------------------- hyper-parameters ------------------------------
STRIDE = 2            # time_reduction_stride
INPUT_DIM = 16        # input_dim (feature dim of raw input)
D = 32                # conformer_input_dim
FFN = 64              # conformer_ffn_dim
NUM_LAYERS = 2        # conformer_num_layers
NUM_HEADS = 4         # conformer_num_heads
HEAD_DIM = D // NUM_HEADS
K_DW = 7              # conformer_depthwise_conv_kernel_size (odd)
OUTPUT_DIM = 24       # output_dim
EPS = 1e-5
NEG_INF = -1e30
PAD = (K_DW - 1) // 2
PAD_OFF = 8           # sublane-aligned offset of the real frames in the conv scratch


# --------------------------- in-kernel math helpers ---------------------------
def _layernorm(x, g, b):
    mean = jnp.mean(x, axis=-1, keepdims=True)
    var = jnp.mean(jnp.square(x - mean), axis=-1, keepdims=True)
    return (x - mean) * lax.rsqrt(var + EPS) * g + b


def _dense(x, w, b):
    return jnp.dot(x, w, preferred_element_type=jnp.float32) + b


def _silu(x):
    return x * jax.nn.sigmoid(x)


# ------------------------------- fused kernel ---------------------------------
def _make_encoder_kernel(n_params, treedef, T):
    """One grid step == one batch element; whole encoder runs in VMEM."""

    def kernel(lens_ref, x_ref, *refs):
        param_refs = refs[:n_params]
        bd_ref = refs[n_params]                      # (H*T, D) block-diag head mask (const)
        o_ref = refs[n_params + 1]
        pad_ref = refs[n_params + 2]                 # (T + 2*PAD_OFF, D) conv scratch
        p = jax.tree_util.tree_unflatten(treedef, list(param_refs))
        lp = p["layers"]

        # ---------------- input linear ----------------
        x = _dense(x_ref[0], p["input_linear"]["w"][...],
                   p["input_linear"]["b"][...])                        # (T, D)

        # ------- key-padding additive bias from prefetched (reduced) lengths -------
        length = lens_ref[pl.program_id(0)]
        t_idx = lax.broadcasted_iota(jnp.int32, (1, T), 1)
        kbias = jnp.where(t_idx < length, 0.0, NEG_INF).astype(jnp.float32)  # (1, T)
        kbias_all = jnp.tile(kbias, (1, NUM_HEADS))                          # (1, H*T)

        # constant block-diagonal head mask (precomputed in wrapper, loaded once)
        bd_mask = bd_ref[...]                                                # (H*T, D)
        scale = 1.0 / math.sqrt(HEAD_DIM)

        # zero the SAME-padding halo once per grid step; the real-frame rows
        # [PAD_OFF, PAD_OFF+T) are overwritten every layer, so halo stays zero.
        pad_ref[...] = jnp.zeros((T + 2 * PAD_OFF, D), jnp.float32)

        for l in range(NUM_LAYERS):                  # static unroll (2 layers)
            # ---------------- FFN1 (half-step residual) ----------------
            y = _layernorm(x, lp["ffn1_ln_g"][l], lp["ffn1_ln_b"][l])
            y = _silu(_dense(y, lp["ffn1_w1"][l], lp["ffn1_b1"][l]))
            y = _dense(y, lp["ffn1_w2"][l], lp["ffn1_b2"][l])
            x = x + 0.5 * y

            # ------------- convolution module (convolution_first=True) -------------
            y = _layernorm(x, lp["conv_ln_g"][l], lp["conv_ln_b"][l])
            y = _dense(y, lp["pw1_w"][l], lp["pw1_b"][l])                # (T, 2D)
            glu = y[:, :D] * jax.nn.sigmoid(y[:, D:])                    # GLU, sigmoid hoisted
            # SAME zero padding entirely in VMEM scratch (aligned write, shifted reads)
            pad_ref[pl.ds(PAD_OFF, T), :] = glu
            taps = lp["dw_w"][l]                                          # (K, D)
            acc = jnp.zeros((T, D), jnp.float32) + lp["dw_b"][l]          # depthwise bias
            for k in range(K_DW):                                         # static unroll
                win = pad_ref[pl.ds(PAD_OFF - PAD + k, T), :]             # shifted window
                acc = acc + win * taps[k:k + 1, :]
            # GroupNorm(num_groups=1): stats over all (T, D) elements of this sample
            mean = jnp.mean(acc, axis=(0, 1), keepdims=True)
            var = jnp.mean(jnp.square(acc - mean), axis=(0, 1), keepdims=True)
            y = (acc - mean) * lax.rsqrt(var + EPS) * lp["gn_g"][l] + lp["gn_b"][l]
            y = _silu(y)
            y = _dense(y, lp["pw2_w"][l], lp["pw2_b"][l])
            x = x + y

            # ---------------- multi-head self-attention ----------------
            y = _layernorm(x, lp["attn_ln_g"][l], lp["attn_ln_b"][l])
            qkv = _dense(y, lp["attn_in_w"][l], lp["attn_in_b"][l])       # (T, 3D)
            q = qkv[:, :D]
            kk = qkv[:, D:2 * D]
            v = qkv[:, 2 * D:]
            # block-diagonal K / V so all heads share one score + one output matmul
            k_bd = jnp.tile(kk, (NUM_HEADS, 1)) * bd_mask                 # (H*T, D)
            v_bd = jnp.tile(v, (NUM_HEADS, 1)) * bd_mask                  # (H*T, D)
            s = lax.dot_general(q, k_bd, (((1,), (1,)), ((), ())),
                                preferred_element_type=jnp.float32)       # (T, H*T)
            s = s * scale + kbias_all
            probs = []
            for h in range(NUM_HEADS):                                    # VPU-only loop
                seg = s[:, h * T:(h + 1) * T]                             # (T, T)
                m = jnp.max(seg, axis=-1, keepdims=True)
                e = jnp.exp(seg - m)
                probs.append(e * pl.reciprocal(jnp.sum(e, axis=-1, keepdims=True),
                                               approx=True))
            pmat = jnp.concatenate(probs, axis=-1)                        # (T, H*T)
            o = jnp.dot(pmat, v_bd, preferred_element_type=jnp.float32)   # (T, D)
            o = _dense(o, lp["attn_out_w"][l], lp["attn_out_b"][l])
            x = x + o

            # ---------------- FFN2 (half-step) + per-layer LayerNorm ----------------
            y = _layernorm(x, lp["ffn2_ln_g"][l], lp["ffn2_ln_b"][l])
            y = _silu(_dense(y, lp["ffn2_w1"][l], lp["ffn2_b1"][l]))
            y = _dense(y, lp["ffn2_w2"][l], lp["ffn2_b2"][l])
            x = x + 0.5 * y
            x = _layernorm(x, lp["layer_ln_g"][l], lp["layer_ln_b"][l])

        # ---------------- output linear + final LayerNorm ----------------
        y = _dense(x, p["output_linear"]["w"][...], p["output_linear"]["b"][...])
        o_ref[0] = _layernorm(y, p["final_ln"]["g"][...], p["final_ln"]["b"][...])

    return kernel


# ------------------------------- forward wrapper -------------------------------
@jax.jit
def conformer_encoder_forward(params, x, lengths):
    """Forward pass of _ConformerEncoder.  x: (B, T, input_dim), lengths: (B,)."""
    B, T0, Fdim = x.shape
    # _TimeReduction: drop trailing frames, stack `stride` frames along features
    # (pure layout; single cheap XLA reshape in the wrapper).
    nf = T0 - (T0 % STRIDE)
    Tr = nf // STRIDE
    x_red = x[:, :nf, :].reshape(B, Tr, Fdim * STRIDE)
    red_lengths = (lengths // STRIDE).astype(jnp.int32)

    # Constant block-diagonal head mask (rows = head-major keys, cols = channels).
    r_head = jnp.arange(NUM_HEADS * Tr, dtype=jnp.int32)[:, None] // Tr
    c_head = jnp.arange(D, dtype=jnp.int32)[None, :] // HEAD_DIM
    bd_mask = (r_head == c_head).astype(jnp.float32)                       # (H*Tr, D)

    flat_params, treedef = jax.tree_util.tree_flatten(params)
    n_params = len(flat_params)

    def full_spec(arr):
        nd = arr.ndim
        return pl.BlockSpec(arr.shape, lambda b, lens, nd=nd: (0,) * nd)

    in_specs = [pl.BlockSpec((1, Tr, Fdim * STRIDE), lambda b, lens: (b, 0, 0))]
    in_specs += [full_spec(a) for a in flat_params]
    in_specs += [full_spec(bd_mask)]
    out_spec = pl.BlockSpec((1, Tr, OUTPUT_DIM), lambda b, lens: (b, 0, 0))

    kernel = _make_encoder_kernel(n_params, treedef, Tr)

    out = pl.pallas_call(
        kernel,
        out_shape=jax.ShapeDtypeStruct((B, Tr, OUTPUT_DIM), jnp.float32),
        grid_spec=pltpu.PrefetchScalarGridSpec(
            num_scalar_prefetch=1,
            grid=(B,),
            in_specs=in_specs,
            out_specs=out_spec,
            scratch_shapes=[pltpu.VMEM((Tr + 2 * PAD_OFF, D), jnp.float32)],
        ),
        compiler_params=pltpu.CompilerParams(
            dimension_semantics=("parallel",)),   # shard batch across TensorCores
    )(red_lengths, x_red, *flat_params, bd_mask)

    return out, red_lengths


# ------------------------------ parameter init --------------------------------
def init_params(key):
    keys = iter(jax.random.split(key, 128))

    def w(shape, scale=0.02):
        return jax.random.normal(next(keys), shape, jnp.float32) * scale

    def stack(fn):
        return jnp.stack([fn() for _ in range(NUM_LAYERS)], axis=0)

    layers = {}
    for name in ["ffn1_ln_g", "conv_ln_g", "gn_g", "attn_ln_g", "ffn2_ln_g", "layer_ln_g"]:
        layers[name] = jnp.ones((NUM_LAYERS, 1, D), jnp.float32)
    for name in ["ffn1_ln_b", "conv_ln_b", "gn_b", "attn_ln_b", "ffn2_ln_b", "layer_ln_b"]:
        layers[name] = jnp.zeros((NUM_LAYERS, 1, D), jnp.float32)
    layers.update({
        "ffn1_w1": stack(lambda: w((D, FFN))), "ffn1_b1": stack(lambda: w((1, FFN))),
        "ffn1_w2": stack(lambda: w((FFN, D))), "ffn1_b2": stack(lambda: w((1, D))),
        "pw1_w": stack(lambda: w((D, 2 * D))), "pw1_b": stack(lambda: w((1, 2 * D))),
        "dw_w": stack(lambda: w((K_DW, D))),   "dw_b": stack(lambda: w((1, D))),
        "pw2_w": stack(lambda: w((D, D))),     "pw2_b": stack(lambda: w((1, D))),
        "attn_in_w": stack(lambda: w((D, 3 * D))), "attn_in_b": stack(lambda: w((1, 3 * D))),
        "attn_out_w": stack(lambda: w((D, D))),    "attn_out_b": stack(lambda: w((1, D))),
        "ffn2_w1": stack(lambda: w((D, FFN))), "ffn2_b1": stack(lambda: w((1, FFN))),
        "ffn2_w2": stack(lambda: w((FFN, D))), "ffn2_b2": stack(lambda: w((1, D))),
    })

    params = {
        "input_linear": {"w": w((INPUT_DIM * STRIDE, D)), "b": w((1, D))},
        "output_linear": {"w": w((D, OUTPUT_DIM)), "b": w((1, OUTPUT_DIM))},
        "final_ln": {"g": jnp.ones((1, OUTPUT_DIM), jnp.float32),
                     "b": jnp.zeros((1, OUTPUT_DIM), jnp.float32)},
        "layers": layers,
    }
    return params


# ------------------------------------ main ------------------------------------
if __name__ == "__main__":
    key = jax.random.PRNGKey(0)
    kx, kp = jax.random.split(key)

    B, T0 = 2, 16
    x = jax.random.normal(kx, (B, T0, INPUT_DIM), jnp.float32)
    lengths = jnp.array([16, 12], jnp.int32)

    params = init_params(kp)
    out, out_lengths = conformer_encoder_forward(params, x, lengths)
    jax.block_until_ready((out, out_lengths))

    assert out.shape == (B, T0 // STRIDE, OUTPUT_DIM)
    assert out_lengths.shape == (B,)
    assert bool(jnp.all(jnp.isfinite(out)))
    print("KERNEL_OK")
</pallas_src>

<mosaic_0001>
module attributes {stable_mosaic.version = 11 : i64} {
  func.func @kernel(%arg0: i32, %arg1: memref<2xi32, #tpu.memory_space<smem>>, %arg2: memref<1x8x32xf32, #tpu.memory_space<vmem>>, %arg3: memref<1x24xf32, #tpu.memory_space<vmem>>, %arg4: memref<1x24xf32, #tpu.memory_space<vmem>>, %arg5: memref<1x32xf32, #tpu.memory_space<vmem>>, %arg6: memref<32x32xf32, #tpu.memory_space<vmem>>, %arg7: memref<2x1x96xf32, #tpu.memory_space<vmem>>, %arg8: memref<2x32x96xf32, #tpu.memory_space<vmem>>, %arg9: memref<2x1x32xf32, #tpu.memory_space<vmem>>, %arg10: memref<2x1x32xf32, #tpu.memory_space<vmem>>, %arg11: memref<2x1x32xf32, #tpu.memory_space<vmem>>, %arg12: memref<2x32x32xf32, #tpu.memory_space<vmem>>, %arg13: memref<2x1x32xf32, #tpu.memory_space<vmem>>, %arg14: memref<2x1x32xf32, #tpu.memory_space<vmem>>, %arg15: memref<2x1x32xf32, #tpu.memory_space<vmem>>, %arg16: memref<2x7x32xf32, #tpu.memory_space<vmem>>, %arg17: memref<2x1x64xf32, #tpu.memory_space<vmem>>, %arg18: memref<2x1x32xf32, #tpu.memory_space<vmem>>, %arg19: memref<2x1x32xf32, #tpu.memory_space<vmem>>, %arg20: memref<2x1x32xf32, #tpu.memory_space<vmem>>, %arg21: memref<2x32x64xf32, #tpu.memory_space<vmem>>, %arg22: memref<2x64x32xf32, #tpu.memory_space<vmem>>, %arg23: memref<2x1x64xf32, #tpu.memory_space<vmem>>, %arg24: memref<2x1x32xf32, #tpu.memory_space<vmem>>, %arg25: memref<2x1x32xf32, #tpu.memory_space<vmem>>, %arg26: memref<2x1x32xf32, #tpu.memory_space<vmem>>, %arg27: memref<2x32x64xf32, #tpu.memory_space<vmem>>, %arg28: memref<2x64x32xf32, #tpu.memory_space<vmem>>, %arg29: memref<2x1x32xf32, #tpu.memory_space<vmem>>, %arg30: memref<2x1x32xf32, #tpu.memory_space<vmem>>, %arg31: memref<2x1x32xf32, #tpu.memory_space<vmem>>, %arg32: memref<2x1x32xf32, #tpu.memory_space<vmem>>, %arg33: memref<2x1x64xf32, #tpu.memory_space<vmem>>, %arg34: memref<2x32x64xf32, #tpu.memory_space<vmem>>, %arg35: memref<2x1x32xf32, #tpu.memory_space<vmem>>, %arg36: memref<2x32x32xf32, #tpu.memory_space<vmem>>, %arg37: memref<1x24xf32, #tpu.memory_space<vmem>>, %arg38: memref<32x24xf32, #tpu.memory_space<vmem>>, %arg39: memref<32x32xf32, #tpu.memory_space<vmem>>, %arg40: memref<1x8x24xf32, #tpu.memory_space<vmem>>, %arg41: memref<24x32xf32, #tpu.memory_space<vmem>>) attributes {dimension_semantics = [#tpu.dimension_semantics<parallel>], iteration_bounds = array<i64: 2>, scalar_prefetch = 1 : i64, scratch_operands = 1 : i64, tpu.core_type = #tpu.core_type<tc>, window_params = [{transform_indices = @transform_0, window_bounds = array<i64: 1, 8, 32>}, {pipeline_mode = #tpu.pipeline_mode<synchronous>, transform_indices = @transform_1, window_bounds = array<i64: 1, 24>}, {pipeline_mode = #tpu.pipeline_mode<synchronous>, transform_indices = @transform_2, window_bounds = array<i64: 1, 24>}, {pipeline_mode = #tpu.pipeline_mode<synchronous>, transform_indices = @transform_3, window_bounds = array<i64: 1, 32>}, {pipeline_mode = #tpu.pipeline_mode<synchronous>, transform_indices = @transform_4, window_bounds = array<i64: 32, 32>}, {pipeline_mode = #tpu.pipeline_mode<synchronous>, transform_indices = @transform_5, window_bounds = array<i64: 2, 1, 96>}, {pipeline_mode = #tpu.pipeline_mode<synchronous>, transform_indices = @transform_6, window_bounds = array<i64: 2, 32, 96>}, {pipeline_mode = #tpu.pipeline_mode<synchronous>, transform_indices = @transform_7, window_bounds = array<i64: 2, 1, 32>}, {pipeline_mode = #tpu.pipeline_mode<synchronous>, transform_indices = @transform_8, window_bounds = array<i64: 2, 1, 32>}, {pipeline_mode = #tpu.pipeline_mode<synchronous>, transform_indices = @transform_9, window_bounds = array<i64: 2, 1, 32>}, {pipeline_mode = #tpu.pipeline_mode<synchronous>, transform_indices = @transform_10, window_bounds = array<i64: 2, 32, 32>}, {pipeline_mode = #tpu.pipeline_mode<synchronous>, transform_indices = @transform_11, window_bounds = array<i64: 2, 1, 32>}, {pipeline_mode = #tpu.pipeline_mode<synchronous>, transform_indices = @transform_12, window_bounds = array<i64: 2, 1, 32>}, {pipeline_mode = #tpu.pipeline_mode<synchronous>, transform_indices = @transform_13, window_bounds = array<i64: 2, 1, 32>}, {pipeline_mode = #tpu.pipeline_mode<synchronous>, transform_indices = @transform_14, window_bounds = array<i64: 2, 7, 32>}, {pipeline_mode = #tpu.pipeline_mode<synchronous>, transform_indices = @transform_15, window_bounds = array<i64: 2, 1, 64>}, {pipeline_mode = #tpu.pipeline_mode<synchronous>, transform_indices = @transform_16, window_bounds = array<i64: 2, 1, 32>}, {pipeline_mode = #tpu.pipeline_mode<synchronous>, transform_indices = @transform_17, window_bounds = array<i64: 2, 1, 32>}, {pipeline_mode = #tpu.pipeline_mode<synchronous>, transform_indices = @transform_18, window_bounds = array<i64: 2, 1, 32>}, {pipeline_mode = #tpu.pipeline_mode<synchronous>, transform_indices = @transform_19, window_bounds = array<i64: 2, 32, 64>}, {pipeline_mode = #tpu.pipeline_mode<synchronous>, transform_indices = @transform_20, window_bounds = array<i64: 2, 64, 32>}, {pipeline_mode = #tpu.pipeline_mode<synchronous>, transform_indices = @transform_21, window_bounds = array<i64: 2, 1, 64>}, {pipeline_mode = #tpu.pipeline_mode<synchronous>, transform_indices = @transform_22, window_bounds = array<i64: 2, 1, 32>}, {pipeline_mode = #tpu.pipeline_mode<synchronous>, transform_indices = @transform_23, window_bounds = array<i64: 2, 1, 32>}, {pipeline_mode = #tpu.pipeline_mode<synchronous>, transform_indices = @transform_24, window_bounds = array<i64: 2, 1, 32>}, {pipeline_mode = #tpu.pipeline_mode<synchronous>, transform_indices = @transform_25, window_bounds = array<i64: 2, 32, 64>}, {pipeline_mode = #tpu.pipeline_mode<synchronous>, transform_indices = @transform_26, window_bounds = array<i64: 2, 64, 32>}, {pipeline_mode = #tpu.pipeline_mode<synchronous>, transform_indices = @transform_27, window_bounds = array<i64: 2, 1, 32>}, {pipeline_mode = #tpu.pipeline_mode<synchronous>, transform_indices = @transform_28, window_bounds = array<i64: 2, 1, 32>}, {pipeline_mode = #tpu.pipeline_mode<synchronous>, transform_indices = @transform_29, window_bounds = array<i64: 2, 1, 32>}, {pipeline_mode = #tpu.pipeline_mode<synchronous>, transform_indices = @transform_30, window_bounds = array<i64: 2, 1, 32>}, {pipeline_mode = #tpu.pipeline_mode<synchronous>, transform_indices = @transform_31, window_bounds = array<i64: 2, 1, 64>}, {pipeline_mode = #tpu.pipeline_mode<synchronous>, transform_indices = @transform_32, window_bounds = array<i64: 2, 32, 64>}, {pipeline_mode = #tpu.pipeline_mode<synchronous>, transform_indices = @transform_33, window_bounds = array<i64: 2, 1, 32>}, {pipeline_mode = #tpu.pipeline_mode<synchronous>, transform_indices = @transform_34, window_bounds = array<i64: 2, 32, 32>}, {pipeline_mode = #tpu.pipeline_mode<synchronous>, transform_indices = @transform_35, window_bounds = array<i64: 1, 24>}, {pipeline_mode = #tpu.pipeline_mode<synchronous>, transform_indices = @transform_36, window_bounds = array<i64: 32, 24>}, {pipeline_mode = #tpu.pipeline_mode<synchronous>, transform_indices = @transform_37, window_bounds = array<i64: 32, 32>}, {transform_indices = @transform_38, window_bounds = array<i64: 1, 8, 24>}]} {
    %c0 = arith.constant 0 : index
    %c0_0 = arith.constant 0 : index
    %c0_1 = arith.constant 0 : index
    %0 = vector.load %arg2[%c0, %c0_0, %c0_1] : memref<1x8x32xf32, #tpu.memory_space<vmem>>, vector<1x8x32xf32>
    %1 = vector.shape_cast %0 : vector<1x8x32xf32> to vector<8x32xf32>
    %c0_2 = arith.constant 0 : index
    %c0_3 = arith.constant 0 : index
    %2 = vector.load %arg6[%c0_2, %c0_3] : memref<32x32xf32, #tpu.memory_space<vmem>>, vector<32x32xf32>
    %c0_4 = arith.constant 0 : index
    %c0_5 = arith.constant 0 : index
    %3 = vector.load %arg5[%c0_4, %c0_5] : memref<1x32xf32, #tpu.memory_space<vmem>>, vector<1x32xf32>
    %cst = arith.constant dense<0.000000e+00> : vector<8x32xf32>
    %4 = tpu.matmul %1, %2, %cst {dimension_numbers = #tpu.dot_dimension_numbers<[1], [0], [0], [1], [0, 0, 1, 1], [], []>} : vector<8x32xf32>, vector<32x32xf32>, vector<8x32xf32> -> vector<8x32xf32>
    %5 = vector.broadcast %3 : vector<1x32xf32> to vector<8x32xf32>
    %6 = arith.addf %4, %5 : vector<8x32xf32>
    %7 = arith.index_cast %arg0 : i32 to index
    %8 = memref.load %arg1[%7] : memref<2xi32, #tpu.memory_space<smem>>
    %9 = tpu.iota {dimensions = array<i32: 1>} : vector<1x8xi32>
    %10 = vector.broadcast %8 : i32 to vector<1x8xi32>
    %11 = arith.cmpi slt, %9, %10 : vector<1x8xi32>
    %cst_6 = arith.constant 0.000000e+00 : f32
    %cst_7 = arith.constant -1.000000e+30 : f32
    %12 = vector.broadcast %cst_6 : f32 to vector<1x8xf32>
    %13 = vector.broadcast %cst_7 : f32 to vector<1x8xf32>
    %14 = arith.select %11, %12, %13 : vector<1x8xi1>, vector<1x8xf32>
    %15 = tpu.concatenate %14, %14, %14, %14 in 1 : vector<1x8xf32>, vector<1x8xf32>, vector<1x8xf32>, vector<1x8xf32> -> vector<1x32xf32>
    %c0_8 = arith.constant 0 : index
    %c0_9 = arith.constant 0 : index
    %16 = vector.load %arg39[%c0_8, %c0_9] : memref<32x32xf32, #tpu.memory_space<vmem>>, vector<32x32xf32>
    %cst_10 = arith.constant 0.000000e+00 : f32
    %17 = vector.broadcast %cst_10 : f32 to vector<24x32xf32>
    %c0_11 = arith.constant 0 : index
    %c0_12 = arith.constant 0 : index
    %18 = vector.load %arg41[%c0_11, %c0_12] : memref<24x32xf32, #tpu.memory_space<vmem>>, vector<24x32xf32>
    tpu.vector_store %arg41[%c0_11, %c0_12], %17 {strides = array<i32>} : memref<24x32xf32, #tpu.memory_space<vmem>>, vector<24x32xf32>,
    %c0_13 = arith.constant 0 : index
    %c0_14 = arith.constant 0 : index
    %c0_15 = arith.constant 0 : index
    %19 = vector.load %arg20[%c0_13, %c0_14, %c0_15] : memref<2x1x32xf32, #tpu.memory_space<vmem>>, vector<1x1x32xf32>
    %20 = vector.shape_cast %19 : vector<1x1x32xf32> to vector<1x32xf32>
    %c0_16 = arith.constant 0 : index
    %c0_17 = arith.constant 0 : index
    %c0_18 = arith.constant 0 : index
    %21 = vector.load %arg19[%c0_16, %c0_17, %c0_18] : memref<2x1x32xf32, #tpu.memory_space<vmem>>, vector<1x1x32xf32>
    %22 = vector.shape_cast %21 : vector<1x1x32xf32> to vector<1x32xf32>
    %cst_19 = arith.constant dense<0.000000e+00> : vector<8xf32>
    %23 = vector.multi_reduction <add>, %6, %cst_19 [1] : vector<8x32xf32> to vector<8xf32>
    %24 = vector.shape_cast %23 : vector<8xf32> to vector<8x1xf32>
    %cst_20 = arith.constant 3.200000e+01 : f32
    %25 = vector.broadcast %cst_20 : f32 to vector<8x1xf32>
    %26 = arith.divf %24, %25 : vector<8x1xf32>
    %27 = vector.broadcast %26 : vector<8x1xf32> to vector<8x32xf32>
    %28 = arith.subf %6, %27 : vector<8x32xf32>
    %29 = arith.mulf %28, %28 : vector<8x32xf32>
    %cst_21 = arith.constant dense<0.000000e+00> : vector<8xf32>
    %30 = vector.multi_reduction <add>, %29, %cst_21 [1] : vector<8x32xf32> to vector<8xf32>
    %31 = vector.shape_cast %30 : vector<8xf32> to vector<8x1xf32>
    %cst_22 = arith.constant 3.200000e+01 : f32
    %32 = vector.broadcast %cst_22 : f32 to vector<8x1xf32>
    %33 = arith.divf %31, %32 : vector<8x1xf32>
    %34 = vector.broadcast %26 : vector<8x1xf32> to vector<8x32xf32>
    %35 = arith.subf %6, %34 : vector<8x32xf32>
    %cst_23 = arith.constant 9.99999974E-6 : f32
    %36 = vector.broadcast %cst_23 : f32 to vector<8x1xf32>
    %37 = arith.addf %33, %36 : vector<8x1xf32>
    %38 = math.rsqrt %37 : vector<8x1xf32>
    %39 = vector.broadcast %38 : vector<8x1xf32> to vector<8x32xf32>
    %40 = arith.mulf %35, %39 : vector<8x32xf32>
    %41 = vector.broadcast %20 : vector<1x32xf32> to vector<8x32xf32>
    %42 = arith.mulf %40, %41 : vector<8x32xf32>
    %43 = vector.broadcast %22 : vector<1x32xf32> to vector<8x32xf32>
    %44 = arith.addf %42, %43 : vector<8x32xf32>
    %c0_24 = arith.constant 0 : index
    %c0_25 = arith.constant 0 : index
    %c0_26 = arith.constant 0 : index
    %45 = vector.load %arg21[%c0_24, %c0_25, %c0_26] : memref<2x32x64xf32, #tpu.memory_space<vmem>>, vector<1x32x64xf32>
    %46 = vector.shape_cast %45 : vector<1x32x64xf32> to vector<32x64xf32>
    %c0_27 = arith.constant 0 : index
    %c0_28 = arith.constant 0 : index
    %c0_29 = arith.constant 0 : index
    %47 = vector.load %arg17[%c0_27, %c0_28, %c0_29] : memref<2x1x64xf32, #tpu.memory_space<vmem>>, vector<1x1x64xf32>
    %48 = vector.shape_cast %47 : vector<1x1x64xf32> to vector<1x64xf32>
    %cst_30 = arith.constant dense<0.000000e+00> : vector<8x64xf32>
    %49 = tpu.matmul %44, %46, %cst_30 {dimension_numbers = #tpu.dot_dimension_numbers<[1], [0], [0], [1], [0, 0, 1, 1], [], []>} : vector<8x32xf32>, vector<32x64xf32>, vector<8x64xf32> -> vector<8x64xf32>
    %50 = vector.broadcast %48 : vector<1x64xf32> to vector<8x64xf32>
    %51 = arith.addf %49, %50 : vector<8x64xf32>
    %52 = arith.negf %51 : vector<8x64xf32>
    %53 = math.exp %52 : vector<8x64xf32>
    %cst_31 = arith.constant 1.000000e+00 : f32
    %54 = vector.broadcast %cst_31 : f32 to vector<8x64xf32>
    %55 = arith.addf %54, %53 : vector<8x64xf32>
    %56 = arith.divf %54, %55 : vector<8x64xf32>
    %57 = arith.mulf %51, %56 : vector<8x64xf32>
    %c0_32 = arith.constant 0 : index
    %c0_33 = arith.constant 0 : index
    %c0_34 = arith.constant 0 : index
    %58 = vector.load %arg22[%c0_32, %c0_33, %c0_34] : memref<2x64x32xf32, #tpu.memory_space<vmem>>, vector<1x64x32xf32>
    %59 = vector.shape_cast %58 : vector<1x64x32xf32> to vector<64x32xf32>
    %c0_35 = arith.constant 0 : index
    %c0_36 = arith.constant 0 : index
    %c0_37 = arith.constant 0 : index
    %60 = vector.load %arg18[%c0_35, %c0_36, %c0_37] : memref<2x1x32xf32, #tpu.memory_space<vmem>>, vector<1x1x32xf32>
    %61 = vector.shape_cast %60 : vector<1x1x32xf32> to vector<1x32xf32>
    %cst_38 = arith.constant dense<0.000000e+00> : vector<8x32xf32>
    %62 = tpu.matmul %57, %59, %cst_38 {dimension_numbers = #tpu.dot_dimension_numbers<[1], [0], [0], [1], [0, 0, 1, 1], [], []>} : vector<8x64xf32>, vector<64x32xf32>, vector<8x32xf32> -> vector<8x32xf32>
    %63 = vector.broadcast %61 : vector<1x32xf32> to vector<8x32xf32>
    %64 = arith.addf %62, %63 : vector<8x32xf32>
    %cst_39 = arith.constant 5.000000e-01 : f32
    %65 = vector.broadcast %cst_39 : f32 to vector<8x32xf32>
    %66 = arith.mulf %65, %64 : vector<8x32xf32>
    %67 = arith.addf %6, %66 : vector<8x32xf32>
    %c0_40 = arith.constant 0 : index
    %c0_41 = arith.constant 0 : index
    %c0_42 = arith.constant 0 : index
    %68 = vector.load %arg14[%c0_40, %c0_41, %c0_42] : memref<2x1x32xf32, #tpu.memory_space<vmem>>, vector<1x1x32xf32>
    %69 = vector.shape_cast %68 : vector<1x1x32xf32> to vector<1x32xf32>
    %c0_43 = arith.constant 0 : index
    %c0_44 = arith.constant 0 : index
    %c0_45 = arith.constant 0 : index
    %70 = vector.load %arg13[%c0_43, %c0_44, %c0_45] : memref<2x1x32xf32, #tpu.memory_space<vmem>>, vector<1x1x32xf32>
    %71 = vector.shape_cast %70 : vector<1x1x32xf32> to vector<1x32xf32>
    %cst_46 = arith.constant dense<0.000000e+00> : vector<8xf32>
    %72 = vector.multi_reduction <add>, %67, %cst_46 [1] : vector<8x32xf32> to vector<8xf32>
    %73 = vector.shape_cast %72 : vector<8xf32> to vector<8x1xf32>
    %cst_47 = arith.constant 3.200000e+01 : f32
    %74 = vector.broadcast %cst_47 : f32 to vector<8x1xf32>
    %75 = arith.divf %73, %74 : vector<8x1xf32>
    %76 = vector.broadcast %75 : vector<8x1xf32> to vector<8x32xf32>
    %77 = arith.subf %67, %76 : vector<8x32xf32>
    %78 = arith.mulf %77, %77 : vector<8x32xf32>
    %cst_48 = arith.constant dense<0.000000e+00> : vector<8xf32>
    %79 = vector.multi_reduction <add>, %78, %cst_48 [1] : vector<8x32xf32> to vector<8xf32>
    %80 = vector.shape_cast %79 : vector<8xf32> to vector<8x1xf32>
    %cst_49 = arith.constant 3.200000e+01 : f32
    %81 = vector.broadcast %cst_49 : f32 to vector<8x1xf32>
    %82 = arith.divf %80, %81 : vector<8x1xf32>
    %83 = vector.broadcast %75 : vector<8x1xf32> to vector<8x32xf32>
    %84 = arith.subf %67, %83 : vector<8x32xf32>
    %cst_50 = arith.constant 9.99999974E-6 : f32
    %85 = vector.broadcast %cst_50 : f32 to vector<8x1xf32>
    %86 = arith.addf %82, %85 : vector<8x1xf32>
    %87 = math.rsqrt %86 : vector<8x1xf32>
    %88 = vector.broadcast %87 : vector<8x1xf32> to vector<8x32xf32>
    %89 = arith.mulf %84, %88 : vector<8x32xf32>
    %90 = vector.broadcast %69 : vector<1x32xf32> to vector<8x32xf32>
    %91 = arith.mulf %89, %90 : vector<8x32xf32>
    %92 = vector.broadcast %71 : vector<1x32xf32> to vector<8x32xf32>
    %93 = arith.addf %91, %92 : vector<8x32xf32>
    %c0_51 = arith.constant 0 : index
    %c0_52 = arith.constant 0 : index
    %c0_53 = arith.constant 0 : index
    %94 = vector.load %arg34[%c0_51, %c0_52, %c0_53] : memref<2x32x64xf32, #tpu.memory_space<vmem>>, vector<1x32x64xf32>
    %95 = vector.shape_cast %94 : vector<1x32x64xf32> to vector<32x64xf32>
    %c0_54 = arith.constant 0 : index
    %c0_55 = arith.constant 0 : index
    %c0_56 = arith.constant 0 : index
    %96 = vector.load %arg33[%c0_54, %c0_55, %c0_56] : memref<2x1x64xf32, #tpu.memory_space<vmem>>, vector<1x1x64xf32>
    %97 = vector.shape_cast %96 : vector<1x1x64xf32> to vector<1x64xf32>
    %cst_57 = arith.constant dense<0.000000e+00> : vector<8x64xf32>
    %98 = tpu.matmul %93, %95, %cst_57 {dimension_numbers = #tpu.dot_dimension_numbers<[1], [0], [0], [1], [0, 0, 1, 1], [], []>} : vector<8x32xf32>, vector<32x64xf32>, vector<8x64xf32> -> vector<8x64xf32>
    %99 = vector.broadcast %97 : vector<1x64xf32> to vector<8x64xf32>
    %100 = arith.addf %98, %99 : vector<8x64xf32>
    %101 = vector.extract_strided_slice %100 {offsets = [0, 0], sizes = [8, 32], strides = [1, 1]} : vector<8x64xf32> to vector<8x32xf32>
    %102 = vector.extract_strided_slice %100 {offsets = [0, 32], sizes = [8, 32], strides = [1, 1]} : vector<8x64xf32> to vector<8x32xf32>
    %103 = arith.negf %102 : vector<8x32xf32>
    %104 = math.exp %103 : vector<8x32xf32>
    %cst_58 = arith.constant 1.000000e+00 : f32
    %105 = vector.broadcast %cst_58 : f32 to vector<8x32xf32>
    %106 = arith.addf %105, %104 : vector<8x32xf32>
    %107 = arith.divf %105, %106 : vector<8x32xf32>
    %108 = arith.mulf %101, %107 : vector<8x32xf32>
    %c8 = arith.constant 8 : index
    %c0_59 = arith.constant 0 : index
    %109 = vector.load %arg41[%c8, %c0_59] : memref<24x32xf32, #tpu.memory_space<vmem>>, vector<8x32xf32>
    tpu.vector_store %arg41[%c8, %c0_59], %108 {strides = array<i32>} : memref<24x32xf32, #tpu.memory_space<vmem>>, vector<8x32xf32>,
    %c0_60 = arith.constant 0 : index
    %c0_61 = arith.constant 0 : index
    %c0_62 = arith.constant 0 : index
    %110 = vector.load %arg16[%c0_60, %c0_61, %c0_62] : memref<2x7x32xf32, #tpu.memory_space<vmem>>, vector<1x7x32xf32>
    %111 = vector.shape_cast %110 : vector<1x7x32xf32> to vector<7x32xf32>
    %cst_63 = arith.constant 0.000000e+00 : f32
    %112 = vector.broadcast %cst_63 : f32 to vector<8x32xf32>
    %c0_64 = arith.constant 0 : index
    %c0_65 = arith.constant 0 : index
    %c0_66 = arith.constant 0 : index
    %113 = vector.load %arg15[%c0_64, %c0_65, %c0_66] : memref<2x1x32xf32, #tpu.memory_space<vmem>>, vector<1x1x32xf32>
    %114 = vector.shape_cast %113 : vector<1x1x32xf32> to vector<1x32xf32>
    %115 = vector.broadcast %114 : vector<1x32xf32> to vector<8x32xf32>
    %116 = arith.addf %112, %115 : vector<8x32xf32>
    %c5 = arith.constant 5 : index
    %c0_67 = arith.constant 0 : index
    %117 = vector.load %arg41[%c5, %c0_67] : memref<24x32xf32, #tpu.memory_space<vmem>>, vector<8x32xf32>
    %118 = vector.extract_strided_slice %111 {offsets = [0, 0], sizes = [1, 32], strides = [1, 1]} : vector<7x32xf32> to vector<1x32xf32>
    %119 = vector.broadcast %118 : vector<1x32xf32> to vector<8x32xf32>
    %120 = arith.mulf %117, %119 : vector<8x32xf32>
    %121 = arith.addf %116, %120 : vector<8x32xf32>
    %c6 = arith.constant 6 : index
    %c0_68 = arith.constant 0 : index
    %122 = vector.load %arg41[%c6, %c0_68] : memref<24x32xf32, #tpu.memory_space<vmem>>, vector<8x32xf32>
    %123 = vector.extract_strided_slice %111 {offsets = [1, 0], sizes = [1, 32], strides = [1, 1]} : vector<7x32xf32> to vector<1x32xf32>
    %124 = vector.broadcast %123 : vector<1x32xf32> to vector<8x32xf32>
    %125 = arith.mulf %122, %124 : vector<8x32xf32>
    %126 = arith.addf %121, %125 : vector<8x32xf32>
    %c7 = arith.constant 7 : index
    %c0_69 = arith.constant 0 : index
    %127 = vector.load %arg41[%c7, %c0_69] : memref<24x32xf32, #tpu.memory_space<vmem>>, vector<8x32xf32>
    %128 = vector.extract_strided_slice %111 {offsets = [2, 0], sizes = [1, 32], strides = [1, 1]} : vector<7x32xf32> to vector<1x32xf32>
    %129 = vector.broadcast %128 : vector<1x32xf32> to vector<8x32xf32>
    %130 = arith.mulf %127, %129 : vector<8x32xf32>
    %131 = arith.addf %126, %130 : vector<8x32xf32>
    %c8_70 = arith.constant 8 : index
    %c0_71 = arith.constant 0 : index
    %132 = vector.load %arg41[%c8_70, %c0_71] : memref<24x32xf32, #tpu.memory_space<vmem>>, vector<8x32xf32>
    %133 = vector.extract_strided_slice %111 {offsets = [3, 0], sizes = [1, 32], strides = [1, 1]} : vector<7x32xf32> to vector<1x32xf32>
    %134 = vector.broadcast %133 : vector<1x32xf32> to vector<8x32xf32>
    %135 = arith.mulf %132, %134 : vector<8x32xf32>
    %136 = arith.addf %131, %135 : vector<8x32xf32>
    %c9 = arith.constant 9 : index
    %c0_72 = arith.constant 0 : index
    %137 = vector.load %arg41[%c9, %c0_72] : memref<24x32xf32, #tpu.memory_space<vmem>>, vector<8x32xf32>
    %138 = vector.extract_strided_slice %111 {offsets = [4, 0], sizes = [1, 32], strides = [1, 1]} : vector<7x32xf32> to vector<1x32xf32>
    %139 = vector.broadcast %138 : vector<1x32xf32> to vector<8x32xf32>
    %140 = arith.mulf %137, %139 : vector<8x32xf32>
    %141 = arith.addf %136, %140 : vector<8x32xf32>
    %c10 = arith.constant 10 : index
    %c0_73 = arith.constant 0 : index
    %142 = vector.load %arg41[%c10, %c0_73] : memref<24x32xf32, #tpu.memory_space<vmem>>, vector<8x32xf32>
    %143 = vector.extract_strided_slice %111 {offsets = [5, 0], sizes = [1, 32], strides = [1, 1]} : vector<7x32xf32> to vector<1x32xf32>
    %144 = vector.broadcast %143 : vector<1x32xf32> to vector<8x32xf32>
    %145 = arith.mulf %142, %144 : vector<8x32xf32>
    %146 = arith.addf %141, %145 : vector<8x32xf32>
    %c11 = arith.constant 11 : index
    %c0_74 = arith.constant 0 : index
    %147 = vector.load %arg41[%c11, %c0_74] : memref<24x32xf32, #tpu.memory_space<vmem>>, vector<8x32xf32>
    %148 = vector.extract_strided_slice %111 {offsets = [6, 0], sizes = [1, 32], strides = [1, 1]} : vector<7x32xf32> to vector<1x32xf32>
    %149 = vector.broadcast %148 : vector<1x32xf32> to vector<8x32xf32>
    %150 = arith.mulf %147, %149 : vector<8x32xf32>
    %151 = arith.addf %146, %150 : vector<8x32xf32>
    %152 = vector.shape_cast %151 : vector<8x32xf32> to vector<1x8x32xf32>
    %cst_75 = arith.constant dense<0.000000e+00> : vector<1xf32>
    %153 = vector.multi_reduction <add>, %152, %cst_75 [1, 2] : vector<1x8x32xf32> to vector<1xf32>
    %154 = vector.shape_cast %153 : vector<1xf32> to vector<1x1x1xf32>
    %155 = vector.extract %154[0, 0, 0] : f32 from vector<1x1x1xf32>
    %156 = vector.broadcast %155 : f32 to vector<1x1xf32>
    %cst_76 = arith.constant 2.560000e+02 : f32
    %157 = vector.broadcast %cst_76 : f32 to vector<1x1xf32>
    %158 = arith.divf %156, %157 : vector<1x1xf32>
    %159 = vector.broadcast %158 : vector<1x1xf32> to vector<8x32xf32>
    %160 = arith.subf %151, %159 : vector<8x32xf32>
    %161 = arith.mulf %160, %160 : vector<8x32xf32>
    %162 = vector.shape_cast %161 : vector<8x32xf32> to vector<1x8x32xf32>
    %cst_77 = arith.constant dense<0.000000e+00> : vector<1xf32>
    %163 = vector.multi_reduction <add>, %162, %cst_77 [1, 2] : vector<1x8x32xf32> to vector<1xf32>
    %164 = vector.shape_cast %163 : vector<1xf32> to vector<1x1x1xf32>
    %165 = vector.extract %164[0, 0, 0] : f32 from vector<1x1x1xf32>
    %166 = vector.broadcast %165 : f32 to vector<1x1xf32>
    %cst_78 = arith.constant 2.560000e+02 : f32
    %167 = vector.broadcast %cst_78 : f32 to vector<1x1xf32>
    %168 = arith.divf %166, %167 : vector<1x1xf32>
    %169 = vector.broadcast %158 : vector<1x1xf32> to vector<8x32xf32>
    %170 = arith.subf %151, %169 : vector<8x32xf32>
    %cst_79 = arith.constant 9.99999974E-6 : f32
    %171 = vector.broadcast %cst_79 : f32 to vector<1x1xf32>
    %172 = arith.addf %168, %171 : vector<1x1xf32>
    %173 = math.rsqrt %172 : vector<1x1xf32>
    %174 = vector.broadcast %173 : vector<1x1xf32> to vector<8x32xf32>
    %175 = arith.mulf %170, %174 : vector<8x32xf32>
    %c0_80 = arith.constant 0 : index
    %c0_81 = arith.constant 0 : index
    %c0_82 = arith.constant 0 : index
    %176 = vector.load %arg30[%c0_80, %c0_81, %c0_82] : memref<2x1x32xf32, #tpu.memory_space<vmem>>, vector<1x1x32xf32>
    %177 = vector.shape_cast %176 : vector<1x1x32xf32> to vector<1x32xf32>
    %178 = vector.broadcast %177 : vector<1x32xf32> to vector<8x32xf32>
    %179 = arith.mulf %175, %178 : vector<8x32xf32>
    %c0_83 = arith.constant 0 : index
    %c0_84 = arith.constant 0 : index
    %c0_85 = arith.constant 0 : index
    %180 = vector.load %arg29[%c0_83, %c0_84, %c0_85] : memref<2x1x32xf32, #tpu.memory_space<vmem>>, vector<1x1x32xf32>
    %181 = vector.shape_cast %180 : vector<1x1x32xf32> to vector<1x32xf32>
    %182 = vector.broadcast %181 : vector<1x32xf32> to vector<8x32xf32>
    %183 = arith.addf %179, %182 : vector<8x32xf32>
    %184 = arith.negf %183 : vector<8x32xf32>
    %185 = math.exp %184 : vector<8x32xf32>
    %cst_86 = arith.constant 1.000000e+00 : f32
    %186 = vector.broadcast %cst_86 : f32 to vector<8x32xf32>
    %187 = arith.addf %186, %185 : vector<8x32xf32>
    %188 = arith.divf %186, %187 : vector<8x32xf32>
    %189 = arith.mulf %183, %188 : vector<8x32xf32>
    %c0_87 = arith.constant 0 : index
    %c0_88 = arith.constant 0 : index
    %c0_89 = arith.constant 0 : index
    %190 = vector.load %arg36[%c0_87, %c0_88, %c0_89] : memref<2x32x32xf32, #tpu.memory_space<vmem>>, vector<1x32x32xf32>
    %191 = vector.shape_cast %190 : vector<1x32x32xf32> to vector<32x32xf32>
    %c0_90 = arith.constant 0 : index
    %c0_91 = arith.constant 0 : index
    %c0_92 = arith.constant 0 : index
    %192 = vector.load %arg35[%c0_90, %c0_91, %c0_92] : memref<2x1x32xf32, #tpu.memory_space<vmem>>, vector<1x1x32xf32>
    %193 = vector.shape_cast %192 : vector<1x1x32xf32> to vector<1x32xf32>
    %cst_93 = arith.constant dense<0.000000e+00> : vector<8x32xf32>
    %194 = tpu.matmul %189, %191, %cst_93 {dimension_numbers = #tpu.dot_dimension_numbers<[1], [0], [0], [1], [0, 0, 1, 1], [], []>} : vector<8x32xf32>, vector<32x32xf32>, vector<8x32xf32> -> vector<8x32xf32>
    %195 = vector.broadcast %193 : vector<1x32xf32> to vector<8x32xf32>
    %196 = arith.addf %194, %195 : vector<8x32xf32>
    %197 = arith.addf %67, %196 : vector<8x32xf32>
    %c0_94 = arith.constant 0 : index
    %c0_95 = arith.constant 0 : index
    %c0_96 = arith.constant 0 : index
    %198 = vector.load %arg10[%c0_94, %c0_95, %c0_96] : memref<2x1x32xf32, #tpu.memory_space<vmem>>, vector<1x1x32xf32>
    %199 = vector.shape_cast %198 : vector<1x1x32xf32> to vector<1x32xf32>
    %c0_97 = arith.constant 0 : index
    %c0_98 = arith.constant 0 : index
    %c0_99 = arith.constant 0 : index
    %200 = vector.load %arg9[%c0_97, %c0_98, %c0_99] : memref<2x1x32xf32, #tpu.memory_space<vmem>>, vector<1x1x32xf32>
    %201 = vector.shape_cast %200 : vector<1x1x32xf32> to vector<1x32xf32>
    %cst_100 = arith.constant dense<0.000000e+00> : vector<8xf32>
    %202 = vector.multi_reduction <add>, %197, %cst_100 [1] : vector<8x32xf32> to vector<8xf32>
    %203 = vector.shape_cast %202 : vector<8xf32> to vector<8x1xf32>
    %cst_101 = arith.constant 3.200000e+01 : f32
    %204 = vector.broadcast %cst_101 : f32 to vector<8x1xf32>
    %205 = arith.divf %203, %204 : vector<8x1xf32>
    %206 = vector.broadcast %205 : vector<8x1xf32> to vector<8x32xf32>
    %207 = arith.subf %197, %206 : vector<8x32xf32>
    %208 = arith.mulf %207, %207 : vector<8x32xf32>
    %cst_102 = arith.constant dense<0.000000e+00> : vector<8xf32>
    %209 = vector.multi_reduction <add>, %208, %cst_102 [1] : vector<8x32xf32> to vector<8xf32>
    %210 = vector.shape_cast %209 : vector<8xf32> to vector<8x1xf32>
    %cst_103 = arith.constant 3.200000e+01 : f32
    %211 = vector.broadcast %cst_103 : f32 to vector<8x1xf32>
    %212 = arith.divf %210, %211 : vector<8x1xf32>
    %213 = vector.broadcast %205 : vector<8x1xf32> to vector<8x32xf32>
    %214 = arith.subf %197, %213 : vector<8x32xf32>
    %cst_104 = arith.constant 9.99999974E-6 : f32
    %215 = vector.broadcast %cst_104 : f32 to vector<8x1xf32>
    %216 = arith.addf %212, %215 : vector<8x1xf32>
    %217 = math.rsqrt %216 : vector<8x1xf32>
    %218 = vector.broadcast %217 : vector<8x1xf32> to vector<8x32xf32>
    %219 = arith.mulf %214, %218 : vector<8x32xf32>
    %220 = vector.broadcast %199 : vector<1x32xf32> to vector<8x32xf32>
    %221 = arith.mulf %219, %220 : vector<8x32xf32>
    %222 = vector.broadcast %201 : vector<1x32xf32> to vector<8x32xf32>
    %223 = arith.addf %221, %222 : vector<8x32xf32>
    %c0_105 = arith.constant 0 : index
    %c0_106 = arith.constant 0 : index
    %c0_107 = arith.constant 0 : index
    %224 = vector.load %arg8[%c0_105, %c0_106, %c0_107] : memref<2x32x96xf32, #tpu.memory_space<vmem>>, vector<1x32x96xf32>
    %225 = vector.shape_cast %224 : vector<1x32x96xf32> to vector<32x96xf32>
    %c0_108 = arith.constant 0 : index
    %c0_109 = arith.constant 0 : index
    %c0_110 = arith.constant 0 : index
    %226 = vector.load %arg7[%c0_108, %c0_109, %c0_110] : memref<2x1x96xf32, #tpu.memory_space<vmem>>, vector<1x1x96xf32>
    %227 = vector.shape_cast %226 : vector<1x1x96xf32> to vector<1x96xf32>
    %cst_111 = arith.constant dense<0.000000e+00> : vector<8x96xf32>
    %228 = tpu.matmul %223, %225, %cst_111 {dimension_numbers = #tpu.dot_dimension_numbers<[1], [0], [0], [1], [0, 0, 1, 1], [], []>} : vector<8x32xf32>, vector<32x96xf32>, vector<8x96xf32> -> vector<8x96xf32>
    %229 = vector.broadcast %227 : vector<1x96xf32> to vector<8x96xf32>
    %230 = arith.addf %228, %229 : vector<8x96xf32>
    %231 = vector.extract_strided_slice %230 {offsets = [0, 0], sizes = [8, 32], strides = [1, 1]} : vector<8x96xf32> to vector<8x32xf32>
    %232 = vector.extract_strided_slice %230 {offsets = [0, 32], sizes = [8, 32], strides = [1, 1]} : vector<8x96xf32> to vector<8x32xf32>
    %233 = vector.extract_strided_slice %230 {offsets = [0, 64], sizes = [8, 32], strides = [1, 1]} : vector<8x96xf32> to vector<8x32xf32>
    %234 = tpu.concatenate %232, %232, %232, %232 in 0 : vector<8x32xf32>, vector<8x32xf32>, vector<8x32xf32>, vector<8x32xf32> -> vector<32x32xf32>
    %235 = arith.mulf %234, %16 : vector<32x32xf32>
    %236 = tpu.concatenate %233, %233, %233, %233 in 0 : vector<8x32xf32>, vector<8x32xf32>, vector<8x32xf32>, vector<8x32xf32> -> vector<32x32xf32>
    %237 = arith.mulf %236, %16 : vector<32x32xf32>
    %cst_112 = arith.constant dense<0.000000e+00> : vector<8x32xf32>
    %238 = tpu.matmul %231, %235, %cst_112 {dimension_numbers = #tpu.dot_dimension_numbers<[1], [1], [0], [0], [0, 0, 1, 0], [], []>} : vector<8x32xf32>, vector<32x32xf32>, vector<8x32xf32> -> vector<8x32xf32>
    %cst_113 = arith.constant 0.353553385 : f32
    %239 = vector.broadcast %cst_113 : f32 to vector<8x32xf32>
    %240 = arith.mulf %238, %239 : vector<8x32xf32>
    %241 = vector.broadcast %15 : vector<1x32xf32> to vector<8x32xf32>
    %242 = arith.addf %240, %241 : vector<8x32xf32>
    %243 = vector.extract_strided_slice %242 {offsets = [0, 0], sizes = [8, 8], strides = [1, 1]} : vector<8x32xf32> to vector<8x8xf32>
    %cst_114 = arith.constant dense<0xFF800000> : vector<8xf32>
    %244 = vector.multi_reduction <maximumf>, %243, %cst_114 [1] : vector<8x8xf32> to vector<8xf32>
    %245 = vector.shape_cast %244 : vector<8xf32> to vector<8x1xf32>
    %246 = vector.broadcast %245 : vector<8x1xf32> to vector<8x8xf32>
    %247 = arith.subf %243, %246 : vector<8x8xf32>
    %248 = math.exp %247 : vector<8x8xf32>
    %cst_115 = arith.constant dense<0.000000e+00> : vector<8xf32>
    %249 = vector.multi_reduction <add>, %248, %cst_115 [1] : vector<8x8xf32> to vector<8xf32>
    %250 = vector.shape_cast %249 : vector<8xf32> to vector<8x1xf32>
    %251 = tpu.reciprocal %250 {approx = true} : vector<8x1xf32> -> vector<8x1xf32>
    %252 = vector.broadcast %251 : vector<8x1xf32> to vector<8x8xf32>
    %253 = arith.mulf %248, %252 : vector<8x8xf32>
    %254 = vector.extract_strided_slice %242 {offsets = [0, 8], sizes = [8, 8], strides = [1, 1]} : vector<8x32xf32> to vector<8x8xf32>
    %cst_116 = arith.constant dense<0xFF800000> : vector<8xf32>
    %255 = vector.multi_reduction <maximumf>, %254, %cst_116 [1] : vector<8x8xf32> to vector<8xf32>
    %256 = vector.shape_cast %255 : vector<8xf32> to vector<8x1xf32>
    %257 = vector.broadcast %256 : vector<8x1xf32> to vector<8x8xf32>
    %258 = arith.subf %254, %257 : vector<8x8xf32>
    %259 = math.exp %258 : vector<8x8xf32>
    %cst_117 = arith.constant dense<0.000000e+00> : vector<8xf32>
    %260 = vector.multi_reduction <add>, %259, %cst_117 [1] : vector<8x8xf32> to vector<8xf32>
    %261 = vector.shape_cast %260 : vector<8xf32> to vector<8x1xf32>
    %262 = tpu.reciprocal %261 {approx = true} : vector<8x1xf32> -> vector<8x1xf32>
    %263 = vector.broadcast %262 : vector<8x1xf32> to vector<8x8xf32>
    %264 = arith.mulf %259, %263 : vector<8x8xf32>
    %265 = vector.extract_strided_slice %242 {offsets = [0, 16], sizes = [8, 8], strides = [1, 1]} : vector<8x32xf32> to vector<8x8xf32>
    %cst_118 = arith.constant dense<0xFF800000> : vector<8xf32>
    %266 = vector.multi_reduction <maximumf>, %265, %cst_118 [1] : vector<8x8xf32> to vector<8xf32>
    %267 = vector.shape_cast %266 : vector<8xf32> to vector<8x1xf32>
    %268 = vector.broadcast %267 : vector<8x1xf32> to vector<8x8xf32>
    %269 = arith.subf %265, %268 : vector<8x8xf32>
    %270 = math.exp %269 : vector<8x8xf32>
    %cst_119 = arith.constant dense<0.000000e+00> : vector<8xf32>
    %271 = vector.multi_reduction <add>, %270, %cst_119 [1] : vector<8x8xf32> to vector<8xf32>
    %272 = vector.shape_cast %271 : vector<8xf32> to vector<8x1xf32>
    %273 = tpu.reciprocal %272 {approx = true} : vector<8x1xf32> -> vector<8x1xf32>
    %274 = vector.broadcast %273 : vector<8x1xf32> to vector<8x8xf32>
    %275 = arith.mulf %270, %274 : vector<8x8xf32>
    %276 = vector.extract_strided_slice %242 {offsets = [0, 24], sizes = [8, 8], strides = [1, 1]} : vector<8x32xf32> to vector<8x8xf32>
    %cst_120 = arith.constant dense<0xFF800000> : vector<8xf32>
    %277 = vector.multi_reduction <maximumf>, %276, %cst_120 [1] : vector<8x8xf32> to vector<8xf32>
    %278 = vector.shape_cast %277 : vector<8xf32> to vector<8x1xf32>
    %279 = vector.broadcast %278 : vector<8x1xf32> to vector<8x8xf32>
    %280 = arith.subf %276, %279 : vector<8x8xf32>
    %281 = math.exp %280 : vector<8x8xf32>
    %cst_121 = arith.constant dense<0.000000e+00> : vector<8xf32>
    %282 = vector.multi_reduction <add>, %281, %cst_121 [1] : vector<8x8xf32> to vector<8xf32>
    %283 = vector.shape_cast %282 : vector<8xf32> to vector<8x1xf32>
    %284 = tpu.reciprocal %283 {approx = true} : vector<8x1xf32> -> vector<8x1xf32>
    %285 = vector.broadcast %284 : vector<8x1xf32> to vector<8x8xf32>
    %286 = arith.mulf %281, %285 : vector<8x8xf32>
    %287 = tpu.concatenate %253, %264, %275, %286 in 1 : vector<8x8xf32>, vector<8x8xf32>, vector<8x8xf32>, vector<8x8xf32> -> vector<8x32xf32>
    %cst_122 = arith.constant dense<0.000000e+00> : vector<8x32xf32>
    %288 = tpu.matmul %287, %237, %cst_122 {dimension_numbers = #tpu.dot_dimension_numbers<[1], [0], [0], [1], [0, 0, 1, 1], [], []>} : vector<8x32xf32>, vector<32x32xf32>, vector<8x32xf32> -> vector<8x32xf32>
    %c0_123 = arith.constant 0 : index
    %c0_124 = arith.constant 0 : index
    %c0_125 = arith.constant 0 : index
    %289 = vector.load %arg12[%c0_123, %c0_124, %c0_125] : memref<2x32x32xf32, #tpu.memory_space<vmem>>, vector<1x32x32xf32>
    %290 = vector.shape_cast %289 : vector<1x32x32xf32> to vector<32x32xf32>
    %c0_126 = arith.constant 0 : index
    %c0_127 = arith.constant 0 : index
    %c0_128 = arith.constant 0 : index
    %291 = vector.load %arg11[%c0_126, %c0_127, %c0_128] : memref<2x1x32xf32, #tpu.memory_space<vmem>>, vector<1x1x32xf32>
    %292 = vector.shape_cast %291 : vector<1x1x32xf32> to vector<1x32xf32>
    %cst_129 = arith.constant dense<0.000000e+00> : vector<8x32xf32>
    %293 = tpu.matmul %288, %290, %cst_129 {dimension_numbers = #tpu.dot_dimension_numbers<[1], [0], [0], [1], [0, 0, 1, 1], [], []>} : vector<8x32xf32>, vector<32x32xf32>, vector<8x32xf32> -> vector<8x32xf32>
    %294 = vector.broadcast %292 : vector<1x32xf32> to vector<8x32xf32>
    %295 = arith.addf %293, %294 : vector<8x32xf32>
    %296 = arith.addf %197, %295 : vector<8x32xf32>
    %c0_130 = arith.constant 0 : index
    %c0_131 = arith.constant 0 : index
    %c0_132 = arith.constant 0 : index
    %297 = vector.load %arg26[%c0_130, %c0_131, %c0_132] : memref<2x1x32xf32, #tpu.memory_space<vmem>>, vector<1x1x32xf32>
    %298 = vector.shape_cast %297 : vector<1x1x32xf32> to vector<1x32xf32>
    %c0_133 = arith.constant 0 : index
    %c0_134 = arith.constant 0 : index
    %c0_135 = arith.constant 0 : index
    %299 = vector.load %arg25[%c0_133, %c0_134, %c0_135] : memref<2x1x32xf32, #tpu.memory_space<vmem>>, vector<1x1x32xf32>
    %300 = vector.shape_cast %299 : vector<1x1x32xf32> to vector<1x32xf32>
    %cst_136 = arith.constant dense<0.000000e+00> : vector<8xf32>
    %301 = vector.multi_reduction <add>, %296, %cst_136 [1] : vector<8x32xf32> to vector<8xf32>
    %302 = vector.shape_cast %301 : vector<8xf32> to vector<8x1xf32>
    %cst_137 = arith.constant 3.200000e+01 : f32
    %303 = vector.broadcast %cst_137 : f32 to vector<8x1xf32>
    %304 = arith.divf %302, %303 : vector<8x1xf32>
    %305 = vector.broadcast %304 : vector<8x1xf32> to vector<8x32xf32>
    %306 = arith.subf %296, %305 : vector<8x32xf32>
    %307 = arith.mulf %306, %306 : vector<8x32xf32>
    %cst_138 = arith.constant dense<0.000000e+00> : vector<8xf32>
    %308 = vector.multi_reduction <add>, %307, %cst_138 [1] : vector<8x32xf32> to vector<8xf32>
    %309 = vector.shape_cast %308 : vector<8xf32> to vector<8x1xf32>
    %cst_139 = arith.constant 3.200000e+01 : f32
    %310 = vector.broadcast %cst_139 : f32 to vector<8x1xf32>
    %311 = arith.divf %309, %310 : vector<8x1xf32>
    %312 = vector.broadcast %304 : vector<8x1xf32> to vector<8x32xf32>
    %313 = arith.subf %296, %312 : vector<8x32xf32>
    %cst_140 = arith.constant 9.99999974E-6 : f32
    %314 = vector.broadcast %cst_140 : f32 to vector<8x1xf32>
    %315 = arith.addf %311, %314 : vector<8x1xf32>
    %316 = math.rsqrt %315 : vector<8x1xf32>
    %317 = vector.broadcast %316 : vector<8x1xf32> to vector<8x32xf32>
    %318 = arith.mulf %313, %317 : vector<8x32xf32>
    %319 = vector.broadcast %298 : vector<1x32xf32> to vector<8x32xf32>
    %320 = arith.mulf %318, %319 : vector<8x32xf32>
    %321 = vector.broadcast %300 : vector<1x32xf32> to vector<8x32xf32>
    %322 = arith.addf %320, %321 : vector<8x32xf32>
    %c0_141 = arith.constant 0 : index
    %c0_142 = arith.constant 0 : index
    %c0_143 = arith.constant 0 : index
    %323 = vector.load %arg27[%c0_141, %c0_142, %c0_143] : memref<2x32x64xf32, #tpu.memory_space<vmem>>, vector<1x32x64xf32>
    %324 = vector.shape_cast %323 : vector<1x32x64xf32> to vector<32x64xf32>
    %c0_144 = arith.constant 0 : index
    %c0_145 = arith.constant 0 : index
    %c0_146 = arith.constant 0 : index
    %325 = vector.load %arg23[%c0_144, %c0_145, %c0_146] : memref<2x1x64xf32, #tpu.memory_space<vmem>>, vector<1x1x64xf32>
    %326 = vector.shape_cast %325 : vector<1x1x64xf32> to vector<1x64xf32>
    %cst_147 = arith.constant dense<0.000000e+00> : vector<8x64xf32>
    %327 = tpu.matmul %322, %324, %cst_147 {dimension_numbers = #tpu.dot_dimension_numbers<[1], [0], [0], [1], [0, 0, 1, 1], [], []>} : vector<8x32xf32>, vector<32x64xf32>, vector<8x64xf32> -> vector<8x64xf32>
    %328 = vector.broadcast %326 : vector<1x64xf32> to vector<8x64xf32>
    %329 = arith.addf %327, %328 : vector<8x64xf32>
    %330 = arith.negf %329 : vector<8x64xf32>
    %331 = math.exp %330 : vector<8x64xf32>
    %cst_148 = arith.constant 1.000000e+00 : f32
    %332 = vector.broadcast %cst_148 : f32 to vector<8x64xf32>
    %333 = arith.addf %332, %331 : vector<8x64xf32>
    %334 = arith.divf %332, %333 : vector<8x64xf32>
    %335 = arith.mulf %329, %334 : vector<8x64xf32>
    %c0_149 = arith.constant 0 : index
    %c0_150 = arith.constant 0 : index
    %c0_151 = arith.constant 0 : index
    %336 = vector.load %arg28[%c0_149, %c0_150, %c0_151] : memref<2x64x32xf32, #tpu.memory_space<vmem>>, vector<1x64x32xf32>
    %337 = vector.shape_cast %336 : vector<1x64x32xf32> to vector<64x32xf32>
    %c0_152 = arith.constant 0 : index
    %c0_153 = arith.constant 0 : index
    %c0_154 = arith.constant 0 : index
    %338 = vector.load %arg24[%c0_152, %c0_153, %c0_154] : memref<2x1x32xf32, #tpu.memory_space<vmem>>, vector<1x1x32xf32>
    %339 = vector.shape_cast %338 : vector<1x1x32xf32> to vector<1x32xf32>
    %cst_155 = arith.constant dense<0.000000e+00> : vector<8x32xf32>
    %340 = tpu.matmul %335, %337, %cst_155 {dimension_numbers = #tpu.dot_dimension_numbers<[1], [0], [0], [1], [0, 0, 1, 1], [], []>} : vector<8x64xf32>, vector<64x32xf32>, vector<8x32xf32> -> vector<8x32xf32>
    %341 = vector.broadcast %339 : vector<1x32xf32> to vector<8x32xf32>
    %342 = arith.addf %340, %341 : vector<8x32xf32>
    %cst_156 = arith.constant 5.000000e-01 : f32
    %343 = vector.broadcast %cst_156 : f32 to vector<8x32xf32>
    %344 = arith.mulf %343, %342 : vector<8x32xf32>
    %345 = arith.addf %296, %344 : vector<8x32xf32>
    %c0_157 = arith.constant 0 : index
    %c0_158 = arith.constant 0 : index
    %c0_159 = arith.constant 0 : index
    %346 = vector.load %arg32[%c0_157, %c0_158, %c0_159] : memref<2x1x32xf32, #tpu.memory_space<vmem>>, vector<1x1x32xf32>
    %347 = vector.shape_cast %346 : vector<1x1x32xf32> to vector<1x32xf32>
    %c0_160 = arith.constant 0 : index
    %c0_161 = arith.constant 0 : index
    %c0_162 = arith.constant 0 : index
    %348 = vector.load %arg31[%c0_160, %c0_161, %c0_162] : memref<2x1x32xf32, #tpu.memory_space<vmem>>, vector<1x1x32xf32>
    %349 = vector.shape_cast %348 : vector<1x1x32xf32> to vector<1x32xf32>
    %cst_163 = arith.constant dense<0.000000e+00> : vector<8xf32>
    %350 = vector.multi_reduction <add>, %345, %cst_163 [1] : vector<8x32xf32> to vector<8xf32>
    %351 = vector.shape_cast %350 : vector<8xf32> to vector<8x1xf32>
    %cst_164 = arith.constant 3.200000e+01 : f32
    %352 = vector.broadcast %cst_164 : f32 to vector<8x1xf32>
    %353 = arith.divf %351, %352 : vector<8x1xf32>
    %354 = vector.broadcast %353 : vector<8x1xf32> to vector<8x32xf32>
    %355 = arith.subf %345, %354 : vector<8x32xf32>
    %356 = arith.mulf %355, %355 : vector<8x32xf32>
    %cst_165 = arith.constant dense<0.000000e+00> : vector<8xf32>
    %357 = vector.multi_reduction <add>, %356, %cst_165 [1] : vector<8x32xf32> to vector<8xf32>
    %358 = vector.shape_cast %357 : vector<8xf32> to vector<8x1xf32>
    %cst_166 = arith.constant 3.200000e+01 : f32
    %359 = vector.broadcast %cst_166 : f32 to vector<8x1xf32>
    %360 = arith.divf %358, %359 : vector<8x1xf32>
    %361 = vector.broadcast %353 : vector<8x1xf32> to vector<8x32xf32>
    %362 = arith.subf %345, %361 : vector<8x32xf32>
    %cst_167 = arith.constant 9.99999974E-6 : f32
    %363 = vector.broadcast %cst_167 : f32 to vector<8x1xf32>
    %364 = arith.addf %360, %363 : vector<8x1xf32>
    %365 = math.rsqrt %364 : vector<8x1xf32>
    %366 = vector.broadcast %365 : vector<8x1xf32> to vector<8x32xf32>
    %367 = arith.mulf %362, %366 : vector<8x32xf32>
    %368 = vector.broadcast %347 : vector<1x32xf32> to vector<8x32xf32>
    %369 = arith.mulf %367, %368 : vector<8x32xf32>
    %370 = vector.broadcast %349 : vector<1x32xf32> to vector<8x32xf32>
    %371 = arith.addf %369, %370 : vector<8x32xf32>
    %c1 = arith.constant 1 : index
    %c0_168 = arith.constant 0 : index
    %c0_169 = arith.constant 0 : index
    %372 = vector.load %arg20[%c1, %c0_168, %c0_169] : memref<2x1x32xf32, #tpu.memory_space<vmem>>, vector<1x1x32xf32>
    %373 = vector.shape_cast %372 : vector<1x1x32xf32> to vector<1x32xf32>
    %c1_170 = arith.constant 1 : index
    %c0_171 = arith.constant 0 : index
    %c0_172 = arith.constant 0 : index
    %374 = vector.load %arg19[%c1_170, %c0_171, %c0_172] : memref<2x1x32xf32, #tpu.memory_space<vmem>>, vector<1x1x32xf32>
    %375 = vector.shape_cast %374 : vector<1x1x32xf32> to vector<1x32xf32>
    %cst_173 = arith.constant dense<0.000000e+00> : vector<8xf32>
    %376 = vector.multi_reduction <add>, %371, %cst_173 [1] : vector<8x32xf32> to vector<8xf32>
    %377 = vector.shape_cast %376 : vector<8xf32> to vector<8x1xf32>
    %cst_174 = arith.constant 3.200000e+01 : f32
    %378 = vector.broadcast %cst_174 : f32 to vector<8x1xf32>
    %379 = arith.divf %377, %378 : vector<8x1xf32>
    %380 = vector.broadcast %379 : vector<8x1xf32> to vector<8x32xf32>
    %381 = arith.subf %371, %380 : vector<8x32xf32>
    %382 = arith.mulf %381, %381 : vector<8x32xf32>
    %cst_175 = arith.constant dense<0.000000e+00> : vector<8xf32>
    %383 = vector.multi_reduction <add>, %382, %cst_175 [1] : vector<8x32xf32> to vector<8xf32>
    %384 = vector.shape_cast %383 : vector<8xf32> to vector<8x1xf32>
    %cst_176 = arith.constant 3.200000e+01 : f32
    %385 = vector.broadcast %cst_176 : f32 to vector<8x1xf32>
    %386 = arith.divf %384, %385 : vector<8x1xf32>
    %387 = vector.broadcast %379 : vector<8x1xf32> to vector<8x32xf32>
    %388 = arith.subf %371, %387 : vector<8x32xf32>
    %cst_177 = arith.constant 9.99999974E-6 : f32
    %389 = vector.broadcast %cst_177 : f32 to vector<8x1xf32>
    %390 = arith.addf %386, %389 : vector<8x1xf32>
    %391 = math.rsqrt %390 : vector<8x1xf32>
    %392 = vector.broadcast %391 : vector<8x1xf32> to vector<8x32xf32>
    %393 = arith.mulf %388, %392 : vector<8x32xf32>
    %394 = vector.broadcast %373 : vector<1x32xf32> to vector<8x32xf32>
    %395 = arith.mulf %393, %394 : vector<8x32xf32>
    %396 = vector.broadcast %375 : vector<1x32xf32> to vector<8x32xf32>
    %397 = arith.addf %395, %396 : vector<8x32xf32>
    %c1_178 = arith.constant 1 : index
    %c0_179 = arith.constant 0 : index
    %c0_180 = arith.constant 0 : index
    %398 = vector.load %arg21[%c1_178, %c0_179, %c0_180] : memref<2x32x64xf32, #tpu.memory_space<vmem>>, vector<1x32x64xf32>
    %399 = vector.shape_cast %398 : vector<1x32x64xf32> to vector<32x64xf32>
    %c1_181 = arith.constant 1 : index
    %c0_182 = arith.constant 0 : index
    %c0_183 = arith.constant 0 : index
    %400 = vector.load %arg17[%c1_181, %c0_182, %c0_183] : memref<2x1x64xf32, #tpu.memory_space<vmem>>, vector<1x1x64xf32>
    %401 = vector.shape_cast %400 : vector<1x1x64xf32> to vector<1x64xf32>
    %cst_184 = arith.constant dense<0.000000e+00> : vector<8x64xf32>
    %402 = tpu.matmul %397, %399, %cst_184 {dimension_numbers = #tpu.dot_dimension_numbers<[1], [0], [0], [1], [0, 0, 1, 1], [], []>} : vector<8x32xf32>, vector<32x64xf32>, vector<8x64xf32> -> vector<8x64xf32>
    %403 = vector.broadcast %401 : vector<1x64xf32> to vector<8x64xf32>
    %404 = arith.addf %402, %403 : vector<8x64xf32>
    %405 = arith.negf %404 : vector<8x64xf32>
    %406 = math.exp %405 : vector<8x64xf32>
    %cst_185 = arith.constant 1.000000e+00 : f32
    %407 = vector.broadcast %cst_185 : f32 to vector<8x64xf32>
    %408 = arith.addf %407, %406 : vector<8x64xf32>
    %409 = arith.divf %407, %408 : vector<8x64xf32>
    %410 = arith.mulf %404, %409 : vector<8x64xf32>
    %c1_186 = arith.constant 1 : index
    %c0_187 = arith.constant 0 : index
    %c0_188 = arith.constant 0 : index
    %411 = vector.load %arg22[%c1_186, %c0_187, %c0_188] : memref<2x64x32xf32, #tpu.memory_space<vmem>>, vector<1x64x32xf32>
    %412 = vector.shape_cast %411 : vector<1x64x32xf32> to vector<64x32xf32>
    %c1_189 = arith.constant 1 : index
    %c0_190 = arith.constant 0 : index
    %c0_191 = arith.constant 0 : index
    %413 = vector.load %arg18[%c1_189, %c0_190, %c0_191] : memref<2x1x32xf32, #tpu.memory_space<vmem>>, vector<1x1x32xf32>
    %414 = vector.shape_cast %413 : vector<1x1x32xf32> to vector<1x32xf32>
    %cst_192 = arith.constant dense<0.000000e+00> : vector<8x32xf32>
    %415 = tpu.matmul %410, %412, %cst_192 {dimension_numbers = #tpu.dot_dimension_numbers<[1], [0], [0], [1], [0, 0, 1, 1], [], []>} : vector<8x64xf32>, vector<64x32xf32>, vector<8x32xf32> -> vector<8x32xf32>
    %416 = vector.broadcast %414 : vector<1x32xf32> to vector<8x32xf32>
    %417 = arith.addf %415, %416 : vector<8x32xf32>
    %cst_193 = arith.constant 5.000000e-01 : f32
    %418 = vector.broadcast %cst_193 : f32 to vector<8x32xf32>
    %419 = arith.mulf %418, %417 : vector<8x32xf32>
    %420 = arith.addf %371, %419 : vector<8x32xf32>
    %c1_194 = arith.constant 1 : index
    %c0_195 = arith.constant 0 : index
    %c0_196 = arith.constant 0 : index
    %421 = vector.load %arg14[%c1_194, %c0_195, %c0_196] : memref<2x1x32xf32, #tpu.memory_space<vmem>>, vector<1x1x32xf32>
    %422 = vector.shape_cast %421 : vector<1x1x32xf32> to vector<1x32xf32>
    %c1_197 = arith.constant 1 : index
    %c0_198 = arith.constant 0 : index
    %c0_199 = arith.constant 0 : index
    %423 = vector.load %arg13[%c1_197, %c0_198, %c0_199] : memref<2x1x32xf32, #tpu.memory_space<vmem>>, vector<1x1x32xf32>
    %424 = vector.shape_cast %423 : vector<1x1x32xf32> to vector<1x32xf32>
    %cst_200 = arith.constant dense<0.000000e+00> : vector<8xf32>
    %425 = vector.multi_reduction <add>, %420, %cst_200 [1] : vector<8x32xf32> to vector<8xf32>
    %426 = vector.shape_cast %425 : vector<8xf32> to vector<8x1xf32>
    %cst_201 = arith.constant 3.200000e+01 : f32
    %427 = vector.broadcast %cst_201 : f32 to vector<8x1xf32>
    %428 = arith.divf %426, %427 : vector<8x1xf32>
    %429 = vector.broadcast %428 : vector<8x1xf32> to vector<8x32xf32>
    %430 = arith.subf %420, %429 : vector<8x32xf32>
    %431 = arith.mulf %430, %430 : vector<8x32xf32>
    %cst_202 = arith.constant dense<0.000000e+00> : vector<8xf32>
    %432 = vector.multi_reduction <add>, %431, %cst_202 [1] : vector<8x32xf32> to vector<8xf32>
    %433 = vector.shape_cast %432 : vector<8xf32> to vector<8x1xf32>
    %cst_203 = arith.constant 3.200000e+01 : f32
    %434 = vector.broadcast %cst_203 : f32 to vector<8x1xf32>
    %435 = arith.divf %433, %434 : vector<8x1xf32>
    %436 = vector.broadcast %428 : vector<8x1xf32> to vector<8x32xf32>
    %437 = arith.subf %420, %436 : vector<8x32xf32>
    %cst_204 = arith.constant 9.99999974E-6 : f32
    %438 = vector.broadcast %cst_204 : f32 to vector<8x1xf32>
    %439 = arith.addf %435, %438 : vector<8x1xf32>
    %440 = math.rsqrt %439 : vector<8x1xf32>
    %441 = vector.broadcast %440 : vector<8x1xf32> to vector<8x32xf32>
    %442 = arith.mulf %437, %441 : vector<8x32xf32>
    %443 = vector.broadcast %422 : vector<1x32xf32> to vector<8x32xf32>
    %444 = arith.mulf %442, %443 : vector<8x32xf32>
    %445 = vector.broadcast %424 : vector<1x32xf32> to vector<8x32xf32>
    %446 = arith.addf %444, %445 : vector<8x32xf32>
    %c1_205 = arith.constant 1 : index
    %c0_206 = arith.constant 0 : index
    %c0_207 = arith.constant 0 : index
    %447 = vector.load %arg34[%c1_205, %c0_206, %c0_207] : memref<2x32x64xf32, #tpu.memory_space<vmem>>, vector<1x32x64xf32>
    %448 = vector.shape_cast %447 : vector<1x32x64xf32> to vector<32x64xf32>
    %c1_208 = arith.constant 1 : index
    %c0_209 = arith.constant 0 : index
    %c0_210 = arith.constant 0 : index
    %449 = vector.load %arg33[%c1_208, %c0_209, %c0_210] : memref<2x1x64xf32, #tpu.memory_space<vmem>>, vector<1x1x64xf32>
    %450 = vector.shape_cast %449 : vector<1x1x64xf32> to vector<1x64xf32>
    %cst_211 = arith.constant dense<0.000000e+00> : vector<8x64xf32>
    %451 = tpu.matmul %446, %448, %cst_211 {dimension_numbers = #tpu.dot_dimension_numbers<[1], [0], [0], [1], [0, 0, 1, 1], [], []>} : vector<8x32xf32>, vector<32x64xf32>, vector<8x64xf32> -> vector<8x64xf32>
    %452 = vector.broadcast %450 : vector<1x64xf32> to vector<8x64xf32>
    %453 = arith.addf %451, %452 : vector<8x64xf32>
    %454 = vector.extract_strided_slice %453 {offsets = [0, 0], sizes = [8, 32], strides = [1, 1]} : vector<8x64xf32> to vector<8x32xf32>
    %455 = vector.extract_strided_slice %453 {offsets = [0, 32], sizes = [8, 32], strides = [1, 1]} : vector<8x64xf32> to vector<8x32xf32>
    %456 = arith.negf %455 : vector<8x32xf32>
    %457 = math.exp %456 : vector<8x32xf32>
    %cst_212 = arith.constant 1.000000e+00 : f32
    %458 = vector.broadcast %cst_212 : f32 to vector<8x32xf32>
    %459 = arith.addf %458, %457 : vector<8x32xf32>
    %460 = arith.divf %458, %459 : vector<8x32xf32>
    %461 = arith.mulf %454, %460 : vector<8x32xf32>
    %c8_213 = arith.constant 8 : index
    %c0_214 = arith.constant 0 : index
    %462 = vector.load %arg41[%c8_213, %c0_214] : memref<24x32xf32, #tpu.memory_space<vmem>>, vector<8x32xf32>
    tpu.vector_store %arg41[%c8_213, %c0_214], %461 {strides = array<i32>} : memref<24x32xf32, #tpu.memory_space<vmem>>, vector<8x32xf32>,
    %c1_215 = arith.constant 1 : index
    %c0_216 = arith.constant 0 : index
    %c0_217 = arith.constant 0 : index
    %463 = vector.load %arg16[%c1_215, %c0_216, %c0_217] : memref<2x7x32xf32, #tpu.memory_space<vmem>>, vector<1x7x32xf32>
    %464 = vector.shape_cast %463 : vector<1x7x32xf32> to vector<7x32xf32>
    %cst_218 = arith.constant 0.000000e+00 : f32
    %465 = vector.broadcast %cst_218 : f32 to vector<8x32xf32>
    %c1_219 = arith.constant 1 : index
    %c0_220 = arith.constant 0 : index
    %c0_221 = arith.constant 0 : index
    %466 = vector.load %arg15[%c1_219, %c0_220, %c0_221] : memref<2x1x32xf32, #tpu.memory_space<vmem>>, vector<1x1x32xf32>
    %467 = vector.shape_cast %466 : vector<1x1x32xf32> to vector<1x32xf32>
    %468 = vector.broadcast %467 : vector<1x32xf32> to vector<8x32xf32>
    %469 = arith.addf %465, %468 : vector<8x32xf32>
    %c5_222 = arith.constant 5 : index
    %c0_223 = arith.constant 0 : index
    %470 = vector.load %arg41[%c5_222, %c0_223] : memref<24x32xf32, #tpu.memory_space<vmem>>, vector<8x32xf32>
    %471 = vector.extract_strided_slice %464 {offsets = [0, 0], sizes = [1, 32], strides = [1, 1]} : vector<7x32xf32> to vector<1x32xf32>
    %472 = vector.broadcast %471 : vector<1x32xf32> to vector<8x32xf32>
    %473 = arith.mulf %470, %472 : vector<8x32xf32>
    %474 = arith.addf %469, %473 : vector<8x32xf32>
    %c6_224 = arith.constant 6 : index
    %c0_225 = arith.constant 0 : index
    %475 = vector.load %arg41[%c6_224, %c0_225] : memref<24x32xf32, #tpu.memory_space<vmem>>, vector<8x32xf32>
    %476 = vector.extract_strided_slice %464 {offsets = [1, 0], sizes = [1, 32], strides = [1, 1]} : vector<7x32xf32> to vector<1x32xf32>
    %477 = vector.broadcast %476 : vector<1x32xf32> to vector<8x32xf32>
    %478 = arith.mulf %475, %477 : vector<8x32xf32>
    %479 = arith.addf %474, %478 : vector<8x32xf32>
    %c7_226 = arith.constant 7 : index
    %c0_227 = arith.constant 0 : index
    %480 = vector.load %arg41[%c7_226, %c0_227] : memref<24x32xf32, #tpu.memory_space<vmem>>, vector<8x32xf32>
    %481 = vector.extract_strided_slice %464 {offsets = [2, 0], sizes = [1, 32], strides = [1, 1]} : vector<7x32xf32> to vector<1x32xf32>
    %482 = vector.broadcast %481 : vector<1x32xf32> to vector<8x32xf32>
    %483 = arith.mulf %480, %482 : vector<8x32xf32>
    %484 = arith.addf %479, %483 : vector<8x32xf32>
    %c8_228 = arith.constant 8 : index
    %c0_229 = arith.constant 0 : index
    %485 = vector.load %arg41[%c8_228, %c0_229] : memref<24x32xf32, #tpu.memory_space<vmem>>, vector<8x32xf32>
    %486 = vector.extract_strided_slice %464 {offsets = [3, 0], sizes = [1, 32], strides = [1, 1]} : vector<7x32xf32> to vector<1x32xf32>
    %487 = vector.broadcast %486 : vector<1x32xf32> to vector<8x32xf32>
    %488 = arith.mulf %485, %487 : vector<8x32xf32>
    %489 = arith.addf %484, %488 : vector<8x32xf32>
    %c9_230 = arith.constant 9 : index
    %c0_231 = arith.constant 0 : index
    %490 = vector.load %arg41[%c9_230, %c0_231] : memref<24x32xf32, #tpu.memory_space<vmem>>, vector<8x32xf32>
    %491 = vector.extract_strided_slice %464 {offsets = [4, 0], sizes = [1, 32], strides = [1, 1]} : vector<7x32xf32> to vector<1x32xf32>
    %492 = vector.broadcast %491 : vector<1x32xf32> to vector<8x32xf32>
    %493 = arith.mulf %490, %492 : vector<8x32xf32>
    %494 = arith.addf %489, %493 : vector<8x32xf32>
    %c10_232 = arith.constant 10 : index
    %c0_233 = arith.constant 0 : index
    %495 = vector.load %arg41[%c10_232, %c0_233] : memref<24x32xf32, #tpu.memory_space<vmem>>, vector<8x32xf32>
    %496 = vector.extract_strided_slice %464 {offsets = [5, 0], sizes = [1, 32], strides = [1, 1]} : vector<7x32xf32> to vector<1x32xf32>
    %497 = vector.broadcast %496 : vector<1x32xf32> to vector<8x32xf32>
    %498 = arith.mulf %495, %497 : vector<8x32xf32>
    %499 = arith.addf %494, %498 : vector<8x32xf32>
    %c11_234 = arith.constant 11 : index
    %c0_235 = arith.constant 0 : index
    %500 = vector.load %arg41[%c11_234, %c0_235] : memref<24x32xf32, #tpu.memory_space<vmem>>, vector<8x32xf32>
    %501 = vector.extract_strided_slice %464 {offsets = [6, 0], sizes = [1, 32], strides = [1, 1]} : vector<7x32xf32> to vector<1x32xf32>
    %502 = vector.broadcast %501 : vector<1x32xf32> to vector<8x32xf32>
    %503 = arith.mulf %500, %502 : vector<8x32xf32>
    %504 = arith.addf %499, %503 : vector<8x32xf32>
    %505 = vector.shape_cast %504 : vector<8x32xf32> to vector<1x8x32xf32>
    %cst_236 = arith.constant dense<0.000000e+00> : vector<1xf32>
    %506 = vector.multi_reduction <add>, %505, %cst_236 [1, 2] : vector<1x8x32xf32> to vector<1xf32>
    %507 = vector.shape_cast %506 : vector<1xf32> to vector<1x1x1xf32>
    %508 = vector.extract %507[0, 0, 0] : f32 from vector<1x1x1xf32>
    %509 = vector.broadcast %508 : f32 to vector<1x1xf32>
    %cst_237 = arith.constant 2.560000e+02 : f32
    %510 = vector.broadcast %cst_237 : f32 to vector<1x1xf32>
    %511 = arith.divf %509, %510 : vector<1x1xf32>
    %512 = vector.broadcast %511 : vector<1x1xf32> to vector<8x32xf32>
    %513 = arith.subf %504, %512 : vector<8x32xf32>
    %514 = arith.mulf %513, %513 : vector<8x32xf32>
    %515 = vector.shape_cast %514 : vector<8x32xf32> to vector<1x8x32xf32>
    %cst_238 = arith.constant dense<0.000000e+00> : vector<1xf32>
    %516 = vector.multi_reduction <add>, %515, %cst_238 [1, 2] : vector<1x8x32xf32> to vector<1xf32>
    %517 = vector.shape_cast %516 : vector<1xf32> to vector<1x1x1xf32>
    %518 = vector.extract %517[0, 0, 0] : f32 from vector<1x1x1xf32>
    %519 = vector.broadcast %518 : f32 to vector<1x1xf32>
    %cst_239 = arith.constant 2.560000e+02 : f32
    %520 = vector.broadcast %cst_239 : f32 to vector<1x1xf32>
    %521 = arith.divf %519, %520 : vector<1x1xf32>
    %522 = vector.broadcast %511 : vector<1x1xf32> to vector<8x32xf32>
    %523 = arith.subf %504, %522 : vector<8x32xf32>
    %cst_240 = arith.constant 9.99999974E-6 : f32
    %524 = vector.broadcast %cst_240 : f32 to vector<1x1xf32>
    %525 = arith.addf %521, %524 : vector<1x1xf32>
    %526 = math.rsqrt %525 : vector<1x1xf32>
    %527 = vector.broadcast %526 : vector<1x1xf32> to vector<8x32xf32>
    %528 = arith.mulf %523, %527 : vector<8x32xf32>
    %c1_241 = arith.constant 1 : index
    %c0_242 = arith.constant 0 : index
    %c0_243 = arith.constant 0 : index
    %529 = vector.load %arg30[%c1_241, %c0_242, %c0_243] : memref<2x1x32xf32, #tpu.memory_space<vmem>>, vector<1x1x32xf32>
    %530 = vector.shape_cast %529 : vector<1x1x32xf32> to vector<1x32xf32>
    %531 = vector.broadcast %530 : vector<1x32xf32> to vector<8x32xf32>
    %532 = arith.mulf %528, %531 : vector<8x32xf32>
    %c1_244 = arith.constant 1 : index
    %c0_245 = arith.constant 0 : index
    %c0_246 = arith.constant 0 : index
    %533 = vector.load %arg29[%c1_244, %c0_245, %c0_246] : memref<2x1x32xf32, #tpu.memory_space<vmem>>, vector<1x1x32xf32>
    %534 = vector.shape_cast %533 : vector<1x1x32xf32> to vector<1x32xf32>
    %535 = vector.broadcast %534 : vector<1x32xf32> to vector<8x32xf32>
    %536 = arith.addf %532, %535 : vector<8x32xf32>
    %537 = arith.negf %536 : vector<8x32xf32>
    %538 = math.exp %537 : vector<8x32xf32>
    %cst_247 = arith.constant 1.000000e+00 : f32
    %539 = vector.broadcast %cst_247 : f32 to vector<8x32xf32>
    %540 = arith.addf %539, %538 : vector<8x32xf32>
    %541 = arith.divf %539, %540 : vector<8x32xf32>
    %542 = arith.mulf %536, %541 : vector<8x32xf32>
    %c1_248 = arith.constant 1 : index
    %c0_249 = arith.constant 0 : index
    %c0_250 = arith.constant 0 : index
    %543 = vector.load %arg36[%c1_248, %c0_249, %c0_250] : memref<2x32x32xf32, #tpu.memory_space<vmem>>, vector<1x32x32xf32>
    %544 = vector.shape_cast %543 : vector<1x32x32xf32> to vector<32x32xf32>
    %c1_251 = arith.constant 1 : index
    %c0_252 = arith.constant 0 : index
    %c0_253 = arith.constant 0 : index
    %545 = vector.load %arg35[%c1_251, %c0_252, %c0_253] : memref<2x1x32xf32, #tpu.memory_space<vmem>>, vector<1x1x32xf32>
    %546 = vector.shape_cast %545 : vector<1x1x32xf32> to vector<1x32xf32>
    %cst_254 = arith.constant dense<0.000000e+00> : vector<8x32xf32>
    %547 = tpu.matmul %542, %544, %cst_254 {dimension_numbers = #tpu.dot_dimension_numbers<[1], [0], [0], [1], [0, 0, 1, 1], [], []>} : vector<8x32xf32>, vector<32x32xf32>, vector<8x32xf32> -> vector<8x32xf32>
    %548 = vector.broadcast %546 : vector<1x32xf32> to vector<8x32xf32>
    %549 = arith.addf %547, %548 : vector<8x32xf32>
    %550 = arith.addf %420, %549 : vector<8x32xf32>
    %c1_255 = arith.constant 1 : index
    %c0_256 = arith.constant 0 : index
    %c0_257 = arith.constant 0 : index
    %551 = vector.load %arg10[%c1_255, %c0_256, %c0_257] : memref<2x1x32xf32, #tpu.memory_space<vmem>>, vector<1x1x32xf32>
    %552 = vector.shape_cast %551 : vector<1x1x32xf32> to vector<1x32xf32>
    %c1_258 = arith.constant 1 : index
    %c0_259 = arith.constant 0 : index
    %c0_260 = arith.constant 0 : index
    %553 = vector.load %arg9[%c1_258, %c0_259, %c0_260] : memref<2x1x32xf32, #tpu.memory_space<vmem>>, vector<1x1x32xf32>
    %554 = vector.shape_cast %553 : vector<1x1x32xf32> to vector<1x32xf32>
    %cst_261 = arith.constant dense<0.000000e+00> : vector<8xf32>
    %555 = vector.multi_reduction <add>, %550, %cst_261 [1] : vector<8x32xf32> to vector<8xf32>
    %556 = vector.shape_cast %555 : vector<8xf32> to vector<8x1xf32>
    %cst_262 = arith.constant 3.200000e+01 : f32
    %557 = vector.broadcast %cst_262 : f32 to vector<8x1xf32>
    %558 = arith.divf %556, %557 : vector<8x1xf32>
    %559 = vector.broadcast %558 : vector<8x1xf32> to vector<8x32xf32>
    %560 = arith.subf %550, %559 : vector<8x32xf32>
    %561 = arith.mulf %560, %560 : vector<8x32xf32>
    %cst_263 = arith.constant dense<0.000000e+00> : vector<8xf32>
    %562 = vector.multi_reduction <add>, %561, %cst_263 [1] : vector<8x32xf32> to vector<8xf32>
    %563 = vector.shape_cast %562 : vector<8xf32> to vector<8x1xf32>
    %cst_264 = arith.constant 3.200000e+01 : f32
    %564 = vector.broadcast %cst_264 : f32 to vector<8x1xf32>
    %565 = arith.divf %563, %564 : vector<8x1xf32>
    %566 = vector.broadcast %558 : vector<8x1xf32> to vector<8x32xf32>
    %567 = arith.subf %550, %566 : vector<8x32xf32>
    %cst_265 = arith.constant 9.99999974E-6 : f32
    %568 = vector.broadcast %cst_265 : f32 to vector<8x1xf32>
    %569 = arith.addf %565, %568 : vector<8x1xf32>
    %570 = math.rsqrt %569 : vector<8x1xf32>
    %571 = vector.broadcast %570 : vector<8x1xf32> to vector<8x32xf32>
    %572 = arith.mulf %567, %571 : vector<8x32xf32>
    %573 = vector.broadcast %552 : vector<1x32xf32> to vector<8x32xf32>
    %574 = arith.mulf %572, %573 : vector<8x32xf32>
    %575 = vector.broadcast %554 : vector<1x32xf32> to vector<8x32xf32>
    %576 = arith.addf %574, %575 : vector<8x32xf32>
    %c1_266 = arith.constant 1 : index
    %c0_267 = arith.constant 0 : index
    %c0_268 = arith.constant 0 : index
    %577 = vector.load %arg8[%c1_266, %c0_267, %c0_268] : memref<2x32x96xf32, #tpu.memory_space<vmem>>, vector<1x32x96xf32>
    %578 = vector.shape_cast %577 : vector<1x32x96xf32> to vector<32x96xf32>
    %c1_269 = arith.constant 1 : index
    %c0_270 = arith.constant 0 : index
    %c0_271 = arith.constant 0 : index
    %579 = vector.load %arg7[%c1_269, %c0_270, %c0_271] : memref<2x1x96xf32, #tpu.memory_space<vmem>>, vector<1x1x96xf32>
    %580 = vector.shape_cast %579 : vector<1x1x96xf32> to vector<1x96xf32>
    %cst_272 = arith.constant dense<0.000000e+00> : vector<8x96xf32>
    %581 = tpu.matmul %576, %578, %cst_272 {dimension_numbers = #tpu.dot_dimension_numbers<[1], [0], [0], [1], [0, 0, 1, 1], [], []>} : vector<8x32xf32>, vector<32x96xf32>, vector<8x96xf32> -> vector<8x96xf32>
    %582 = vector.broadcast %580 : vector<1x96xf32> to vector<8x96xf32>
    %583 = arith.addf %581, %582 : vector<8x96xf32>
    %584 = vector.extract_strided_slice %583 {offsets = [0, 0], sizes = [8, 32], strides = [1, 1]} : vector<8x96xf32> to vector<8x32xf32>
    %585 = vector.extract_strided_slice %583 {offsets = [0, 32], sizes = [8, 32], strides = [1, 1]} : vector<8x96xf32> to vector<8x32xf32>
    %586 = vector.extract_strided_slice %583 {offsets = [0, 64], sizes = [8, 32], strides = [1, 1]} : vector<8x96xf32> to vector<8x32xf32>
    %587 = tpu.concatenate %585, %585, %585, %585 in 0 : vector<8x32xf32>, vector<8x32xf32>, vector<8x32xf32>, vector<8x32xf32> -> vector<32x32xf32>
    %588 = arith.mulf %587, %16 : vector<32x32xf32>
    %589 = tpu.concatenate %586, %586, %586, %586 in 0 : vector<8x32xf32>, vector<8x32xf32>, vector<8x32xf32>, vector<8x32xf32> -> vector<32x32xf32>
    %590 = arith.mulf %589, %16 : vector<32x32xf32>
    %cst_273 = arith.constant dense<0.000000e+00> : vector<8x32xf32>
    %591 = tpu.matmul %584, %588, %cst_273 {dimension_numbers = #tpu.dot_dimension_numbers<[1], [1], [0], [0], [0, 0, 1, 0], [], []>} : vector<8x32xf32>, vector<32x32xf32>, vector<8x32xf32> -> vector<8x32xf32>
    %cst_274 = arith.constant 0.353553385 : f32
    %592 = vector.broadcast %cst_274 : f32 to vector<8x32xf32>
    %593 = arith.mulf %591, %592 : vector<8x32xf32>
    %594 = vector.broadcast %15 : vector<1x32xf32> to vector<8x32xf32>
    %595 = arith.addf %593, %594 : vector<8x32xf32>
    %596 = vector.extract_strided_slice %595 {offsets = [0, 0], sizes = [8, 8], strides = [1, 1]} : vector<8x32xf32> to vector<8x8xf32>
    %cst_275 = arith.constant dense<0xFF800000> : vector<8xf32>
    %597 = vector.multi_reduction <maximumf>, %596, %cst_275 [1] : vector<8x8xf32> to vector<8xf32>
    %598 = vector.shape_cast %597 : vector<8xf32> to vector<8x1xf32>
    %599 = vector.broadcast %598 : vector<8x1xf32> to vector<8x8xf32>
    %600 = arith.subf %596, %599 : vector<8x8xf32>
    %601 = math.exp %600 : vector<8x8xf32>
    %cst_276 = arith.constant dense<0.000000e+00> : vector<8xf32>
    %602 = vector.multi_reduction <add>, %601, %cst_276 [1] : vector<8x8xf32> to vector<8xf32>
    %603 = vector.shape_cast %602 : vector<8xf32> to vector<8x1xf32>
    %604 = tpu.reciprocal %603 {approx = true} : vector<8x1xf32> -> vector<8x1xf32>
    %605 = vector.broadcast %604 : vector<8x1xf32> to vector<8x8xf32>
    %606 = arith.mulf %601, %605 : vector<8x8xf32>
    %607 = vector.extract_strided_slice %595 {offsets = [0, 8], sizes = [8, 8], strides = [1, 1]} : vector<8x32xf32> to vector<8x8xf32>
    %cst_277 = arith.constant dense<0xFF800000> : vector<8xf32>
    %608 = vector.multi_reduction <maximumf>, %607, %cst_277 [1] : vector<8x8xf32> to vector<8xf32>
    %609 = vector.shape_cast %608 : vector<8xf32> to vector<8x1xf32>
    %610 = vector.broadcast %609 : vector<8x1xf32> to vector<8x8xf32>
    %611 = arith.subf %607, %610 : vector<8x8xf32>
    %612 = math.exp %611 : vector<8x8xf32>
    %cst_278 = arith.constant dense<0.000000e+00> : vector<8xf32>
    %613 = vector.multi_reduction <add>, %612, %cst_278 [1] : vector<8x8xf32> to vector<8xf32>
    %614 = vector.shape_cast %613 : vector<8xf32> to vector<8x1xf32>
    %615 = tpu.reciprocal %614 {approx = true} : vector<8x1xf32> -> vector<8x1xf32>
    %616 = vector.broadcast %615 : vector<8x1xf32> to vector<8x8xf32>
    %617 = arith.mulf %612, %616 : vector<8x8xf32>
    %618 = vector.extract_strided_slice %595 {offsets = [0, 16], sizes = [8, 8], strides = [1, 1]} : vector<8x32xf32> to vector<8x8xf32>
    %cst_279 = arith.constant dense<0xFF800000> : vector<8xf32>
    %619 = vector.multi_reduction <maximumf>, %618, %cst_279 [1] : vector<8x8xf32> to vector<8xf32>
    %620 = vector.shape_cast %619 : vector<8xf32> to vector<8x1xf32>
    %621 = vector.broadcast %620 : vector<8x1xf32> to vector<8x8xf32>
    %622 = arith.subf %618, %621 : vector<8x8xf32>
    %623 = math.exp %622 : vector<8x8xf32>
    %cst_280 = arith.constant dense<0.000000e+00> : vector<8xf32>
    %624 = vector.multi_reduction <add>, %623, %cst_280 [1] : vector<8x8xf32> to vector<8xf32>
    %625 = vector.shape_cast %624 : vector<8xf32> to vector<8x1xf32>
    %626 = tpu.reciprocal %625 {approx = true} : vector<8x1xf32> -> vector<8x1xf32>
    %627 = vector.broadcast %626 : vector<8x1xf32> to vector<8x8xf32>
    %628 = arith.mulf %623, %627 : vector<8x8xf32>
    %629 = vector.extract_strided_slice %595 {offsets = [0, 24], sizes = [8, 8], strides = [1, 1]} : vector<8x32xf32> to vector<8x8xf32>
    %cst_281 = arith.constant dense<0xFF800000> : vector<8xf32>
    %630 = vector.multi_reduction <maximumf>, %629, %cst_281 [1] : vector<8x8xf32> to vector<8xf32>
    %631 = vector.shape_cast %630 : vector<8xf32> to vector<8x1xf32>
    %632 = vector.broadcast %631 : vector<8x1xf32> to vector<8x8xf32>
    %633 = arith.subf %629, %632 : vector<8x8xf32>
    %634 = math.exp %633 : vector<8x8xf32>
    %cst_282 = arith.constant dense<0.000000e+00> : vector<8xf32>
    %635 = vector.multi_reduction <add>, %634, %cst_282 [1] : vector<8x8xf32> to vector<8xf32>
    %636 = vector.shape_cast %635 : vector<8xf32> to vector<8x1xf32>
    %637 = tpu.reciprocal %636 {approx = true} : vector<8x1xf32> -> vector<8x1xf32>
    %638 = vector.broadcast %637 : vector<8x1xf32> to vector<8x8xf32>
    %639 = arith.mulf %634, %638 : vector<8x8xf32>
    %640 = tpu.concatenate %606, %617, %628, %639 in 1 : vector<8x8xf32>, vector<8x8xf32>, vector<8x8xf32>, vector<8x8xf32> -> vector<8x32xf32>
    %cst_283 = arith.constant dense<0.000000e+00> : vector<8x32xf32>
    %641 = tpu.matmul %640, %590, %cst_283 {dimension_numbers = #tpu.dot_dimension_numbers<[1], [0], [0], [1], [0, 0, 1, 1], [], []>} : vector<8x32xf32>, vector<32x32xf32>, vector<8x32xf32> -> vector<8x32xf32>
    %c1_284 = arith.constant 1 : index
    %c0_285 = arith.constant 0 : index
    %c0_286 = arith.constant 0 : index
    %642 = vector.load %arg12[%c1_284, %c0_285, %c0_286] : memref<2x32x32xf32, #tpu.memory_space<vmem>>, vector<1x32x32xf32>
    %643 = vector.shape_cast %642 : vector<1x32x32xf32> to vector<32x32xf32>
    %c1_287 = arith.constant 1 : index
    %c0_288 = arith.constant 0 : index
    %c0_289 = arith.constant 0 : index
    %644 = vector.load %arg11[%c1_287, %c0_288, %c0_289] : memref<2x1x32xf32, #tpu.memory_space<vmem>>, vector<1x1x32xf32>
    %645 = vector.shape_cast %644 : vector<1x1x32xf32> to vector<1x32xf32>
    %cst_290 = arith.constant dense<0.000000e+00> : vector<8x32xf32>
    %646 = tpu.matmul %641, %643, %cst_290 {dimension_numbers = #tpu.dot_dimension_numbers<[1], [0], [0], [1], [0, 0, 1, 1], [], []>} : vector<8x32xf32>, vector<32x32xf32>, vector<8x32xf32> -> vector<8x32xf32>
    %647 = vector.broadcast %645 : vector<1x32xf32> to vector<8x32xf32>
    %648 = arith.addf %646, %647 : vector<8x32xf32>
    %649 = arith.addf %550, %648 : vector<8x32xf32>
    %c1_291 = arith.constant 1 : index
    %c0_292 = arith.constant 0 : index
    %c0_293 = arith.constant 0 : index
    %650 = vector.load %arg26[%c1_291, %c0_292, %c0_293] : memref<2x1x32xf32, #tpu.memory_space<vmem>>, vector<1x1x32xf32>
    %651 = vector.shape_cast %650 : vector<1x1x32xf32> to vector<1x32xf32>
    %c1_294 = arith.constant 1 : index
    %c0_295 = arith.constant 0 : index
    %c0_296 = arith.constant 0 : index
    %652 = vector.load %arg25[%c1_294, %c0_295, %c0_296] : memref<2x1x32xf32, #tpu.memory_space<vmem>>, vector<1x1x32xf32>
    %653 = vector.shape_cast %652 : vector<1x1x32xf32> to vector<1x32xf32>
    %cst_297 = arith.constant dense<0.000000e+00> : vector<8xf32>
    %654 = vector.multi_reduction <add>, %649, %cst_297 [1] : vector<8x32xf32> to vector<8xf32>
    %655 = vector.shape_cast %654 : vector<8xf32> to vector<8x1xf32>
    %cst_298 = arith.constant 3.200000e+01 : f32
    %656 = vector.broadcast %cst_298 : f32 to vector<8x1xf32>
    %657 = arith.divf %655, %656 : vector<8x1xf32>
    %658 = vector.broadcast %657 : vector<8x1xf32> to vector<8x32xf32>
    %659 = arith.subf %649, %658 : vector<8x32xf32>
    %660 = arith.mulf %659, %659 : vector<8x32xf32>
    %cst_299 = arith.constant dense<0.000000e+00> : vector<8xf32>
    %661 = vector.multi_reduction <add>, %660, %cst_299 [1] : vector<8x32xf32> to vector<8xf32>
    %662 = vector.shape_cast %661 : vector<8xf32> to vector<8x1xf32>
    %cst_300 = arith.constant 3.200000e+01 : f32
    %663 = vector.broadcast %cst_300 : f32 to vector<8x1xf32>
    %664 = arith.divf %662, %663 : vector<8x1xf32>
    %665 = vector.broadcast %657 : vector<8x1xf32> to vector<8x32xf32>
    %666 = arith.subf %649, %665 : vector<8x32xf32>
    %cst_301 = arith.constant 9.99999974E-6 : f32
    %667 = vector.broadcast %cst_301 : f32 to vector<8x1xf32>
    %668 = arith.addf %664, %667 : vector<8x1xf32>
    %669 = math.rsqrt %668 : vector<8x1xf32>
    %670 = vector.broadcast %669 : vector<8x1xf32> to vector<8x32xf32>
    %671 = arith.mulf %666, %670 : vector<8x32xf32>
    %672 = vector.broadcast %651 : vector<1x32xf32> to vector<8x32xf32>
    %673 = arith.mulf %671, %672 : vector<8x32xf32>
    %674 = vector.broadcast %653 : vector<1x32xf32> to vector<8x32xf32>
    %675 = arith.addf %673, %674 : vector<8x32xf32>
    %c1_302 = arith.constant 1 : index
    %c0_303 = arith.constant 0 : index
    %c0_304 = arith.constant 0 : index
    %676 = vector.load %arg27[%c1_302, %c0_303, %c0_304] : memref<2x32x64xf32, #tpu.memory_space<vmem>>, vector<1x32x64xf32>
    %677 = vector.shape_cast %676 : vector<1x32x64xf32> to vector<32x64xf32>
    %c1_305 = arith.constant 1 : index
    %c0_306 = arith.constant 0 : index
    %c0_307 = arith.constant 0 : index
    %678 = vector.load %arg23[%c1_305, %c0_306, %c0_307] : memref<2x1x64xf32, #tpu.memory_space<vmem>>, vector<1x1x64xf32>
    %679 = vector.shape_cast %678 : vector<1x1x64xf32> to vector<1x64xf32>
    %cst_308 = arith.constant dense<0.000000e+00> : vector<8x64xf32>
    %680 = tpu.matmul %675, %677, %cst_308 {dimension_numbers = #tpu.dot_dimension_numbers<[1], [0], [0], [1], [0, 0, 1, 1], [], []>} : vector<8x32xf32>, vector<32x64xf32>, vector<8x64xf32> -> vector<8x64xf32>
    %681 = vector.broadcast %679 : vector<1x64xf32> to vector<8x64xf32>
    %682 = arith.addf %680, %681 : vector<8x64xf32>
    %683 = arith.negf %682 : vector<8x64xf32>
    %684 = math.exp %683 : vector<8x64xf32>
    %cst_309 = arith.constant 1.000000e+00 : f32
    %685 = vector.broadcast %cst_309 : f32 to vector<8x64xf32>
    %686 = arith.addf %685, %684 : vector<8x64xf32>
    %687 = arith.divf %685, %686 : vector<8x64xf32>
    %688 = arith.mulf %682, %687 : vector<8x64xf32>
    %c1_310 = arith.constant 1 : index
    %c0_311 = arith.constant 0 : index
    %c0_312 = arith.constant 0 : index
    %689 = vector.load %arg28[%c1_310, %c0_311, %c0_312] : memref<2x64x32xf32, #tpu.memory_space<vmem>>, vector<1x64x32xf32>
    %690 = vector.shape_cast %689 : vector<1x64x32xf32> to vector<64x32xf32>
    %c1_313 = arith.constant 1 : index
    %c0_314 = arith.constant 0 : index
    %c0_315 = arith.constant 0 : index
    %691 = vector.load %arg24[%c1_313, %c0_314, %c0_315] : memref<2x1x32xf32, #tpu.memory_space<vmem>>, vector<1x1x32xf32>
    %692 = vector.shape_cast %691 : vector<1x1x32xf32> to vector<1x32xf32>
    %cst_316 = arith.constant dense<0.000000e+00> : vector<8x32xf32>
    %693 = tpu.matmul %688, %690, %cst_316 {dimension_numbers = #tpu.dot_dimension_numbers<[1], [0], [0], [1], [0, 0, 1, 1], [], []>} : vector<8x64xf32>, vector<64x32xf32>, vector<8x32xf32> -> vector<8x32xf32>
    %694 = vector.broadcast %692 : vector<1x32xf32> to vector<8x32xf32>
    %695 = arith.addf %693, %694 : vector<8x32xf32>
    %cst_317 = arith.constant 5.000000e-01 : f32
    %696 = vector.broadcast %cst_317 : f32 to vector<8x32xf32>
    %697 = arith.mulf %696, %695 : vector<8x32xf32>
    %698 = arith.addf %649, %697 : vector<8x32xf32>
    %c1_318 = arith.constant 1 : index
    %c0_319 = arith.constant 0 : index
    %c0_320 = arith.constant 0 : index
    %699 = vector.load %arg32[%c1_318, %c0_319, %c0_320] : memref<2x1x32xf32, #tpu.memory_space<vmem>>, vector<1x1x32xf32>
    %700 = vector.shape_cast %699 : vector<1x1x32xf32> to vector<1x32xf32>
    %c1_321 = arith.constant 1 : index
    %c0_322 = arith.constant 0 : index
    %c0_323 = arith.constant 0 : index
    %701 = vector.load %arg31[%c1_321, %c0_322, %c0_323] : memref<2x1x32xf32, #tpu.memory_space<vmem>>, vector<1x1x32xf32>
    %702 = vector.shape_cast %701 : vector<1x1x32xf32> to vector<1x32xf32>
    %cst_324 = arith.constant dense<0.000000e+00> : vector<8xf32>
    %703 = vector.multi_reduction <add>, %698, %cst_324 [1] : vector<8x32xf32> to vector<8xf32>
    %704 = vector.shape_cast %703 : vector<8xf32> to vector<8x1xf32>
    %cst_325 = arith.constant 3.200000e+01 : f32
    %705 = vector.broadcast %cst_325 : f32 to vector<8x1xf32>
    %706 = arith.divf %704, %705 : vector<8x1xf32>
    %707 = vector.broadcast %706 : vector<8x1xf32> to vector<8x32xf32>
    %708 = arith.subf %698, %707 : vector<8x32xf32>
    %709 = arith.mulf %708, %708 : vector<8x32xf32>
    %cst_326 = arith.constant dense<0.000000e+00> : vector<8xf32>
    %710 = vector.multi_reduction <add>, %709, %cst_326 [1] : vector<8x32xf32> to vector<8xf32>
    %711 = vector.shape_cast %710 : vector<8xf32> to vector<8x1xf32>
    %cst_327 = arith.constant 3.200000e+01 : f32
    %712 = vector.broadcast %cst_327 : f32 to vector<8x1xf32>
    %713 = arith.divf %711, %712 : vector<8x1xf32>
    %714 = vector.broadcast %706 : vector<8x1xf32> to vector<8x32xf32>
    %715 = arith.subf %698, %714 : vector<8x32xf32>
    %cst_328 = arith.constant 9.99999974E-6 : f32
    %716 = vector.broadcast %cst_328 : f32 to vector<8x1xf32>
    %717 = arith.addf %713, %716 : vector<8x1xf32>
    %718 = math.rsqrt %717 : vector<8x1xf32>
    %719 = vector.broadcast %718 : vector<8x1xf32> to vector<8x32xf32>
    %720 = arith.mulf %715, %719 : vector<8x32xf32>
    %721 = vector.broadcast %700 : vector<1x32xf32> to vector<8x32xf32>
    %722 = arith.mulf %720, %721 : vector<8x32xf32>
    %723 = vector.broadcast %702 : vector<1x32xf32> to vector<8x32xf32>
    %724 = arith.addf %722, %723 : vector<8x32xf32>
    %c0_329 = arith.constant 0 : index
    %c0_330 = arith.constant 0 : index
    %725 = vector.load %arg38[%c0_329, %c0_330] : memref<32x24xf32, #tpu.memory_space<vmem>>, vector<32x24xf32>
    %c0_331 = arith.constant 0 : index
    %c0_332 = arith.constant 0 : index
    %726 = vector.load %arg37[%c0_331, %c0_332] : memref<1x24xf32, #tpu.memory_space<vmem>>, vector<1x24xf32>
    %cst_333 = arith.constant dense<0.000000e+00> : vector<8x24xf32>
    %727 = tpu.matmul %724, %725, %cst_333 {dimension_numbers = #tpu.dot_dimension_numbers<[1], [0], [0], [1], [0, 0, 1, 1], [], []>} : vector<8x32xf32>, vector<32x24xf32>, vector<8x24xf32> -> vector<8x24xf32>
    %728 = vector.broadcast %726 : vector<1x24xf32> to vector<8x24xf32>
    %729 = arith.addf %727, %728 : vector<8x24xf32>
    %c0_334 = arith.constant 0 : index
    %c0_335 = arith.constant 0 : index
    %730 = vector.load %arg4[%c0_334, %c0_335] : memref<1x24xf32, #tpu.memory_space<vmem>>, vector<1x24xf32>
    %c0_336 = arith.constant 0 : index
    %c0_337 = arith.constant 0 : index
    %731 = vector.load %arg3[%c0_336, %c0_337] : memref<1x24xf32, #tpu.memory_space<vmem>>, vector<1x24xf32>
    %cst_338 = arith.constant dense<0.000000e+00> : vector<8xf32>
    %732 = vector.multi_reduction <add>, %729, %cst_338 [1] : vector<8x24xf32> to vector<8xf32>
    %733 = vector.shape_cast %732 : vector<8xf32> to vector<8x1xf32>
    %cst_339 = arith.constant 2.400000e+01 : f32
    %734 = vector.broadcast %cst_339 : f32 to vector<8x1xf32>
    %735 = arith.divf %733, %734 : vector<8x1xf32>
    %736 = vector.broadcast %735 : vector<8x1xf32> to vector<8x24xf32>
    %737 = arith.subf %729, %736 : vector<8x24xf32>
    %738 = arith.mulf %737, %737 : vector<8x24xf32>
    %cst_340 = arith.constant dense<0.000000e+00> : vector<8xf32>
    %739 = vector.multi_reduction <add>, %738, %cst_340 [1] : vector<8x24xf32> to vector<8xf32>
    %740 = vector.shape_cast %739 : vector<8xf32> to vector<8x1xf32>
    %cst_341 = arith.constant 2.400000e+01 : f32
    %741 = vector.broadcast %cst_341 : f32 to vector<8x1xf32>
    %742 = arith.divf %740, %741 : vector<8x1xf32>
    %743 = vector.broadcast %735 : vector<8x1xf32> to vector<8x24xf32>
    %744 = arith.subf %729, %743 : vector<8x24xf32>
    %cst_342 = arith.constant 9.99999974E-6 : f32
    %745 = vector.broadcast %cst_342 : f32 to vector<8x1xf32>
    %746 = arith.addf %742, %745 : vector<8x1xf32>
    %747 = math.rsqrt %746 : vector<8x1xf32>
    %748 = vector.broadcast %747 : vector<8x1xf32> to vector<8x24xf32>
    %749 = arith.mulf %744, %748 : vector<8x24xf32>
    %750 = vector.broadcast %730 : vector<1x24xf32> to vector<8x24xf32>
    %751 = arith.mulf %749, %750 : vector<8x24xf32>
    %752 = vector.broadcast %731 : vector<1x24xf32> to vector<8x24xf32>
    %753 = arith.addf %751, %752 : vector<8x24xf32>
    %c0_343 = arith.constant 0 : index
    %c0_344 = arith.constant 0 : index
    %c0_345 = arith.constant 0 : index
    %754 = vector.load %arg40[%c0_343, %c0_344, %c0_345] : memref<1x8x24xf32, #tpu.memory_space<vmem>>, vector<1x8x24xf32>
    %755 = vector.shape_cast %754 : vector<1x8x24xf32> to vector<8x24xf32>
    %756 = vector.shape_cast %753 : vector<8x24xf32> to vector<1x8x24xf32>
    tpu.vector_store %arg40[%c0_343, %c0_344, %c0_345], %756 {strides = array<i32>} : memref<1x8x24xf32, #tpu.memory_space<vmem>>, vector<1x8x24xf32>,
    return
  }
  func.func @transform_0(%arg0: i32, %arg1: memref<2xi32, #tpu.memory_space<smem>>) -> (i32, i32, i32) {
    %c0_i32 = arith.constant 0 : i32
    %c0_i32_0 = arith.constant 0 : i32
    %c0_i32_1 = arith.constant 0 : i32
    return %arg0, %c0_i32, %c0_i32_0 : i32, i32, i32
  }
  func.func @transform_1(%arg0: i32, %arg1: memref<2xi32, #tpu.memory_space<smem>>) -> (i32, i32) {
    %c0_i32 = arith.constant 0 : i32
    %c0_i32_0 = arith.constant 0 : i32
    %c0_i32_1 = arith.constant 0 : i32
    return %c0_i32, %c0_i32_0 : i32, i32
  }
  func.func @transform_2(%arg0: i32, %arg1: memref<2xi32, #tpu.memory_space<smem>>) -> (i32, i32) {
    %c0_i32 = arith.constant 0 : i32
    %c0_i32_0 = arith.constant 0 : i32
    %c0_i32_1 = arith.constant 0 : i32
    return %c0_i32, %c0_i32_0 : i32, i32
  }
  func.func @transform_3(%arg0: i32, %arg1: memref<2xi32, #tpu.memory_space<smem>>) -> (i32, i32) {
    %c0_i32 = arith.constant 0 : i32
    %c0_i32_0 = arith.constant 0 : i32
    %c0_i32_1 = arith.constant 0 : i32
    return %c0_i32, %c0_i32_0 : i32, i32
  }
  func.func @transform_4(%arg0: i32, %arg1: memref<2xi32, #tpu.memory_space<smem>>) -> (i32, i32) {
    %c0_i32 = arith.constant 0 : i32
    %c0_i32_0 = arith.constant 0 : i32
    %c0_i32_1 = arith.constant 0 : i32
    return %c0_i32, %c0_i32_0 : i32, i32
  }
  func.func @transform_5(%arg0: i32, %arg1: memref<2xi32, #tpu.memory_space<smem>>) -> (i32, i32, i32) {
    %c0_i32 = arith.constant 0 : i32
    %c0_i32_0 = arith.constant 0 : i32
    %c0_i32_1 = arith.constant 0 : i32
    %c0_i32_2 = arith.constant 0 : i32
    return %c0_i32, %c0_i32_0, %c0_i32_1 : i32, i32, i32
  }
  func.func @transform_6(%arg0: i32, %arg1: memref<2xi32, #tpu.memory_space<smem>>) -> (i32, i32, i32) {
    %c0_i32 = arith.constant 0 : i32
    %c0_i32_0 = arith.constant 0 : i32
    %c0_i32_1 = arith.constant 0 : i32
    %c0_i32_2 = arith.constant 0 : i32
    return %c0_i32, %c0_i32_0, %c0_i32_1 : i32, i32, i32
  }
  func.func @transform_7(%arg0: i32, %arg1: memref<2xi32, #tpu.memory_space<smem>>) -> (i32, i32, i32) {
    %c0_i32 = arith.constant 0 : i32
    %c0_i32_0 = arith.constant 0 : i32
    %c0_i32_1 = arith.constant 0 : i32
    %c0_i32_2 = arith.constant 0 : i32
    return %c0_i32, %c0_i32_0, %c0_i32_1 : i32, i32, i32
  }
  func.func @transform_8(%arg0: i32, %arg1: memref<2xi32, #tpu.memory_space<smem>>) -> (i32, i32, i32) {
    %c0_i32 = arith.constant 0 : i32
    %c0_i32_0 = arith.constant 0 : i32
    %c0_i32_1 = arith.constant 0 : i32
    %c0_i32_2 = arith.constant 0 : i32
    return %c0_i32, %c0_i32_0, %c0_i32_1 : i32, i32, i32
  }
  func.func @transform_9(%arg0: i32, %arg1: memref<2xi32, #tpu.memory_space<smem>>) -> (i32, i32, i32) {
    %c0_i32 = arith.constant 0 : i32
    %c0_i32_0 = arith.constant 0 : i32
    %c0_i32_1 = arith.constant 0 : i32
    %c0_i32_2 = arith.constant 0 : i32
    return %c0_i32, %c0_i32_0, %c0_i32_1 : i32, i32, i32
  }
  func.func @transform_10(%arg0: i32, %arg1: memref<2xi32, #tpu.memory_space<smem>>) -> (i32, i32, i32) {
    %c0_i32 = arith.constant 0 : i32
    %c0_i32_0 = arith.constant 0 : i32
    %c0_i32_1 = arith.constant 0 : i32
    %c0_i32_2 = arith.constant 0 : i32
    return %c0_i32, %c0_i32_0, %c0_i32_1 : i32, i32, i32
  }
  func.func @transform_11(%arg0: i32, %arg1: memref<2xi32, #tpu.memory_space<smem>>) -> (i32, i32, i32) {
    %c0_i32 = arith.constant 0 : i32
    %c0_i32_0 = arith.constant 0 : i32
    %c0_i32_1 = arith.constant 0 : i32
    %c0_i32_2 = arith.constant 0 : i32
    return %c0_i32, %c0_i32_0, %c0_i32_1 : i32, i32, i32
  }
  func.func @transform_12(%arg0: i32, %arg1: memref<2xi32, #tpu.memory_space<smem>>) -> (i32, i32, i32) {
    %c0_i32 = arith.constant 0 : i32
    %c0_i32_0 = arith.constant 0 : i32
    %c0_i32_1 = arith.constant 0 : i32
    %c0_i32_2 = arith.constant 0 : i32
    return %c0_i32, %c0_i32_0, %c0_i32_1 : i32, i32, i32
  }
  func.func @transform_13(%arg0: i32, %arg1: memref<2xi32, #tpu.memory_space<smem>>) -> (i32, i32, i32) {
    %c0_i32 = arith.constant 0 : i32
    %c0_i32_0 = arith.constant 0 : i32
    %c0_i32_1 = arith.constant 0 : i32
    %c0_i32_2 = arith.constant 0 : i32
    return %c0_i32, %c0_i32_0, %c0_i32_1 : i32, i32, i32
  }
  func.func @transform_14(%arg0: i32, %arg1: memref<2xi32, #tpu.memory_space<smem>>) -> (i32, i32, i32) {
    %c0_i32 = arith.constant 0 : i32
    %c0_i32_0 = arith.constant 0 : i32
    %c0_i32_1 = arith.constant 0 : i32
    %c0_i32_2 = arith.constant 0 : i32
    return %c0_i32, %c0_i32_0, %c0_i32_1 : i32, i32, i32
  }
  func.func @transform_15(%arg0: i32, %arg1: memref<2xi32, #tpu.memory_space<smem>>) -> (i32, i32, i32) {
    %c0_i32 = arith.constant 0 : i32
    %c0_i32_0 = arith.constant 0 : i32
    %c0_i32_1 = arith.constant 0 : i32
    %c0_i32_2 = arith.constant 0 : i32
    return %c0_i32, %c0_i32_0, %c0_i32_1 : i32, i32, i32
  }
  func.func @transform_16(%arg0: i32, %arg1: memref<2xi32, #tpu.memory_space<smem>>) -> (i32, i32, i32) {
    %c0_i32 = arith.constant 0 : i32
    %c0_i32_0 = arith.constant 0 : i32
    %c0_i32_1 = arith.constant 0 : i32
    %c0_i32_2 = arith.constant 0 : i32
    return %c0_i32, %c0_i32_0, %c0_i32_1 : i32, i32, i32
  }
  func.func @transform_17(%arg0: i32, %arg1: memref<2xi32, #tpu.memory_space<smem>>) -> (i32, i32, i32) {
    %c0_i32 = arith.constant 0 : i32
    %c0_i32_0 = arith.constant 0 : i32
    %c0_i32_1 = arith.constant 0 : i32
    %c0_i32_2 = arith.constant 0 : i32
    return %c0_i32, %c0_i32_0, %c0_i32_1 : i32, i32, i32
  }
  func.func @transform_18(%arg0: i32, %arg1: memref<2xi32, #tpu.memory_space<smem>>) -> (i32, i32, i32) {
    %c0_i32 = arith.constant 0 : i32
    %c0_i32_0 = arith.constant 0 : i32
    %c0_i32_1 = arith.constant 0 : i32
    %c0_i32_2 = arith.constant 0 : i32
    return %c0_i32, %c0_i32_0, %c0_i32_1 : i32, i32, i32
  }
  func.func @transform_19(%arg0: i32, %arg1: memref<2xi32, #tpu.memory_space<smem>>) -> (i32, i32, i32) {
    %c0_i32 = arith.constant 0 : i32
    %c0_i32_0 = arith.constant 0 : i32
    %c0_i32_1 = arith.constant 0 : i32
    %c0_i32_2 = arith.constant 0 : i32
    return %c0_i32, %c0_i32_0, %c0_i32_1 : i32, i32, i32
  }
  func.func @transform_20(%arg0: i32, %arg1: memref<2xi32, #tpu.memory_space<smem>>) -> (i32, i32, i32) {
    %c0_i32 = arith.constant 0 : i32
    %c0_i32_0 = arith.constant 0 : i32
    %c0_i32_1 = arith.constant 0 : i32
    %c0_i32_2 = arith.constant 0 : i32
    return %c0_i32, %c0_i32_0, %c0_i32_1 : i32, i32, i32
  }
  func.func @transform_21(%arg0: i32, %arg1: memref<2xi32, #tpu.memory_space<smem>>) -> (i32, i32, i32) {
    %c0_i32 = arith.constant 0 : i32
    %c0_i32_0 = arith.constant 0 : i32
    %c0_i32_1 = arith.constant 0 : i32
    %c0_i32_2 = arith.constant 0 : i32
    return %c0_i32, %c0_i32_0, %c0_i32_1 : i32, i32, i32
  }
  func.func @transform_22(%arg0: i32, %arg1: memref<2xi32, #tpu.memory_space<smem>>) -> (i32, i32, i32) {
    %c0_i32 = arith.constant 0 : i32
    %c0_i32_0 = arith.constant 0 : i32
    %c0_i32_1 = arith.constant 0 : i32
    %c0_i32_2 = arith.constant 0 : i32
    return %c0_i32, %c0_i32_0, %c0_i32_1 : i32, i32, i32
  }
  func.func @transform_23(%arg0: i32, %arg1: memref<2xi32, #tpu.memory_space<smem>>) -> (i32, i32, i32) {
    %c0_i32 = arith.constant 0 : i32
    %c0_i32_0 = arith.constant 0 : i32
    %c0_i32_1 = arith.constant 0 : i32
    %c0_i32_2 = arith.constant 0 : i32
    return %c0_i32, %c0_i32_0, %c0_i32_1 : i32, i32, i32
  }
  func.func @transform_24(%arg0: i32, %arg1: memref<2xi32, #tpu.memory_space<smem>>) -> (i32, i32, i32) {
    %c0_i32 = arith.constant 0 : i32
    %c0_i32_0 = arith.constant 0 : i32
    %c0_i32_1 = arith.constant 0 : i32
    %c0_i32_2 = arith.constant 0 : i32
    return %c0_i32, %c0_i32_0, %c0_i32_1 : i32, i32, i32
  }
  func.func @transform_25(%arg0: i32, %arg1: memref<2xi32, #tpu.memory_space<smem>>) -> (i32, i32, i32) {
    %c0_i32 = arith.constant 0 : i32
    %c0_i32_0 = arith.constant 0 : i32
    %c0_i32_1 = arith.constant 0 : i32
    %c0_i32_2 = arith.constant 0 : i32
    return %c0_i32, %c0_i32_0, %c0_i32_1 : i32, i32, i32
  }
  func.func @transform_26(%arg0: i32, %arg1: memref<2xi32, #tpu.memory_space<smem>>) -> (i32, i32, i32) {
    %c0_i32 = arith.constant 0 : i32
    %c0_i32_0 = arith.constant 0 : i32
    %c0_i32_1 = arith.constant 0 : i32
    %c0_i32_2 = arith.constant 0 : i32
    return %c0_i32, %c0_i32_0, %c0_i32_1 : i32, i32, i32
  }
  func.func @transform_27(%arg0: i32, %arg1: memref<2xi32, #tpu.memory_space<smem>>) -> (i32, i32, i32) {
    %c0_i32 = arith.constant 0 : i32
    %c0_i32_0 = arith.constant 0 : i32
    %c0_i32_1 = arith.constant 0 : i32
    %c0_i32_2 = arith.constant 0 : i32
    return %c0_i32, %c0_i32_0, %c0_i32_1 : i32, i32, i32
  }
  func.func @transform_28(%arg0: i32, %arg1: memref<2xi32, #tpu.memory_space<smem>>) -> (i32, i32, i32) {
    %c0_i32 = arith.constant 0 : i32
    %c0_i32_0 = arith.constant 0 : i32
    %c0_i32_1 = arith.constant 0 : i32
    %c0_i32_2 = arith.constant 0 : i32
    return %c0_i32, %c0_i32_0, %c0_i32_1 : i32, i32, i32
  }
  func.func @transform_29(%arg0: i32, %arg1: memref<2xi32, #tpu.memory_space<smem>>) -> (i32, i32, i32) {
    %c0_i32 = arith.constant 0 : i32
    %c0_i32_0 = arith.constant 0 : i32
    %c0_i32_1 = arith.constant 0 : i32
    %c0_i32_2 = arith.constant 0 : i32
    return %c0_i32, %c0_i32_0, %c0_i32_1 : i32, i32, i32
  }
  func.func @transform_30(%arg0: i32, %arg1: memref<2xi32, #tpu.memory_space<smem>>) -> (i32, i32, i32) {
    %c0_i32 = arith.constant 0 : i32
    %c0_i32_0 = arith.constant 0 : i32
    %c0_i32_1 = arith.constant 0 : i32
    %c0_i32_2 = arith.constant 0 : i32
    return %c0_i32, %c0_i32_0, %c0_i32_1 : i32, i32, i32
  }
  func.func @transform_31(%arg0: i32, %arg1: memref<2xi32, #tpu.memory_space<smem>>) -> (i32, i32, i32) {
    %c0_i32 = arith.constant 0 : i32
    %c0_i32_0 = arith.constant 0 : i32
    %c0_i32_1 = arith.constant 0 : i32
    %c0_i32_2 = arith.constant 0 : i32
    return %c0_i32, %c0_i32_0, %c0_i32_1 : i32, i32, i32
  }
  func.func @transform_32(%arg0: i32, %arg1: memref<2xi32, #tpu.memory_space<smem>>) -> (i32, i32, i32) {
    %c0_i32 = arith.constant 0 : i32
    %c0_i32_0 = arith.constant 0 : i32
    %c0_i32_1 = arith.constant 0 : i32
    %c0_i32_2 = arith.constant 0 : i32
    return %c0_i32, %c0_i32_0, %c0_i32_1 : i32, i32, i32
  }
  func.func @transform_33(%arg0: i32, %arg1: memref<2xi32, #tpu.memory_space<smem>>) -> (i32, i32, i32) {
    %c0_i32 = arith.constant 0 : i32
    %c0_i32_0 = arith.constant 0 : i32
    %c0_i32_1 = arith.constant 0 : i32
    %c0_i32_2 = arith.constant 0 : i32
    return %c0_i32, %c0_i32_0, %c0_i32_1 : i32, i32, i32
  }
  func.func @transform_34(%arg0: i32, %arg1: memref<2xi32, #tpu.memory_space<smem>>) -> (i32, i32, i32) {
    %c0_i32 = arith.constant 0 : i32
    %c0_i32_0 = arith.constant 0 : i32
    %c0_i32_1 = arith.constant 0 : i32
    %c0_i32_2 = arith.constant 0 : i32
    return %c0_i32, %c0_i32_0, %c0_i32_1 : i32, i32, i32
  }
  func.func @transform_35(%arg0: i32, %arg1: memref<2xi32, #tpu.memory_space<smem>>) -> (i32, i32) {
    %c0_i32 = arith.constant 0 : i32
    %c0_i32_0 = arith.constant 0 : i32
    %c0_i32_1 = arith.constant 0 : i32
    return %c0_i32, %c0_i32_0 : i32, i32
  }
  func.func @transform_36(%arg0: i32, %arg1: memref<2xi32, #tpu.memory_space<smem>>) -> (i32, i32) {
    %c0_i32 = arith.constant 0 : i32
    %c0_i32_0 = arith.constant 0 : i32
    %c0_i32_1 = arith.constant 0 : i32
    return %c0_i32, %c0_i32_0 : i32, i32
  }
  func.func @transform_37(%arg0: i32, %arg1: memref<2xi32, #tpu.memory_space<smem>>) -> (i32, i32) {
    %c0_i32 = arith.constant 0 : i32
    %c0_i32_0 = arith.constant 0 : i32
    %c0_i32_1 = arith.constant 0 : i32
    return %c0_i32, %c0_i32_0 : i32, i32
  }
  func.func @transform_38(%arg0: i32, %arg1: memref<2xi32, #tpu.memory_space<smem>>) -> (i32, i32, i32) {
    %c0_i32 = arith.constant 0 : i32
    %c0_i32_0 = arith.constant 0 : i32
    %c0_i32_1 = arith.constant 0 : i32
    return %arg0, %c0_i32, %c0_i32_0 : i32, i32, i32
  }
}

</mosaic_0001>

<bundles_post_ra>
// kernel: conformer_encoder_forward.1
= control target key start
LH: loop header
LB: loop body
LE: loop exit
PB: predicated region body
PF: predicated region fallthrough
CT: control target
= control target key end

     0   :  { %s6094_s6 = smov 1   ;;  %s6095_s10 = smov 2   ;;  %s7215_s0 = inlined_call_operand.smem [shape: u32[40], index: -1, kind: input, shape index: {}] }
   0x1   :  { %s6177_s5 = sld [smem:[%s7215_s0]]   ;;  %s6096_s14 = smov 3  }
   0x2   :  { %s6182_s9 = sld [smem:[%s7215_s0 + %s6094_s6]]   ;;  %s6097_s18 = smov 4  }
   0x3   :  { %s6187_s13 = sld [smem:[%s7215_s0 + %s6095_s10]]   ;;  %s6098_s22 = smov 5  }
   0x4   :  { %s6192_s17 = sld [smem:[%s7215_s0 + %s6096_s14]]   ;;  %s6099_s26 = smov 6  }
   0x5   :  { %s6197_s21 = sld [smem:[%s7215_s0 + %s6097_s18]]   ;;  %s6100_s30 = smov 7  }
   0x6   :  { %s6202_s25 = sld [smem:[%s7215_s0 + %s6098_s22]]   ;;  %s6101_s4 = smov 8  }
   0x7   :  { %s6207_s29 = sld [smem:[%s7215_s0 + %s6099_s26]]   ;;  %s6102_s10 = smov 9  }
   0x8   :  { %7253 = sst [smem:[#allocation51_spill]] %s6182_s9  ;;  %s6103_s15 = smov 10  }
   0x9   :  { %7254 = sst [smem:[#allocation52_spill]] %s6187_s13  ;;  %s6104_s20 = smov 11  }
   0xa   :  { %s6212_s3 = sld [smem:[%s7215_s0 + %s6100_s30]]   ;;  %s6105_s26 = smov 12  }
   0xb   :  { %7255 = sst [smem:[#allocation53_spill]] %s6197_s21  ;;  %s6106_s1 = smov 13  }
   0xc   :  { %7256 = sst [smem:[#allocation54_spill]] %s6202_s25  ;;  %s6107_s7 = smov 14  }
   0xd   :  { %s6217_s8 = sld [smem:[%s7215_s0 + %s6101_s4]]   ;;  %s6109_s22 = smov 16  }
   0xe   :  { %s6222_s14 = sld [smem:[%s7215_s0 + %s6102_s10]]   ;;  %s6110_s28 = smov 17  }
   0xf   :  { %s6227_s19 = sld [smem:[%s7215_s0 + %s6103_s15]]   ;;  %s6108_s15 = smov 15  }
  0x10   :  { %7257 = sst [smem:[#allocation55_spill]] %s6212_s3 }
  0x11   :  { %s6232_s24 = sld [smem:[%s7215_s0 + %s6104_s20]]  }
  0x12   :  { %s6237_s30 = sld [smem:[%s7215_s0 + %s6105_s26]]  }
  0x13   :  { %7258 = sst [smem:[#allocation56_spill]] %s6217_s8 }
  0x14   :  { %s6242_s6 = sld [smem:[%s7215_s0 + %s6106_s1]]  }
  0x15   :  { %s6247_s12 = sld [smem:[%s7215_s0 + %s6107_s7]]   ;;  %s6111_s7 = smov 18  }
  0x16   :  { %s6252_s20 = sld [smem:[%s7215_s0 + %s6108_s15]]   ;;  %s6112_s15 = smov 19  }
  0x17   :  { %7259 = sst [smem:[#allocation57_spill]] %s6232_s24 }
  0x18   :  { %s6257_s27 = sld [smem:[%s7215_s0 + %s6109_s22]]   ;;  %s6113_s22 = smov 20  }
  0x19   :  { %s6262_s4 = sld [smem:[%s7215_s0 + %s6110_s28]]   ;;  %s6114_s28 = smov 21  }
  0x1a   :  { %7260 = sst [smem:[#allocation58_spill]] %s6242_s6 }
  0x1b   :  { %7261 = sst [smem:[#allocation59_spill]] %s6247_s12 }
  0x1c   :  { %7262 = sst [smem:[#allocation60_spill]] %s6252_s20 }
  0x1d   :  { %s6267_s13 = sld [smem:[%s7215_s0 + %s6111_s7]]   ;;  %s6115_s7 = smov 22  }
  0x1e   :  { %s6272_s24 = sld [smem:[%s7215_s0 + %s6112_s15]]   ;;  %s6116_s15 = smov 23  }
  0x1f   :  { %7263 = sst [smem:[#allocation61_spill]] %s6262_s4 }
  0x20   :  { %s6277_s3 = sld [smem:[%s7215_s0 + %s6113_s22]]   ;;  %s6117_s22 = smov 24  }
  0x21   :  { %s6282_s20 = sld [smem:[%s7215_s0 + %s6114_s28]]   ;;  %s6118_s28 = smov 25  }
  0x22   :  { %s6287_s9 = sld [smem:[%s7215_s0 + %s6115_s7]]   ;;  %s6119_s7 = smov 26  }
  0x23   :  { %s6292_s25 = sld [smem:[%s7215_s0 + %s6116_s15]]   ;;  %s6120_s15 = smov 27  }
  0x24   :  { %7264 = sst [smem:[#allocation62_spill]] %s6272_s24 }
  0x25   :  { %s6307_s24 = sld [smem:[%s7215_s0 + %s6119_s7]]   ;;  %s6123_s7 = smov 30  }
  0x26   :  { %7265 = sst [smem:[#allocation63_spill]] %s6277_s3 }
  0x27   :  { %7266 = sst [smem:[#allocation64_spill]] %s6282_s20 }
  0x28   :  { %7267 = sst [smem:[#allocation65_spill]] %s6287_s9 }
  0x29   :  { %7268 = sst [smem:[#allocation66_spill]] %s6292_s25 }
  0x2a   :  { %s6297_s3 = sld [smem:[%s7215_s0 + %s6117_s22]]   ;;  %s6121_s22 = smov 28  }
  0x2b   :  { %s6302_s20 = sld [smem:[%s7215_s0 + %s6118_s28]]   ;;  %s6122_s28 = smov 29  }
  0x2c   :  { %7271 = sst [smem:[#allocation69_spill]] %s6307_s24  ;;  %s6129_s24 = smov 36  }
  0x2d   :  { %s6312_s25 = sld [smem:[%s7215_s0 + %s6120_s15]]   ;;  %s6124_s15 = smov 31  }
  0x2e   :  { %s6317_s4 = sld [smem:[%s7215_s0 + %s6121_s22]]   ;;  %s6125_s22 = smov 32  }
  0x2f   :  { %s6327_s16 = sld [smem:[%s7215_s0 + %s6123_s7]]   ;;  %s6127_s7 = smov 34  }
  0x30   :  { %7269 = sst [smem:[#allocation67_spill]] %s6297_s3 }
  0x31   :  { %7270 = sst [smem:[#allocation68_spill]] %s6302_s20 }
  0x32   :  { %s6322_s20 = sld [smem:[%s7215_s0 + %s6122_s28]]   ;;  %s6126_s28 = smov 33  }
  0x33   :  { %7272 = sst [smem:[#allocation70_spill]] %s6312_s25  ;;  %s6128_s25 = smov 35  }
  0x34   :  { %7273 = sst [smem:[#allocation71_spill]] %s6317_s4  ;;  %s6130_s4 = smov 37  }
  0x35   :  { %7274 = sst [smem:[#allocation72_spill]] %s6327_s16  ;;  %s84_s16 = sshll.u32 %s6177_s5, 4  ;;  %s85_s16 = int_to_ptr.vmem [resolvable:$true] %s84_s16 }
  0x36   :  { %s6332_s23 = sld [smem:[%s7215_s0 + %s6124_s15]]   ;;  %p5459_p1 = scmp.lt.s32.totalorder %s85_s16, %s85_s16 }
  0x37   :  { %s6337_s1 = sld [smem:[%s7215_s0 + %s6125_s22]]   ;;  %s5454_s22 = scalar_lea.vmem %s85_s16, 16 }
  0x38   :  { %s6342_s10 = sld [smem:[%s7215_s0 + %s6126_s28]]   ;;  %p5455_p0 = scmp.ne.s32.totalorder %s85_s16, %s5454_s22 }
  0x39   :  { %s6347_s12 = sld [smem:[%s7215_s0 + %s6127_s7]]   ;;  %s6131_s7 = smov 38  }
  0x3a   :  { %s6368_s15 = sld [smem:[%s7215_s0 + %s6131_s7]]   ;;  %p5460_p2 = scmp.lt.s32.totalorder %s5454_s22, %s5454_s22 }
  0x3c   :  { %7275 = sst [smem:[#allocation73_spill]] %s6332_s23  ;;  %p5461_p3 = por %p5460_p2, %p5459_p1 }
  0x3d   :  { %7276 = sst [smem:[#allocation74_spill]] %s6337_s1 }
  0x3e   :  { %7277 = sst [smem:[#allocation75_spill]] %s6342_s10  ;;  %p5462_p4 = pnand %p5461_p3, %p5455_p0 }
  0x3f   :  { %7278 = sst [smem:[#allocation76_spill]] %s6347_s12 }
  0x40   :  { %s6352_s23 = sld [smem:[%s7215_s0 + %s6128_s25]]   ;;  %s6132_s25 = smov 39  }
  0x41   :  { %s6357_s1 = sld [smem:[%s7215_s0 + %s6129_s24]]  }
  0x42   :  { %s6362_s10 = sld [smem:[%s7215_s0 + %s6130_s4]]  }
  0x43   :  { %s6373_s24 = sld [smem:[%s7215_s0 + %s6132_s25]]  }
  0x46   :  { %7279 = sst [smem:[#allocation77_spill]] %s6352_s23 }
  0x47   :  { %7280 = sst [smem:[#allocation78_spill]] %s6357_s1 }
  0x48   :  { %7281 = sst [smem:[#allocation79_spill]] %s6362_s10 }
  0x49   :  { %5465 = shalt.err (!%p5462_p4)  }
  0x4a   :  { %s6133_s5 = smov [#allocation4]  }
  0x4b   :  { %87 = dma.vmem_to_smem %s85_s16, 16, %s6133_s5, [#allocation3] }
  0x4c   :  { %6028 = dma.done.wait [#allocation3], 16 }
  0x4d   :  { %6029 = vsyncadd [#allocation3], 4294967280 }
  0x4e   :  { %89 = sfence }
  0x4f   :  { %90 = vsyncpa [#allocation6], 0 }
  0x50   :  { %91 = vsyncpa [#allocation9], 0 }
  0x51   :  { %92 = vsyncpa [#allocation12], 0 }
  0x52   :  { %93 = vsyncpa [#allocation15], 0 }
  0x53   :  { %94 = vsyncpa [#allocation18], 0 }
  0x54   :  { %95 = vsyncpa [#allocation21], 0 }
  0x55   :  { %96 = vsyncpa [#allocation24], 0 }
  0x56   :  { %97 = vsyncpa [#allocation27], 0 }
  0x57   :  { %98 = vsyncpa [#allocation30], 0 }
  0x58   :  { %99 = vsyncpa [#allocation33], 0 }
  0x59   :  { %100 = vsyncpa [#allocation36], 0 }
  0x5a   :  { %101 = vsyncpa [#allocation7], 0 }
  0x5b   :  { %103 = vsyncpa [#allocation7 + $0x1], 0  ;;  %s6375_s0 = smov 0   ;;  %s6377_s12 = smov 0  }
  0x5c   :  { %s6379_s23 = smov 0   ;;  %s6381_s26 = smov 0  }
  0x5d LB: > { %s7282_s10 = sld [smem:[#allocation79_spill]]  ;;  %s6396_s4 = sadd.s32 4294967295, %s6092_s26   ;;  %s6080_s0 = sphi %s6375_s0, %s7360_s0   ;;  %s6092_s26 = sphi %s6381_s26, %s7357_s26   ;;  %s6088_s23 = sphi %s6379_s23, %s7359_s23   ;;  %s6084_s12 = sphi %s6377_s12, %s7361_s12  }
  0x5e   : > { %7283 = sst [smem:[#allocation80_spill]] %s6080_s0  ;;  %s4484_s28 = sadd.s32 4294967294, %s6092_s26  }
  0x5f   : > { %7284 = sst [smem:[#allocation81_spill]] %s6088_s23  ;;  %s6400_s2 = sadd.s32 1, %s6092_s26  }
  0x60   : > { %7285 = sst [smem:[#allocation82_spill]] %s6400_s2  ;;  %s919_s16 = sadd.s32 1, %s6088_s23 }
  0x61   : > { %s916_s7 = ssub.s32 %s6092_s26, %s6400_s2  ;;  %p929_p5 = scmp.ne.s32.totalorder %s6088_s23, %s6084_s12 }
  0x62   : > { %p917_p6 = scmp.eq.s32.totalorder %s916_s7, 0  ;;  %p930_p7 = scmp.eq.s32.totalorder %s6396_s4, 1 }
  0x63   : > { %p935_p8 = scmp.ne.s32.totalorder %s6084_s12, %s6080_s0  ;;  %p936_p9 = scmp.eq.s32.totalorder %s4484_s28, 1 }
  0x64   : > { %s6411_s11 = scalar_select %p917_p6, %s6088_s23, %s919_s16  }
  0x65   : > { %p6413_p10 = por %p930_p7, %p929_p5  ;;  %p6417_p11 = por %p936_p9, %p935_p8 }
  0x66   : > { %7286 = sst [smem:[#allocation83_spill]] %s6411_s11  ;;  %p4485_p12 = scmp.ge.s32.totalorder %s6092_s26, 1 }
  0x67   : > { %s7287_s25 = scalar_select %p6413_p10, 1, 0 }
  0x68   : > { %s7288_s18 = scalar_select %p6417_p11, 1, 0 }
  0x69   : > { %p943_p13 = scmp.lt.s32.totalorder %s6092_s26, 3  ;;  %p7234_p0 = scmp.eq.s32.totalorder %s6396_s4, 0 }
  0x6a   : > { %7289 = sst [smem:[#allocation84_spill]] %s7288_s18  ;;  %s6134_s5 = smov [#allocation8]  }
  0x6b   : > { %p6424_p1 = pnand %p4485_p12, %p943_p13  ;;  %s970_s28 = sshll.u32 %s6134_s5, 4  ;;  %s971_s28 = int_to_ptr.vmem [resolvable:$true] %s970_s28 }
  0x6c   : > { %s6135_s7 = smov [#allocation11]   ;;  %s6136_s23 = smov [#allocation14]  }
  0x6d   : > { %s7290_s22 = scalar_select %p6424_p1, 1, 0 }
  0x6e   : > { %p5152_p2 = pneg %p6424_p1  ;;  %s999_s11 = sshll.u32 %s6135_s7, 4  ;;  %s6436_s11 = int_to_ptr.vmem [resolvable:$true] %s999_s11 }
  0x6f   : > { %s1025_s2 = sshll.u32 %s6136_s23, 4  ;;  %s5477_s5 = scalar_lea.vmem %s971_s28, 16  ;;  %s1026_s2 = int_to_ptr.vmem [resolvable:$true] %s1025_s2 }
  0x70   : > { %p6432_p3 = pnand %p7234_p0, %p5152_p2  ;;  %p5478_p5 = scmp.ne.s32.totalorder %s971_s28, %s5477_s5 }
  0x71   : > { %s5484_s0 = scalar_lea.vmem %s971_s28, 32  ;;  %p5485_p8 = scmp.lt.s32.totalorder %s971_s28, %s971_s28 }
  0x72   : > { %p6440_p4 = pneg %p6432_p3  ;;  %p5486_p9 = scmp.lt.s32.totalorder %s5484_s0, %s5477_s5 }
  0x74   : > { %p5480_p6 = pnand %p5478_p5, %p6440_p4  ;;  %p5487_p12 = por %p5486_p9, %p5485_p8 }
  0x76   : > { %p5481_p7 = pneg %p5480_p6 }
  0x78   : > { %p5488_p13 = pnand %p5487_p12, %p5481_p7 }
  0x7a   : > { %5491 = shalt.err (!%p5488_p13)
}
  0x7b   : > { %s7293_s21 = sld [smem:[#allocation53_spill]]  ;;  %s5503_s23 = scalar_lea.vmem %s6436_s11, 32 }
  0x7c   : > { %p5504_p2 = scmp.ne.s32.totalorder %s6436_s11, %s5503_s23  ;;  %p5511_p6 = scmp.lt.s32.totalorder %s6436_s11, %s6436_s11 }
  0x7d   : > { %p5512_p11 = scmp.lt.s32.totalorder %s5503_s23, %s5503_s23 }
  0x7e   : > { %p5506_p0 = pnand %p5504_p2, %p6440_p4 }
  0x7f   : > { %p5513_p10 = por %p5512_p11, %p5511_p6 }
  0x80   : > { %p5507_p5 = pneg %p5506_p0 }
  0x81   : > { %5158 = dma.hbm_to_vmem [thread:$0]  (!%p6432_p3), %s7293_s21, 16, %s971_s28, [#allocation9]  }
  0x82   : > { %p5514_p8 = pnand %p5513_p10, %p5507_p5 }
  0x84   : > { %5517 = shalt.err (!%p5514_p8)
}
  0x85   : > { %s6137_s0 = smov 16   ;;  %s7294_s8 = sld [smem:[#allocation56_spill]] }
  0x86   : > { %s6138_s7 = smov 1   ;;  %s5529_s28 = scalar_lea.vmem %s1026_s2, 32 }
  0x87   : > { %p5530_p0 = scmp.ne.s32.totalorder %s1026_s2, %s5529_s28  ;;  %p5537_p11 = scmp.lt.s32.totalorder %s1026_s2, %s1026_s2 }
  0x88   : > { %p5538_p10 = scmp.lt.s32.totalorder %s5529_s28, %s5529_s28 }
  0x89   : > { %p5532_p7 = pnand %p5530_p0, %p6440_p4 }
  0x8a   : > { %p5539_p12 = por %p5538_p10, %p5537_p11 }
  0x8b   : > { %5164 = dma.hbm_to_vmem [thread:$0]  (!%p6432_p3), %s7294_s8, 32, %s6436_s11, [#allocation12], %s6137_s0, %s6137_s0, %s6138_s7  }
  0x8c   : > { %p5533_p9 = pneg %p5532_p7 }
  0x8e   : > { %p5540_p13 = pnand %p5539_p12, %p5533_p9 }
  0x90   : > { %5543 = shalt.err (!%p5540_p13)
}
  0x91   : > { %5170 = dma.hbm_to_vmem [thread:$0]  (!%p6432_p3), %s6227_s19, 32, %s1026_s2, [#allocation15], %s6137_s0, %s6137_s0, %s6138_s7  }
  0x92   : > { %s6139_s11 = smov [#allocation17]   ;;  %s6140_s23 = smov [#allocation20]  }
  0x93   : > { %s1054_s5 = sshll.u32 %s6139_s11, 4  ;;  %s1083_s8 = sshll.u32 %s6140_s23, 4  ;;  %s1055_s5 = int_to_ptr.vmem [resolvable:$true] %s1054_s5  ;;  %s1084_s8 = int_to_ptr.vmem [resolvable:$true] %s1083_s8 }
  0x94   : > { %s5555_s21 = scalar_lea.vmem %s1055_s5, 32  ;;  %p5563_p8 = scmp.lt.s32.totalorder %s1055_s5, %s1055_s5 }
  0x95   : > { %p5556_p2 = scmp.ne.s32.totalorder %s1055_s5, %s5555_s21  ;;  %p5564_p0 = scmp.lt.s32.totalorder %s5555_s21, %s5555_s21 }
  0x97   : > { %p5558_p5 = pnand %p5556_p2, %p6440_p4  ;;  %p5565_p7 = por %p5564_p0, %p5563_p8 }
  0x99   : > { %p5559_p6 = pneg %p5558_p5 }
  0x9b   : > { %p5566_p9 = pnand %p5565_p7, %p5559_p6 }
  0x9d   : > { %5569 = shalt.err (!%p5566_p9)
}
  0x9e   : > { %s7295_s6 = sld [smem:[#allocation58_spill]]  ;;  %s5581_s2 = scalar_lea.vmem %s1084_s8, 32 }
  0x9f   : > { %p5582_p11 = scmp.ne.s32.totalorder %s1084_s8, %s5581_s2  ;;  %p5589_p13 = scmp.lt.s32.totalorder %s1084_s8, %s1084_s8 }
  0xa0   : > { %p5590_p2 = scmp.lt.s32.totalorder %s5581_s2, %s5581_s2 }
  0xa1   : > { %p5584_p10 = pnand %p5582_p11, %p6440_p4 }
  0xa2   : > { %p5591_p5 = por %p5590_p2, %p5589_p13 }
  0xa3   : > { %p5585_p12 = pneg %p5584_p10 }
  0xa4   : > { %5176 = dma.hbm_to_vmem [thread:$0]  (!%p6432_p3), %s7295_s6, 32, %s1055_s5, [#allocation18], %s6137_s0, %s6137_s0, %s6138_s7  }
  0xa5   : > { %p5592_p8 = pnand %p5591_p5, %p5585_p12 }
  0xa7   : > { %5595 = shalt.err (!%p5592_p8)
}
  0xa8   : > { %5182 = dma.hbm_to_vmem [thread:$0]  (!%p6432_p3), %s6257_s27, 32, %s1084_s8, [#allocation21], %s6137_s0, %s6137_s0, %s6138_s7  }
  0xa9   : > { %s6141_s21 = smov [#allocation23]   ;;  %s6142_s11 = smov [#allocation26]  }
  0xaa   : > { %s1109_s28 = sshll.u32 %s6141_s21, 4  ;;  %s1141_s5 = sshll.u32 %s6142_s11, 4  ;;  %s1110_s28 = int_to_ptr.vmem [resolvable:$true] %s1109_s28  ;;  %s1142_s5 = int_to_ptr.vmem [resolvable:$true] %s1141_s5 }
  0xab   : > { %s5607_s23 = scalar_lea.vmem %s1110_s28, 32  ;;  %p5615_p9 = scmp.lt.s32.totalorder %s1110_s28, %s1110_s28 }
  0xac   : > { %p5608_p6 = scmp.ne.s32.totalorder %s1110_s28, %s5607_s23  ;;  %p5616_p11 = scmp.lt.s32.totalorder %s5607_s23, %s5607_s23 }
  0xae   : > { %p5610_p0 = pnand %p5608_p6, %p6440_p4  ;;  %p5617_p10 = por %p5616_p11, %p5615_p9 }
  0xb0   : > { %p5611_p7 = pneg %p5610_p0 }
  0xb2   : > { %p5618_p12 = pnand %p5617_p10, %p5611_p7 }
  0xb4   : > { %5621 = shalt.err (!%p5618_p12)
}
  0xb5   : > { %5188 = dma.hbm_to_vmem [thread:$0]  (!%p6432_p3), %s6267_s13, 32, %s1110_s28, [#allocation24], %s6137_s0, %s6137_s0, %s6138_s7  }
  0xb6   : > { %s5633_s8 = scalar_lea.vmem %s1142_s5, 32  ;;  %p5641_p8 = scmp.lt.s32.totalorder %s1142_s5, %s1142_s5 }
  0xb7   : > { %p5634_p13 = scmp.ne.s32.totalorder %s1142_s5, %s5633_s8  ;;  %p5642_p6 = scmp.lt.s32.totalorder %s5633_s8, %s5633_s8 }
  0xb9   : > { %p5636_p2 = pnand %p5634_p13, %p6440_p4  ;;  %p5643_p0 = por %p5642_p6, %p5641_p8 }
  0xbb   : > { %p5637_p5 = pneg %p5636_p2 }
  0xbd   : > { %p5644_p9 = pnand %p5643_p0, %p5637_p5 }
  0xbf   : > { %5647 = shalt.err (!%p5644_p9)
}
  0xc0   : > { %s7296_s9 = sld [smem:[#allocation65_spill]]  ;;  %s6143_s2 = smov [#allocation29]  }
  0xc1   : > { %s1167_s21 = sshll.u32 %s6143_s2, 4  ;;  %s6144_s28 = smov [#allocation32]   ;;  %s1168_s21 = int_to_ptr.vmem [resolvable:$true] %s1167_s21 }
  0xc2   : > { %s1202_s11 = sshll.u32 %s6144_s28, 4  ;;  %s5659_s23 = scalar_lea.vmem %s1168_s21, 32  ;;  %s1203_s11 = int_to_ptr.vmem [resolvable:$true] %s1202_s11 }
  0xc3   : > { %p5660_p7 = scmp.ne.s32.totalorder %s1168_s21, %s5659_s23  ;;  %p5667_p12 = scmp.lt.s32.totalorder %s1168_s21, %s1168_s21 }
  0xc4   : > { %p5668_p13 = scmp.lt.s32.totalorder %s5659_s23, %s5659_s23 }
  0xc5   : > { %p5662_p11 = pnand %p5660_p7, %p6440_p4 }
  0xc6   : > { %5194 = dma.hbm_to_vmem [thread:$0]  (!%p6432_p3), %s7296_s9, 32, %s1142_s5, [#allocation27], %s6137_s0, %s6137_s0, %s6138_s7  }
  0xc7   : > { %p5663_p10 = pneg %p5662_p11  ;;  %p5669_p2 = por %p5668_p13, %p5667_p12 }
  0xc9   : > { %p5670_p5 = pnand %p5669_p2, %p5663_p10 }
  0xcb   : > { %5673 = shalt.err (!%p5670_p5)
}
  0xcc   : > { %s7297_s3 = sld [smem:[#allocation67_spill]]  ;;  %s5685_s5 = scalar_lea.vmem %s1203_s11, 32 }
  0xcd   : > { %p5686_p8 = scmp.ne.s32.totalorder %s1203_s11, %s5685_s5  ;;  %p5693_p9 = scmp.lt.s32.totalorder %s1203_s11, %s1203_s11 }
  0xce   : > { %p5694_p7 = scmp.lt.s32.totalorder %s5685_s5, %s5685_s5 }
  0xcf   : > { %p5688_p6 = pnand %p5686_p8, %p6440_p4 }
  0xd0   : > { %p5695_p11 = por %p5694_p7, %p5693_p9 }
  0xd1   : > { %p5689_p0 = pneg %p5688_p6 }
  0xd2   : > { %5200 = dma.hbm_to_vmem [thread:$0]  (!%p6432_p3), %s7297_s3, 32, %s1168_s21, [#allocation30], %s6137_s0, %s6137_s0, %s6138_s7  }
  0xd3   : > { %p5696_p12 = pnand %p5695_p11, %p5689_p0 }
  0xd5   : > { %5699 = shalt.err (!%p5696_p12)
}
  0xd6   : > { %5206 = dma.hbm_to_vmem [thread:$0]  (!%p6432_p3), %s6322_s20, 32, %s1203_s11, [#allocation33], %s6137_s0, %s6137_s0, %s6138_s7  }
  0xd7   : > { %s6145_s8 = smov [#allocation5]   ;;  %s6146_s21 = smov [#allocation10]  }
  0xd8   : > { %s959_s2 = sshll.u32 %s6145_s8, 4  ;;  %s983_s28 = sshll.u32 %s6146_s21, 4  ;;  %s960_s2 = int_to_ptr.vmem [resolvable:$true] %s959_s2  ;;  %s984_s28 = int_to_ptr.vmem [resolvable:$true] %s983_s28 }
  0xd9   : > { %s5711_s23 = scalar_lea.vmem %s960_s2, 16  ;;  %s5718_s5 = scalar_lea.vmem %s960_s2, 32 }
  0xda   : > { %p5712_p10 = scmp.ne.s32.totalorder %s960_s2, %s5711_s23  ;;  %p5719_p5 = scmp.lt.s32.totalorder %s960_s2, %s960_s2 }
  0xdb   : > { %p5720_p8 = scmp.lt.s32.totalorder %s5718_s5, %s5711_s23 }
  0xdc   : > { %p5714_p13 = pnand %p5712_p10, %p6440_p4 }
  0xdd   : > { %p5721_p6 = por %p5720_p8, %p5719_p5 }
  0xde   : > { %p5715_p2 = pneg %p5714_p13 }
  0xe0   : > { %p5722_p0 = pnand %p5721_p6, %p5715_p2 }
  0xe2   : > { %5725 = shalt.err (!%p5722_p0)
}
  0xe3   : > { %5155 = dma.hbm_to_vmem [thread:$0]  (!%p6432_p3), %s6192_s17, 16, %s960_s2, [#allocation6]  }
  0xe4   : > { %s5737_s11 = scalar_lea.vmem %s984_s28, 32  ;;  %p5745_p12 = scmp.lt.s32.totalorder %s984_s28, %s984_s28 }
  0xe5   : > { %p5738_p9 = scmp.ne.s32.totalorder %s984_s28, %s5737_s11  ;;  %p5746_p10 = scmp.lt.s32.totalorder %s5737_s11, %s5737_s11 }
  0xe7   : > { %p5740_p7 = pnand %p5738_p9, %p6440_p4  ;;  %p5747_p13 = por %p5746_p10, %p5745_p12 }
  0xe9   : > { %p5741_p11 = pneg %p5740_p7 }
  0xeb   : > { %p5748_p1 = pnand %p5747_p13, %p5741_p11 }
  0xed   : > { %5751 = shalt.err (!%p5748_p1)
}
  0xee   : > { %5161 = dma.hbm_to_vmem [thread:$0]  (!%p6432_p3), %s6207_s29, 32, %s984_s28, [#allocation9], %s6137_s0, %s6137_s0, %s6138_s7  }
  0xef   : > { %s6147_s8 = smov [#allocation13]   ;;  %s6148_s21 = smov [#allocation16]  }
  0xf0   : > { %s1012_s2 = sshll.u32 %s6147_s8, 4  ;;  %s1041_s23 = sshll.u32 %s6148_s21, 4  ;;  %s1013_s2 = int_to_ptr.vmem [resolvable:$true] %s1012_s2  ;;  %s1042_s23 = int_to_ptr.vmem [resolvable:$true] %s1041_s23 }
  0xf1   : > { %s5763_s5 = scalar_lea.vmem %s1013_s2, 32  ;;  %p5771_p6 = scmp.lt.s32.totalorder %s1013_s2, %s1013_s2 }
  0xf2   : > { %p5764_p2 = scmp.ne.s32.totalorder %s1013_s2, %s5763_s5  ;;  %p5772_p1 = scmp.lt.s32.totalorder %s5763_s5, %s5763_s5 }
  0xf4   : > { %p5766_p5 = pnand %p5764_p2, %p6440_p4  ;;  %p5773_p0 = por %p5772_p1, %p5771_p6 }
  0xf6   : > { %p5767_p8 = pneg %p5766_p5 }
  0xf8   : > { %p5774_p9 = pnand %p5773_p0, %p5767_p8 }
  0xfa   : > { %5777 = shalt.err (!%p5774_p9)
}
  0xfb   : > { %5167 = dma.hbm_to_vmem [thread:$0]  (!%p6432_p3), %s6222_s14, 32, %s1013_s2, [#allocation12], %s6137_s0, %s6137_s0, %s6138_s7  }
  0xfc   : > { %s5789_s28 = scalar_lea.vmem %s1042_s23, 32  ;;  %p5797_p10 = scmp.lt.s32.totalorder %s1042_s23, %s1042_s23 }
  0xfd   : > { %p5790_p7 = scmp.ne.s32.totalorder %s1042_s23, %s5789_s28  ;;  %p5798_p13 = scmp.lt.s32.totalorder %s5789_s28, %s5789_s28 }
  0xff   : > { %p5792_p11 = pnand %p5790_p7, %p6440_p4  ;;  %p5799_p2 = por %p5798_p13, %p5797_p10 }
 0x101   : > { %p5793_p12 = pneg %p5792_p11 }
 0x103   : > { %p5800_p5 = pnand %p5799_p2, %p5793_p12 }
 0x105   : > { %5803 = shalt.err (!%p5800_p5)
}
 0x106   : > { %5173 = dma.hbm_to_vmem [thread:$0]  (!%p6432_p3), %s6237_s30, 32, %s1042_s23, [#allocation15], %s6137_s0, %s6137_s0, %s6138_s7  }
 0x107   : > { %s6149_s11 = smov [#allocation19]   ;;  %s6150_s2 = smov [#allocation22]  }
 0x108   : > { %s1067_s8 = sshll.u32 %s6149_s11, 4  ;;  %s1096_s21 = sshll.u32 %s6150_s2, 4  ;;  %s1068_s8 = int_to_ptr.vmem [resolvable:$true] %s1067_s8  ;;  %s1097_s21 = int_to_ptr.vmem [resolvable:$true] %s1096_s21 }
 0x109   : > { %s5815_s5 = scalar_lea.vmem %s1068_s8, 32  ;;  %p5823_p0 = scmp.lt.s32.totalorder %s1068_s8, %s1068_s8 }
 0x10a   : > { %p5816_p8 = scmp.ne.s32.totalorder %s1068_s8, %s5815_s5  ;;  %p5824_p9 = scmp.lt.s32.totalorder %s5815_s5, %s5815_s5 }
 0x10c   : > { %p5818_p6 = pnand %p5816_p8, %p6440_p4  ;;  %p5825_p7 = por %p5824_p9, %p5823_p0 }
 0x10e   : > { %p5819_p1 = pneg %p5818_p6 }
 0x110   : > { %p5826_p11 = pnand %p5825_p7, %p5819_p1 }
 0x112   : > { %5829 = shalt.err (!%p5826_p11)
}
 0x113   : > { %s7298_s23 = sld [smem:[#allocation59_spill]]  ;;  %s5841_s28 = scalar_lea.vmem %s1097_s21, 32 }
 0x114   : > { %p5842_p12 = scmp.ne.s32.totalorder %s1097_s21, %s5841_s28  ;;  %p5849_p2 = scmp.lt.s32.totalorder %s1097_s21, %s1097_s21 }
 0x115   : > { %p5850_p5 = scmp.lt.s32.totalorder %s5841_s28, %s5841_s28 }
 0x116   : > { %p5844_p10 = pnand %p5842_p12, %p6440_p4 }
 0x117   : > { %p5851_p8 = por %p5850_p5, %p5849_p2 }
 0x118   : > { %p5845_p13 = pneg %p5844_p10 }
 0x119   : > { %5179 = dma.hbm_to_vmem [thread:$0]  (!%p6432_p3), %s7298_s23, 32, %s1068_s8, [#allocation18], %s6137_s0, %s6137_s0, %s6138_s7  }
 0x11a   : > { %p5852_p6 = pnand %p5851_p8, %p5845_p13 }
 0x11c   : > { %5855 = shalt.err (!%p5852_p6)
}
 0x11d   : > { %s7299_s11 = sld [smem:[#allocation61_spill]]  ;;  %s6151_s8 = smov [#allocation25]  }
 0x11e   : > { %s1122_s2 = sshll.u32 %s6151_s8, 4  ;;  %s6152_s5 = smov [#allocation28]   ;;  %s1123_s2 = int_to_ptr.vmem [resolvable:$true] %s1122_s2 }
 0x11f   : > { %s1154_s23 = sshll.u32 %s6152_s5, 4  ;;  %s5867_s3 = scalar_lea.vmem %s1123_s2, 32  ;;  %s1155_s23 = int_to_ptr.vmem [resolvable:$true] %s1154_s23 }
 0x120   : > { %p5868_p1 = scmp.ne.s32.totalorder %s1123_s2, %s5867_s3  ;;  %p5875_p7 = scmp.lt.s32.totalorder %s1123_s2, %s1123_s2 }
 0x121   : > { %p5876_p11 = scmp.lt.s32.totalorder %s5867_s3, %s5867_s3 }
 0x122   : > { %p5870_p0 = pnand %p5868_p1, %p6440_p4 }
 0x123   : > { %5185 = dma.hbm_to_vmem [thread:$0]  (!%p6432_p3), %s7299_s11, 32, %s1097_s21, [#allocation21], %s6137_s0, %s6137_s0, %s6138_s7  }
 0x124   : > { %p5871_p9 = pneg %p5870_p0  ;;  %p5877_p12 = por %p5876_p11, %p5875_p7 }
 0x126   : > { %p5878_p10 = pnand %p5877_p12, %p5871_p9 }
 0x128   : > { %5881 = shalt.err (!%p5878_p10)
}
 0x129   : > { %s7300_s21 = sld [smem:[#allocation62_spill]]  ;;  %s5893_s28 = scalar_lea.vmem %s1155_s23, 32 }
 0x12a   : > { %p5894_p13 = scmp.ne.s32.totalorder %s1155_s23, %s5893_s28  ;;  %p5901_p8 = scmp.lt.s32.totalorder %s1155_s23, %s1155_s23 }
 0x12b   : > { %p5902_p6 = scmp.lt.s32.totalorder %s5893_s28, %s5893_s28 }
 0x12c   : > { %p5896_p2 = pnand %p5894_p13, %p6440_p4 }
 0x12d   : > { %p5903_p1 = por %p5902_p6, %p5901_p8 }
 0x12e   : > { %p5897_p5 = pneg %p5896_p2 }
 0x12f   : > { %5191 = dma.hbm_to_vmem [thread:$0]  (!%p6432_p3), %s7300_s21, 32, %s1123_s2, [#allocation24], %s6137_s0, %s6137_s0, %s6138_s7  }
 0x130   : > { %p5904_p0 = pnand %p5903_p1, %p5897_p5 }
 0x132   : > { %5907 = shalt.err (!%p5904_p0)
}
 0x133   : > { %s7301_s3 = sld [smem:[#allocation66_spill]]  ;;  %s6153_s11 = smov [#allocation31]  }
 0x134   : > { %s1180_s8 = sshll.u32 %s6153_s11, 4  ;;  %s6154_s2 = smov [#allocation34]   ;;  %s1181_s8 = int_to_ptr.vmem [resolvable:$true] %s1180_s8 }
 0x135   : > { %s1215_s5 = sshll.u32 %s6154_s2, 4  ;;  %s5919_s21 = scalar_lea.vmem %s1181_s8, 32  ;;  %s1216_s5 = int_to_ptr.vmem [resolvable:$true] %s1215_s5 }
 0x136   : > { %p5920_p9 = scmp.ne.s32.totalorder %s1181_s8, %s5919_s21  ;;  %p5927_p12 = scmp.lt.s32.totalorder %s1181_s8, %s1181_s8 }
 0x137   : > { %p5928_p10 = scmp.lt.s32.totalorder %s5919_s21, %s5919_s21 }
 0x138   : > { %p5922_p7 = pnand %p5920_p9, %p6440_p4 }
 0x139   : > { %5197 = dma.hbm_to_vmem [thread:$0]  (!%p6432_p3), %s7301_s3, 32, %s1155_s23, [#allocation27], %s6137_s0, %s6137_s0, %s6138_s7  }
 0x13a   : > { %p5923_p11 = pneg %p5922_p7  ;;  %p5929_p13 = por %p5928_p10, %p5927_p12 }
 0x13c   : > { %p5930_p2 = pnand %p5929_p13, %p5923_p11 }
 0x13e   : > { %5933 = shalt.err (!%p5930_p2)
}
 0x13f   : > { %s7302_s23 = sld [smem:[#allocation68_spill]]  ;;  %s5945_s28 = scalar_lea.vmem %s1216_s5, 32 }
 0x140   : > { %p5946_p5 = scmp.ne.s32.totalorder %s1216_s5, %s5945_s28  ;;  %p5953_p1 = scmp.lt.s32.totalorder %s1216_s5, %s1216_s5 }
 0x141   : > { %p5954_p0 = scmp.lt.s32.totalorder %s5945_s28, %s5945_s28 }
 0x142   : > { %p5948_p8 = pnand %p5946_p5, %p6440_p4 }
 0x143   : > { %p5955_p9 = por %p5954_p0, %p5953_p1 }
 0x144   : > { %p5949_p6 = pneg %p5948_p8 }
 0x145   : > { %5203 = dma.hbm_to_vmem [thread:$0]  (!%p6432_p3), %s7302_s23, 32, %s1181_s8, [#allocation30], %s6137_s0, %s6137_s0, %s6138_s7  }
 0x146   : > { %p5956_p7 = pnand %p5955_p9, %p5949_p6 }
 0x148   : > { %5959 = shalt.err (!%p5956_p7)
}
 0x149   : > { %s7303_s3 = sld [smem:[#allocation72_spill]]  ;;  %s6155_s11 = smov [#allocation35]  }
 0x14a   : > { %s1228_s8 = sshll.u32 %s6155_s11, 4  ;;  %s1229_s8 = int_to_ptr.vmem [resolvable:$true] %s1228_s8 }
 0x14b   : > { %s5971_s2 = scalar_lea.vmem %s1229_s8, 32  ;;  %p5979_p13 = scmp.lt.s32.totalorder %s1229_s8, %s1229_s8 }
 0x14c   : > { %p5972_p11 = scmp.ne.s32.totalorder %s1229_s8, %s5971_s2  ;;  %p5980_p2 = scmp.lt.s32.totalorder %s5971_s2, %s5971_s2 }
 0x14e   : > { %p5974_p12 = pnand %p5972_p11, %p6440_p4  ;;  %p5981_p5 = por %p5980_p2, %p5979_p13 }
 0x14f   : > { %5209 = dma.hbm_to_vmem [thread:$0]  (!%p6432_p3), %s7303_s3, 32, %s1216_s5, [#allocation33], %s6137_s0, %s6137_s0, %s6138_s7  }
 0x150   : > { %p5975_p10 = pneg %p5974_p12 }
 0x152   : > { %p5982_p8 = pnand %p5981_p5, %p5975_p10 }
 0x154   : > { %5985 = shalt.err (!%p5982_p8)
}
 0x155   : > { %s7304_s21 = sld [smem:[#allocation73_spill]]  ;;  %p7305_p6 = scmp.ne.s32.totalorder %s7290_s22, 0 }
 0x156   : > { %p7306_p1 = scmp.eq.s32.totalorder (!%p7305_p6), %s6396_s4, 0 }
 0x157   : > { %1272 = sbr.rel (%p7305_p6) target bundleno = 10702 (0x29ce), region = 172 }
 0x15b   : > { %5212 = dma.hbm_to_vmem [thread:$0]  (!%p6432_p3), %s7304_s21, 32, %s1229_s8, [#allocation36], %s6137_s0, %s6137_s0, %s6138_s7  }
 0x15c   : > { %6031 = dma.done.wait (%p7306_p1), [#allocation6], 16   ;;  %p7307_p4 = pmov %p7306_p1 }
 0x15d   : > { %p7308_p0 = pmov %p7306_p1 }
 0x15e   : > { %6033 = vsyncadd (%p7307_p4), [#allocation6], 4294967280 }
 0x15f   : > { %6035 = dma.done.wait (%p7308_p0), [#allocation9], 48   ;;  %p7309_p9 = pmov %p7308_p0 }
 0x160   : > { %p7310_p7 = pmov %p7308_p0 }
 0x161   : > { %6037 = vsyncadd (%p7309_p9), [#allocation9], 4294967248 }
 0x162   : > { %6039 = dma.done.wait (%p7310_p7), [#allocation12], 64   ;;  %p7311_p3 = pmov %p7308_p0 }
 0x163   : > { %p7312_p11 = pmov %p7308_p0 }
 0x164   : > { %6041 = vsyncadd (%p7311_p3), [#allocation12], 4294967232 }
 0x165   : > { %6043 = dma.done.wait (%p7312_p11), [#allocation15], 64   ;;  %p7313_p12 = pmov %p7308_p0 }
 0x166   : > { %p7314_p10 = pmov %p7308_p0 }
 0x167   : > { %6045 = vsyncadd (%p7313_p12), [#allocation15], 4294967232 }
 0x168   : > { %6047 = dma.done.wait (%p7314_p10), [#allocation18], 64   ;;  %p7315_p13 = pmov %p7308_p0 }
 0x169   : > { %p7316_p2 = pmov %p7308_p0 }
 0x16a   : > { %6049 = vsyncadd (%p7315_p13), [#allocation18], 4294967232 }
 0x16b   : > { %6051 = dma.done.wait (%p7316_p2), [#allocation21], 64   ;;  %p7317_p5 = pmov %p7308_p0 }
 0x16c   : > { %p7318_p8 = pmov %p7308_p0 }
 0x16d   : > { %6053 = vsyncadd (%p7317_p5), [#allocation21], 4294967232 }
 0x16e   : > { %6055 = dma.done.wait (%p7318_p8), [#allocation24], 64   ;;  %p7319_p6 = pmov %p7308_p0 }
 0x16f   : > { %p7320_p1 = pmov %p7308_p0 }
 0x170   : > { %6057 = vsyncadd (%p7319_p6), [#allocation24], 4294967232 }
 0x171   : > { %6059 = dma.done.wait (%p7320_p1), [#allocation27], 64   ;;  %p7321_p4 = pmov %p7308_p0 }
 0x173   : > { %6061 = vsyncadd (%p7321_p4), [#allocation27], 4294967232 }
 0x174   : > { %6063 = dma.done.wait (%p7308_p0), [#allocation30], 64   ;;  %p7322_p9 = pmov %p7308_p0 }
 0x175   : > { %p7323_p7 = pmov %p7308_p0 }
 0x176   : > { %6065 = vsyncadd (%p7322_p9), [#allocation30], 4294967232 }
 0x177   : > { %6067 = dma.done.wait (%p7323_p7), [#allocation33], 64   ;;  %p7324_p3 = pmov %p7308_p0 }
 0x178   : > { %p7325_p11 = pmov %p7308_p0 }
 0x179   : > { %6069 = vsyncadd (%p7324_p3), [#allocation33], 4294967232 }
 0x17a   : > { %6071 = dma.done.wait (%p7325_p11), [#allocation36], 32   ;;  %p7326_p12 = pmov %p7308_p0 }
 0x17b   : > { %s7327_s18 = sld [smem:[#allocation54_spill]]  ;;  %p1441_p10 = scmp.lt.s32.totalorder %s6396_s4, 1  ;;  %vm1457_vm0 = vcmask 261120   ;;  %v6156_v0 = vmov 0.0   ;;  %vm6157_vm1 = vmmov 0   ;;  %vm1696_vm2 = vcmask 523264  }
 0x17c   : > { %6073 = vsyncadd (%p7326_p12), [#allocation36], 4294967264  ;;  %s7328_s22 = sld [smem:[#allocation51_spill]]  ;;  %4788 = vmatprep.subr.mxu0 %v6156_v0  ;;  %4796 = vmatprep.mubr.msk.f32.mxu0 %vm6157_vm1, %v6156_v0  ;;  %1557 = vst.msk [vmem:[#allocation2] sm:$0xff] %vm1457_vm0, %v6156_v0  ;;  %v4530_v6 = vld [vmem:[#allocation8] ss:$0 sm:$0xff] }
 0x17d   : > { %1558 = vst.msk [vmem:[#allocation2 + $0x8] sm:$0xff] %vm1457_vm0, %v6156_v0  ;;  %1559 = vst.msk [vmem:[#allocation2 + $0x10] sm:$0xff] %vm1457_vm0, %v6156_v0  ;;  %s1442_s16 = scalar_select %p1441_p10, %s6396_s4, 1  ;;  %4799 = vmatprep.subr.mxu1 %v6156_v0  ;;  %4807 = vmatprep.mubr.msk.f32.mxu1 %vm6157_vm1, %v6156_v0  ;;  %v4532_v24 = vld [vmem:[#allocation25] ss:$0 sm:$0xff]  ;;  %vm1547_vm4 = vcmask 64512  }
 0x17e   : > { %s7329_s5 = sld [smem:[#allocation63_spill]]  ;;  %v4533_v26 = vld [vmem:[#allocation23] ss:$0 sm:$0xff]  ;;  %v4534_v37 = vld [vmem:[#allocation20] ss:$0 sm:$0xff]  ;;  %s7242_s2 = smov 96  }
 0x17f   : > { %s4529_s0 = sshll.u32 %s1442_s16, 3  ;;  %s7330_s23 = sld [smem:[#allocation64_spill]]  ;;  %v4537_v46 = vld [vmem:[#allocation22] ss:$0 sm:$0xff]  ;;  %vm1549_vm5 = vcmask 130048   ;;  %vm1551_vm6 = vcmask 195584  }
 0x180   : > { %s7332_s3 = sld [smem:[#allocation75_spill]]  ;;  %s6162_s6 = smov 16   ;;  %vm2368_vm7 = vcmask 195712   ;;  %vm2352_vm8 = vcmask 130112   ;;  %vm2384_vm9 = vcmask 261312  }
 0x181   : > { %v1449_v1 = vld [vmem:[%s7327_s18 + $0x18] sm:$0xff]  ;;  %v1448_v2 = vld [vmem:[%s7327_s18 + $0x10] sm:$0xff]  ;;  %v1447_v3 = vld [vmem:[%s7327_s18 + $0x8] sm:$0xff]  ;;  %s7333_s11 = sld [smem:[#allocation74_spill]]  ;;  %s6163_s9 = smov 24  }
 0x182   : > { %4789 = vmatpush3.msra.mxu0 %v1449_v1  ;;  %s1444_s7 = scalar_lea.vmem %s7328_s22, %s4529_s0  ;;  %v1446_v4 = vld [vmem:[%s7327_s18] sm:$0xff]  ;;  %s7334_s8 = sld [smem:[#allocation60_spill]] }
 0x183   : > { %4790 = vmatprep.subr.mxu0 %v6156_v0  ;;  %v1445_v5 = vld [vmem:[%s1444_s7] sm:$0xff]  ;;  %s7335_s21 = sld [smem:[#allocation77_spill]]  ;;  %p7353_p2 = scmp.ne.s32.totalorder %s7287_s25, 0 }
 0x184   : > { %4791 = vmatpush3.msra.mxu0 %v1448_v2  ;;  %v1593_v16 = vld [vmem:[%s7329_s5 + $0x18] sm:$0xff]  ;;  %v1592_v17 = vld [vmem:[%s7329_s5 + $0x10] sm:$0xff]  ;;  %v1591_v18 = vld [vmem:[%s7329_s5 + $0x8] sm:$0xff]  ;;  %s7336_s16 = sld [smem:[#allocation71_spill]] }
 0x185   : > { %4792 = vmatprep.subr.mxu0 %v6156_v0  ;;  %4800 = vmatpush3.msra.mxu1 %v1593_v16  ;;  %v1590_v19 = vld [vmem:[%s7329_s5] sm:$0xff]  ;;  %s7331_s28 = smov %s7330_s23  ;;  %v1688_v29 = vld [vmem:[%s7330_s23 + $0x38] sm:$0xff]  ;;  %v1532_v16 = vlaneseq  ;;  %s7337_s7 = sld [smem:[#allocation76_spill]] }
 0x186   : > { %4793 = vmatpush3.msra.mxu0 %v1447_v3  ;;  %4801 = vmatprep.subr.mxu1 %v6156_v0  ;;  %v1687_v30 = vld [vmem:[%s7331_s28 + $0x30] sm:$0xff]  ;;  %v1686_v31 = vld [vmem:[%s7331_s28 + $0x28] sm:$0xff]  ;;  %v1685_v32 = vld [vmem:[%s7331_s28 + $0x20] sm:$0xff]  ;;  %s7338_s23 = sld [smem:[#allocation55_spill]] }
 0x187   : > { %4794 = vmatprep.subr.mxu0 %v6156_v0  ;;  %4802 = vmatpush3.msra.mxu1 %v1592_v17  ;;  %v1684_v33 = vld [vmem:[%s7331_s28 + $0x18] sm:$0xff]  ;;  %v1683_v34 = vld [vmem:[%s7331_s28 + $0x10] sm:$0xff]  ;;  %v1682_v35 = vld [vmem:[%s7331_s28 + $0x8] sm:$0xff]  ;;  %v6732_v17 = vshrl.u32 %v1532_v16, 7  ;;  %s7351_s1 = sld [smem:[#allocation78_spill]] }
 0x188   : > { %4795 = vmatpush3.msra.mxu0 %v1446_v4  ;;  %4803 = vmatprep.subr.mxu1 %v6156_v0  ;;  %v1681_v36 = vld [vmem:[%s7331_s28] sm:$0xff]  ;;  %v1804_v58 = vld [vmem:[%s7332_s3 + $0x18] sm:$0xff]  ;;  %v1803_v59 = vld [vmem:[%s7332_s3 + $0x10] sm:$0xff] }
 0x189   : > { %4797 = vmatmul.mubr.msk.f32.vlgmr.msra.gmra.mxu0 %vm1457_vm0, %v1445_v5  ;;  %4810 = vmatprep.subr.mxu0 %v6156_v0  ;;  %v1802_v60 = vld [vmem:[%s7332_s3 + $0x8] sm:$0xff]  ;;  %v1801_v61 = vld [vmem:[%s7332_s3] sm:$0xff] }
 0x18a   : > { %4826 = vmatprep.mubr.msk.f32.mxu0 %vm6157_vm1, %v6156_v0  ;;  %4804 = vmatpush3.msra.mxu1 %v1591_v18  ;;  %v4539_v3 = vld [vmem:[#allocation17] ss:$0 sm:$0xff]  ;;  %v4540_v5 = vld [vmem:[#allocation16] ss:$0 sm:$0xff] }
 0x18b   : > { %4805 = vmatprep.subr.mxu1 %v6156_v0  ;;  %4811 = vmatpush3.msra.mxu0 %v1688_v29 }
 0x18c   : > { %4806 = vmatpush3.msra.mxu1 %v1590_v19  ;;  %4812 = vmatprep.subr.mxu0 %v6156_v0 }
 0x18d   : > { %4829 = vmatprep.subr.mxu1 %v6156_v0  ;;  %4813 = vmatpush3.msra.mxu0 %v1687_v30 }
 0x18e   : > { %4814 = vmatprep.subr.mxu0 %v6156_v0 }
 0x18f   : > { %4815 = vmatpush3.msra.mxu0 %v1686_v31 }
 0x190   : > { %4816 = vmatprep.subr.mxu0 %v6156_v0 }
 0x191   : > { %4817 = vmatpush3.msra.mxu0 %v1685_v32  ;;  %v1937_v32 = vsub.s32 4, %v6732_v17 }
 0x192   : > { %4818 = vmatprep.subr.mxu0 %v6156_v0 }
 0x193   : > { %4819 = vmatpush3.msra.mxu0 %v1684_v33 }
 0x194   : > { %4820 = vmatprep.subr.mxu0 %v6156_v0 }
 0x195   : > { %4821 = vmatpush3.msra.mxu0 %v1683_v34 }
 0x196   : > { %4822 = vmatprep.subr.mxu0 %v6156_v0 }
 0x197   : > { %4823 = vmatpush3.msra.mxu0 %v1682_v35 }
 0x198   : > { %4824 = vmatprep.subr.mxu0 %v6156_v0 }
 0x199   : > { %4825 = vmatpush3.msra.mxu0 %v1681_v36 }
 0x19a   : > { %4851 = vmatprep.subr.mxu0 %v6156_v0 }
 0x249   : > { %v1527_v7 = vpop.f32.mrf.mxu0 }
 0x24a   : > { %v6675_v8 = vadd.f32 %v4530_v6, %v1527_v7 }
 0x24b   : > { %v4798_v9 = vpop.f32.mrf.mxu0 }
 0x24c   : > { %v1562_v10 = vsel %vm1457_vm0, %v6675_v8, 0.0 }
 0x24d   : > { %1563 = vadd.xlane.f32.xlu0 %v1562_v10 }
 0x2d6   : > { %v1564_v11 = vpop.xlane.xlu0 %1563 }
 0x2d7   : > { %v1566_v12 = vmul.f32 0.03125, %v1564_v11 }
 0x2d9   : > { %v1567_v13 = vsub.f32 %v6675_v8, %v1566_v12 }
 0x2db   : > { %v1568_v14 = vmul.f32 %v1567_v13, %v1567_v13 }
 0x2dd   : > { %v1569_v15 = vsel %vm1457_vm0, %v1568_v14, 0.0 }
 0x2de   : > { %1570 = vadd.xlane.f32.xlu0 %v1569_v15 }
 0x367   : > { %v1571_v20 = vpop.xlane.xlu0 %1570 }
 0x368   : > { %v1572_v21 = vmul.f32 0.03125, %v1571_v20  ;;  %v6736_v20 = vsub.s32 0, %v6732_v17 }
 0x36a   : > { %v1573_v22 = vadd.f32 1e-05, %v1572_v21  ;;  %v1897_v21 = vld [vmem:[%s7334_s8] sm:$0x7f] }
 0x36c   : > { %5364 = vrsqrt.f32 %v1573_v22  ;;  %v1916_v22 = vsub.s32 1, %v6732_v17 }
 0x379   : > { %v5365_v23 = vpop.eup %5364 }
 0x37a   : > { %v1575_v25 = vmul.f32 %v5365_v23, %v1567_v13  ;;  %v1910_v23 = vrot.slane %v1897_v21, %v6736_v20 }
 0x37c   : > { %v1582_v27 = vmul.f32 %v4532_v24, %v1575_v25  ;;  %v1923_v24 = vsub.s32 2, %v6732_v17  ;;  %v1917_v25 = vrot.slane %v1897_v21, %v1916_v22 }
 0x37e   : > { %v1589_v28 = vadd.f32 %v4533_v26, %v1582_v27  ;;  %v1930_v26 = vsub.s32 3, %v6732_v17  ;;  %v4544_v27 = vld [vmem:[#allocation19] ss:$0 sm:$0xff]  ;;  %v1924_v31 = vrot.slane %v1897_v21, %v1923_v24 }
 0x380   : > { %4808 = vmatmul.mubr.msk.f32.vlgmr.msra.gmra.mxu1 %vm1457_vm0, %v1589_v28  ;;  %v1931_v36 = vrot.slane %v1897_v21, %v1930_v26 }
 0x381   : > { %4837 = vmatprep.mubr.msk.f32.mxu1 %vm6157_vm1, %v6156_v0  ;;  %4830 = vmatpush3.msra.mxu1 %v1804_v58 }
 0x382   : > { %4831 = vmatprep.subr.mxu1 %v6156_v0 }
 0x383   : > { %4832 = vmatpush3.msra.mxu1 %v1803_v59 }
 0x384   : > { %4833 = vmatprep.subr.mxu1 %v6156_v0 }
 0x385   : > { %4834 = vmatpush3.msra.mxu1 %v1802_v60 }
 0x386   : > { %4835 = vmatprep.subr.mxu1 %v6156_v0 }
 0x387   : > { %4836 = vmatpush3.msra.mxu1 %v1801_v61 }
 0x388   : > { %4840 = vmatprep.subr.mxu1 %v6156_v0 }
 0x440   : > { %v1670_v38 = vpop.f32.mrf.mxu1 }
 0x441   : > { %v1671_v39 = vadd.f32 %v4534_v37, %v1670_v38  ;;  %v1944_v37 = vsub.s32 5, %v6732_v17 }
 0x442   : > { %v4809_v40 = vpop.f32.mrf.mxu1 }
 0x443   : > { %v4536_v41 = vmul.f32 -1.442695, %v1671_v39 }
 0x445   : > { %5366 = vpow2.f32 %v4536_v41  ;;  %v1938_v41 = vrot.slane %v1897_v21, %v1937_v32 }
 0x452   : > { %v5367_v42 = vpop.eup %5366 }
 0x453   : > { %v1677_v43 = vadd.f32 1.0, %v5367_v42  ;;  %v1951_v42 = vsub.s32 6, %v6732_v17 }
 0x455   : > { %5368 = vrcp.f32 %v1677_v43 }
 0x462   : > { %v5369_v44 = vpop.eup %5368 }
 0x463   : > { %v1680_v45 = vmul.f32 %v5369_v44, %v1671_v39 }
 0x465   : > { %4827 = vmatmul.mubr.msk.f32.vlgmr.msra.gmra.mxu0 %vm1696_vm2, %v1680_v45 }
 0x466   : > { %4859 = vmatprep.mubr.msk.f32.mxu0 %vm6157_vm1, %v6156_v0 }
 0x525   : > { %v1766_v47 = vpop.f32.mrf.mxu0 }
 0x526   : > { %v1767_v48 = vadd.f32 %v4537_v46, %v1766_v47  ;;  %v1945_v46 = vrot.slane %v1897_v21, %v1944_v37 }
 0x527   : > { %v4828_v49 = vpop.f32.mrf.mxu0 }
 0x528   : > { %v1770_v50 = vmul.f32 0.5, %v1767_v48 }
 0x52a   : > { %v6712_v51 = vadd.f32 %v1770_v50, %v6675_v8  ;;  %v4541_v8 = vld [vmem:[%s7333_s11] ss:$0 sm:$0xff]  ;;  %v1952_v50 = vrot.slane %v1897_v21, %v1951_v42 }
 0x52c   : > { %v1774_v52 = vsel %vm1457_vm0, %v6712_v51, 0.0 }
 0x52d   : > { %1775 = vadd.xlane.f32.xlu1 %v1774_v52 }
 0x5b6   : > { %v1776_v53 = vpop.xlane.xlu1 %1775 }
 0x5b7   : > { %v1777_v54 = vmul.f32 0.03125, %v1776_v53 }
 0x5b9   : > { %v1778_v55 = vsub.f32 %v6712_v51, %v1777_v54 }
 0x5bb   : > { %v1779_v56 = vmul.f32 %v1778_v55, %v1778_v55 }
 0x5bd   : > { %v1780_v57 = vsel %vm1457_vm0, %v1779_v56, 0.0 }
 0x5be   : > { %1781 = vadd.xlane.f32.xlu1 %v1780_v57 }
 0x647   : > { %v1782_v62 = vpop.xlane.xlu1 %1781 }
 0x648   : > { %v1783_v63 = vmul.f32 0.03125, %v1782_v62 }
 0x64a   : > { %v1784_v1 = vadd.f32 1e-05, %v1783_v63 }
 0x64c   : > { %5370 = vrsqrt.f32 %v1784_v1 }
 0x659   : > { %v5371_v2 = vpop.eup %5370 }
 0x65a   : > { %v1786_v4 = vmul.f32 %v5371_v2, %v1778_v55 }
 0x65c   : > { %v1793_v6 = vmul.f32 %v4539_v3, %v1786_v4 }
 0x65e   : > { %v1800_v7 = vadd.f32 %v4540_v5, %v1793_v6 }
 0x660   : > { %4838 = vmatmul.mubr.msk.f32.vlgmr.msra.gmra.mxu1 %vm1457_vm0, %v1800_v7 }
 0x661   : > { %4848 = vmatprep.mubr.msk.f32.mxu1 %vm6157_vm1, %v6156_v0 }
 0x720   : > { %v1881_v9 = vpop.f32.mrf.mxu1 }
 0x721   : > { %v1882_v10 = vadd.f32 %v4541_v8, %v1881_v9  ;;  %v2011_v8 = vld [vmem:[%s7335_s21 + $0x18] sm:$0xff]  ;;  %v2010_v9 = vld [vmem:[%s7335_s21 + $0x10] sm:$0xff] }
 0x722   : > { %v4839_v11 = vpop.f32.mrf.mxu1  ;;  %4841 = vmatpush3.msra.mxu1 %v2011_v8 }
 0x723   : > { %v4543_v12 = vmul.f32 -1.442695, %v1882_v10  ;;  %4842 = vmatprep.subr.mxu1 %v6156_v0  ;;  %v2008_v11 = vld [vmem:[%s7335_s21] sm:$0xff] }
 0x724   : > { %4843 = vmatpush3.msra.mxu1 %v2010_v9  ;;  %v4552_v9 = vld [vmem:[#allocation10] ss:$0 sm:$0xff] }
 0x725   : > { %5372 = vpow2.f32 %v4543_v12  ;;  %4844 = vmatprep.subr.mxu1 %v6156_v0 }
 0x732   : > { %v5373_v13 = vpop.eup %5372 }
 0x733   : > { %v1888_v14 = vadd.f32 1.0, %v5373_v13 }
 0x735   : > { %5374 = vrcp.f32 %v1888_v14 }
 0x742   : > { %v5375_v15 = vpop.eup %5374 }
 0x743   : > { %1892 = vrot.lane.b32.xlu0 %v5375_v15, %s7242_s2 }
 0x7b5   : > { %v1893_v18 = vpop.permute.xlu0 %1892 }
 0x7b6   : > { %v1895_v19 = vmul.f32 %v1893_v18, %v1882_v10  ;;  %v2009_v10 = vld [vmem:[%s7335_s21 + $0x8] sm:$0xff] }
 0x7b7   : > { %4845 = vmatpush3.msra.mxu1 %v2009_v10 }
 0x7b8   : > { %1896 = vst.msk [vmem:[#allocation2 + $0x8] sm:$0xff] %vm1457_vm0, %v1895_v19  ;;  %4846 = vmatprep.subr.mxu1 %v6156_v0 }
 0x7b9   : > { %4847 = vmatpush3.msra.mxu1 %v2008_v11 }
 0x7ba   : > { %4862 = vmatprep.subr.mxu1 %v6156_v0 }
 0x7bf   : > { %v1906_v28 = vld [vmem:[#allocation2 + $0x5] sm:$0xff] }
 0x7c0   : > { %v1913_v29 = vld [vmem:[#allocation2 + $0x6] sm:$0xff]  ;;  %v1911_v30 = vmul.f32 %v1910_v23, %v1906_v28 }
 0x7c1   : > { %v1920_v33 = vld [vmem:[#allocation2 + $0x7] sm:$0xff]  ;;  %v1918_v35 = vmul.f32 %v1917_v25, %v1913_v29  ;;  %v4545_v29 = vld [vmem:[#allocation32] ss:$0 sm:$0xff] }
 0x7c2   : > { %v1912_v34 = vadd.f32 %v4544_v27, %v1911_v30  ;;  %v1927_v38 = vld [vmem:[#allocation2 + $0x8] sm:$0xff]  ;;  %v1925_v40 = vmul.f32 %v1924_v31, %v1920_v33  ;;  %v4546_v31 = vld [vmem:[%s7336_s16] ss:$0 sm:$0xff] }
 0x7c3   : > { %v1934_v43 = vld [vmem:[#allocation2 + $0x9] sm:$0xff]  ;;  %v1932_v45 = vmul.f32 %v1931_v36, %v1927_v38 }
 0x7c4   : > { %v1919_v39 = vadd.f32 %v1918_v35, %v1912_v34  ;;  %v1941_v47 = vld [vmem:[#allocation2 + $0xa] sm:$0xff]  ;;  %v1939_v49 = vmul.f32 %v1938_v41, %v1934_v43  ;;  %v4548_v41 = vld [vmem:[%s7337_s7] ss:$0 sm:$0xff] }
 0x7c5   : > { %v1948_v52 = vld [vmem:[#allocation2 + $0xb] sm:$0xff]  ;;  %v1946_v54 = vmul.f32 %v1945_v46, %v1941_v47 }
 0x7c6   : > { %v1926_v44 = vadd.f32 %v1925_v40, %v1919_v39  ;;  %v1953_v56 = vmul.f32 %v1952_v50, %v1948_v52 }
 0x7c8   : > { %v1933_v48 = vadd.f32 %v1932_v45, %v1926_v44 }
 0x7ca   : > { %v1940_v53 = vadd.f32 %v1939_v49, %v1933_v48 }
 0x7cc   : > { %v1947_v55 = vadd.f32 %v1946_v54, %v1940_v53  ;;  %v2125_v54 = vld [vmem:[%s7338_s23 + $0x18] sm:$0xff] }
 0x7cd   : > { %4852 = vmatpush3.msra.mxu0 %v2125_v54 }
 0x7ce   : > { %v1954_v57 = vadd.f32 %v1953_v56, %v1947_v55  ;;  %4853 = vmatprep.subr.mxu0 %v6156_v0 }
 0x7d0   : > { %v1955_v58 = vsel %vm1457_vm0, %v1954_v57, 0.0 }
 0x7d1   : > { %1956 = vadd.xlane.f32.xlu1 %v1955_v58  ;;  %v6792_v58 = vld [vmem:[%s6368_s15 + $0x18] sm:$0xff] }
 0x85a   : > { %v1957_v59 = vpop.xlane.xlu1 %1956 }
 0x85b   : > { %v1958_v60 = vrot.slane %v1957_v59, 4 }
 0x85d   : > { %v1959_v61 = vadd.f32 %v1958_v60, %v1957_v59  ;;  %v6795_v59 = vld [vmem:[%s6368_s15 + $0x8] sm:$0xff]  ;;  %v6801_v60 = vld [vmem:[%s6368_s15] sm:$0xff] }
 0x85f   : > { %v1960_v62 = vrot.slane %v1959_v61, 2 }
 0x861   : > { %v1961_v63 = vadd.f32 %v1960_v62, %v1959_v61 }
 0x863   : > { %v1962_v1 = vrot.slane %v1961_v63, 1 }
 0x865   : > { %v1963_v2 = vadd.f32 %v1962_v1, %v1961_v63 }
 0x867   : > { %5062 = vpush %v1963_v2  ;;  %v4550_v2 = vld [vmem:[#allocation13] ss:$0 sm:$0xff] }
 0x898   : > { %s5063_s22 = spop %5062 }
 0x899   : > { %v1965_v3 = vstv %s5063_s22  ;;  %s7339_s22 = smov %s7338_s23  ;;  %s1531_s23 = sld [smem:[#allocation4 + %s6396_s4]] }
 0x89a   : > { %v1967_v4 = vmul.f32 0.00390625, %v1965_v3  ;;  %v2124_v55 = vld [vmem:[%s7339_s22 + $0x10] sm:$0xff]  ;;  %v2122_v56 = vld [vmem:[%s7339_s22] sm:$0xff] }
 0x89b   : > { %4854 = vmatpush3.msra.mxu0 %v2124_v55 }
 0x89c   : > { %v1968_v5 = vsub.f32 %v1954_v57, %v1967_v4  ;;  %4855 = vmatprep.subr.mxu0 %v6156_v0  ;;  %v6788_v57 = vld [vmem:[%s6368_s15 + $0x10] sm:$0xff]  ;;  %v4551_v4 = vld [vmem:[#allocation11] ss:$0 sm:$0xff] }
 0x89e   : > { %v1969_v6 = vmul.f32 %v1968_v5, %v1968_v5 }
 0x8a0   : > { %v1970_v7 = vsel %vm1457_vm0, %v1969_v6, 0.0 }
 0x8a1   : > { %1971 = vadd.xlane.f32.xlu1 %v1970_v7 }
 0x92a   : > { %v1972_v12 = vpop.xlane.xlu1 %1971 }
 0x92b   : > { %v1973_v13 = vrot.slane %v1972_v12, 4 }
 0x92d   : > { %v1974_v14 = vadd.f32 %v1973_v13, %v1972_v12 }
 0x92f   : > { %v1975_v15 = vrot.slane %v1974_v14, 2 }
 0x931   : > { %v1976_v18 = vadd.f32 %v1975_v15, %v1974_v14 }
 0x933   : > { %v1977_v19 = vrot.slane %v1976_v18, 1 }
 0x935   : > { %v1978_v21 = vadd.f32 %v1977_v19, %v1976_v18 }
 0x937   : > { %5064 = vpush %v1978_v21 }
 0x968   : > { %s5065_s0 = spop %5064 }
 0x969   : > { %v1980_v23 = vstv %s5065_s0  ;;  %s6159_s0 = smov 32  }
 0x96a   : > { %v1981_v25 = vmul.f32 0.00390625, %v1980_v23  ;;  %2214 = vrot.lane.b32.xlu0 %v6788_v57, %s6159_s0  ;;  %v1533_v23 = vand.u32 127, %v1532_v16 }
 0x96c   : > { %v1982_v27 = vadd.f32 1e-05, %v1981_v25  ;;  %v1534_v25 = vstv %s1531_s23  ;;  %s7237_s23 = smov 104  }
 0x96d   : > { %vm1535_vm3 = vcmp.lt.s32.totalorder %v1533_v23, %v1534_v25 }
 0x96e   : > { %5376 = vrsqrt.f32 %v1982_v27  ;;  %2212 = vrot.lane.b32.xlu0 %v6795_v59, %s6159_s0  ;;  %v6160_v27 = vmov -1e+30  }
 0x972   : > { %2210 = vrot.lane.b32.xlu0 %v6801_v60, %s6159_s0 }
 0x97b   : > { %v5377_v28 = vpop.eup %5376 }
 0x97c   : > { %v1984_v30 = vmul.f32 %v5377_v28, %v1968_v5  ;;  %v1536_v28 = vsel %vm1535_vm3, 0.0, %v6160_v27 }
 0x97e   : > { %v1992_v33 = vmul.f32 %v4545_v29, %v1984_v30 }
 0x980   : > { %v2000_v34 = vadd.f32 %v4546_v31, %v1992_v33 }
 0x982   : > { %v4547_v35 = vmul.f32 -1.442695, %v2000_v34 }
 0x984   : > { %5378 = vpow2.f32 %v4547_v35 }
 0x991   : > { %v5379_v36 = vpop.eup %5378 }
 0x992   : > { %v2004_v38 = vadd.f32 1.0, %v5379_v36 }
 0x994   : > { %5380 = vrcp.f32 %v2004_v38 }
 0x9a1   : > { %v5381_v39 = vpop.eup %5380 }
 0x9a2   : > { %v2007_v40 = vmul.f32 %v5381_v39, %v2000_v34 }
 0x9a4   : > { %4849 = vmatmul.mubr.msk.f32.vlgmr.msra.gmra.mxu1 %vm1457_vm0, %v2007_v40 }
 0x9a5   : > { %4870 = vmatprep.mubr.msk.f32.mxu1 %vm6157_vm1, %v6156_v0 }
 0x9dc   : > { %v6807_v7 = vpop.permute.xlu0 %2214 }
 0x9e0   : > { %v6809_v8 = vpop.permute.xlu0 %2212 }
 0x9e4   : > { %v6819_v18 = vpop.permute.xlu0 %2210 }
 0xa64   : > { %v2088_v43 = vpop.f32.mrf.mxu1 }
 0xa65   : > { %v2089_v44 = vadd.f32 %v4548_v41, %v2088_v43 }
 0xa66   : > { %v4850_v45 = vpop.f32.mrf.mxu1 }
 0xa67   : > { %v6774_v46 = vadd.f32 %v2089_v44, %v6712_v51  ;;  %v2123_v51 = vld [vmem:[%s7339_s22 + $0x8] sm:$0xff] }
 0xa68   : > { %4856 = vmatpush3.msra.mxu0 %v2123_v51 }
 0xa69   : > { %v2095_v47 = vsel %vm1457_vm0, %v6774_v46, 0.0  ;;  %4857 = vmatprep.subr.mxu0 %v6156_v0 }
 0xa6a   : > { %2096 = vadd.xlane.f32.xlu1 %v2095_v47  ;;  %4858 = vmatpush3.msra.mxu0 %v2122_v56 }
 0xa6b   : > { %4873 = vmatprep.subr.mxu0 %v6156_v0 }
 0xaf3   : > { %v2097_v48 = vpop.xlane.xlu1 %2096 }
 0xaf4   : > { %v2098_v49 = vmul.f32 0.03125, %v2097_v48 }
 0xaf6   : > { %v2099_v50 = vsub.f32 %v6774_v46, %v2098_v49 }
 0xaf8   : > { %v2100_v52 = vmul.f32 %v2099_v50, %v2099_v50 }
 0xafa   : > { %v2101_v53 = vsel %vm1457_vm0, %v2100_v52, 0.0 }
 0xafb   : > { %2102 = vadd.xlane.f32.xlu1 %v2101_v53 }
 0xb0c   : > { %2216 = vrot.lane.b32.xlu1 %v6792_v58, %s6159_s0  ;;  %s6161_s0 = smov 8  }
 0xb84   : > { %v2103_v61 = vpop.xlane.xlu1 %2102 }
 0xb85   : > { %v2104_v62 = vmul.f32 0.03125, %v2103_v61 }
 0xb87   : > { %v2105_v63 = vadd.f32 1e-05, %v2104_v62 }
 0xb88   : > { %v6811_v11 = vpop.permute.xlu1 %2216 }
 0xb89   : > { %5382 = vrsqrt.f32 %v2105_v63 }
 0xb96   : > { %v5383_v1 = vpop.eup %5382 }
 0xb97   : > { %v2107_v3 = vmul.f32 %v5383_v1, %v2099_v50 }
 0xb99   : > { %v2114_v5 = vmul.f32 %v4550_v2, %v2107_v3 }
 0xb9b   : > { %v2121_v6 = vadd.f32 %v4551_v4, %v2114_v5 }
 0xb9d   : > { %4860 = vmatmul.mubr.msk.f32.vlgmr.msra.gmra.mxu0 %vm1457_vm0, %v2121_v6 }
 0xb9e   : > { %4881 = vmatprep.mubr.msk.f32.mxu0 %vm6157_vm1, %v6156_v0 }
 0xc5d   : > { %v2202_v10 = vpop.f32.mrf.mxu0 }
 0xc5e   : > { %v6813_v12 = vadd.f32 %v4552_v9, %v2202_v10 }
 0xc5f   : > { %v4861_v13 = vpop.f32.mrf.mxu0 }
 0xc60   : > { %v2225_v14 = vmul.f32 %v6811_v11, %v6813_v12  ;;  %v2224_v15 = vmul.f32 %v6807_v7, %v6813_v12  ;;  %v2222_v19 = vmul.f32 %v6819_v18, %v6813_v12  ;;  %v2223_v21 = vmul.f32 %v6809_v8, %v6813_v12 }
 0xc62   : > { %2252 = vrot.lane.b32.xlu1 %v2225_v14, %s7242_s2  ;;  %2250 = vrot.lane.b32.xlu0 %v2224_v15, %s7242_s2 }
 0xc66   : > { %2248 = vrot.lane.b32.xlu1 %v2223_v21, %s7242_s2  ;;  %2246 = vrot.lane.b32.xlu0 %v2222_v19, %s7242_s2 }
 0xc6a   : > { %1538 = vrot.lane.b32.xlu1 %v1536_v28, %s6161_s0  ;;  %1541 = vrot.lane.b32.xlu0 %v1536_v28, %s6162_s6  ;;  %s7238_s6 = smov 120   ;;  %s7240_s0 = smov 64  }
 0xc6e   : > { %1544 = vrot.lane.b32.xlu1 %v1536_v28, %s6163_s9  ;;  %s7239_s9 = smov 112  }
 0xcd4   : > { %v2253_v29 = vpop.permute.xlu1 %2252  ;;  %v2251_v30 = vpop.permute.xlu0 %2250 }
 0xcd5   : > { %4863 = vmatpush3.xpose.msk.msra.mxu1 %vm1457_vm0, %v2253_v29 }
 0xcd6   : > { %4864 = vmatprep.subr.mxu1 %v6156_v0 }
 0xcd8   : > { %v2249_v16 = vpop.permute.xlu1 %2248  ;;  %v2247_v31 = vpop.permute.xlu0 %2246 }
 0xcd9   : > { %4865 = vmatpush3.xpose.msk.msra.mxu1 %vm1457_vm0, %v2251_v30 }
 0xcda   : > { %4866 = vmatprep.subr.mxu1 %v6156_v0 }
 0xcdc   : > { %v1539_v33 = vpop.permute.xlu1 %1538  ;;  %v1542_v35 = vpop.permute.xlu0 %1541 }
 0xcdd   : > { %4867 = vmatpush3.xpose.msk.msra.mxu1 %vm1457_vm0, %v2249_v16  ;;  %v1548_v34 = vsel %vm1547_vm4, %v1536_v28, %v1539_v33 }
 0xcde   : > { %4868 = vmatprep.subr.mxu1 %v6156_v0  ;;  %v1550_v36 = vsel %vm1549_vm5, %v1548_v34, %v1542_v35 }
 0xce0   : > { %v1545_v38 = vpop.permute.xlu1 %1544 }
 0xce1   : > { %4869 = vmatpush3.xpose.msk.msra.mxu1 %vm1457_vm0, %v2247_v31  ;;  %v1552_v39 = vsel %vm1551_vm6, %v1550_v36, %v1545_v38 }
 0xce2   : > { %4895 = vmatprep.subr.mxu1 %v6156_v0  ;;  %v6847_v41 = vrot.slane %v1552_v39, %v6736_v20 }
 0xce4   : > { %4871 = vmatmul.mubr.msk.f32.vlgmr.msra.gmra.mxu1 %vm1457_vm0, %v6813_v12 }
 0xce5   : > { %4903 = vmatprep.mubr.msk.f32.mxu1 %vm6157_vm1, %v6156_v0 }
 0xda4   : > { %v2331_v40 = vpop.f32.mrf.mxu1 }
 0xda5   : > { %v2335_v43 = vmul.f32 0.35355338, %v2331_v40 }
 0xda6   : > { %v4872_v44 = vpop.f32.mrf.mxu1 }
 0xda7   : > { %v2340_v45 = vadd.f32 %v6847_v41, %v2335_v43 }
 0xda9   : > { %v2369_v47 = vsel %vm2368_vm7, %v2340_v45, -inf  ;;  %v2353_v48 = vsel %vm2352_vm8, %v2340_v45, -inf  ;;  %v2385_v49 = vsel %vm2384_vm9, %v2340_v45, -inf  ;;  %v2341_v50 = vsel %vm1547_vm4, %v2340_v45, -inf }
 0xdaa   : > { %2370 = vmax.xlane.f32.xlu1 %v2369_v47  ;;  %2354 = vmax.xlane.f32.xlu0 %v2353_v48 }
 0xdae   : > { %2386 = vmax.xlane.f32.xlu0 %v2385_v49 }
 0xdb2   : > { %2342 = vmax.xlane.f32.xlu0 %v2341_v50 }
 0xe33   : > { %v2371_v52 = vpop.xlane.xlu1 %2370  ;;  %v2355_v53 = vpop.xlane.xlu0 %2354 }
 0xe34   : > { %v2372_v54 = vsub.f32 %v2340_v45, %v2371_v52  ;;  %v2356_v55 = vsub.f32 %v2340_v45, %v2355_v53 }
 0xe36   : > { %v2373_v51 = vmul.f32 1.442695, %v2372_v54  ;;  %v2357_v56 = vmul.f32 1.442695, %v2356_v55 }
 0xe37   : > { %v2387_v61 = vpop.xlane.xlu0 %2386 }
 0xe38   : > { %5384 = vpow2.f32 %v2373_v51  ;;  %v2388_v62 = vsub.f32 %v2340_v45, %v2387_v61 }
 0xe39   : > { %5386 = vpow2.f32 %v2357_v56 }
 0xe3a   : > { %v2389_v63 = vmul.f32 1.442695, %v2388_v62  ;;  %v4560_v62 = vld [vmem:[#allocation14] ss:$0 sm:$0xff] }
 0xe3b   : > { %v2343_v4 = vpop.xlane.xlu0 %2342 }
 0xe3c   : > { %5388 = vpow2.f32 %v2389_v63 }
 0xe45   : > { %v6854_v1 = vpop.eup %5384 }
 0xe46   : > { %v6856_v2 = vpop.eup %5386  ;;  %2376 = vrot.lane.b32.xlu1 %v6854_v1, %s7239_s9 }
 0xe47   : > { %2360 = vrot.lane.b32.xlu0 %v6856_v2, %s7238_s6 }
 0xe49   : > { %v6862_v3 = vpop.eup %5388 }
 0xe4a   : > { %2392 = vrot.lane.b32.xlu1 %v6862_v3, %s7237_s23  ;;  %s7340_s23 = sld [smem:[#allocation57_spill]] }
 0xe4b   : > { %2230 = vrot.lane.b32.xlu0 %v6788_v57, %s7240_s0 }
 0xe4e   : > { %2232 = vrot.lane.b32.xlu1 %v6792_v58, %s7240_s0 }
 0xe4f   : > { %2226 = vrot.lane.b32.xlu0 %v6801_v60, %s7240_s0 }
 0xe50   : > { %s7341_s6 = smov %s7340_s23  ;;  %v2495_v52 = vld [vmem:[%s7340_s23 + $0x18] sm:$0xff]  ;;  %s7342_s23 = sld [smem:[#allocation69_spill]] }
 0xe51   : > { %v2494_v54 = vld [vmem:[%s7341_s6 + $0x10] sm:$0xff]  ;;  %v2493_v55 = vld [vmem:[%s7341_s6 + $0x8] sm:$0xff]  ;;  %v2492_v51 = vld [vmem:[%s7341_s6] sm:$0xff] }
 0xe52   : > { %2228 = vrot.lane.b32.xlu1 %v6795_v59, %s7240_s0  ;;  %v2344_v59 = vsub.f32 %v2340_v45, %v2343_v4 }
 0xe54   : > { %v2345_v14 = vmul.f32 1.442695, %v2344_v59 }
 0xe56   : > { %5390 = vpow2.f32 %v2345_v14  ;;  %s7343_s9 = smov %s7342_s23 }
 0xe57   : > { %v2606_v59 = vld [vmem:[%s7343_s9] sm:$0xff] }
 0xe63   : > { %v5391_v21 = vpop.eup %5390 }
 0xe64   : > { %v2347_v23 = vsel %vm1547_vm4, %v5391_v21, 0.0 }
 0xeb8   : > { %v2377_v5 = vpop.permute.xlu1 %2376 }
 0xeb9   : > { %v2361_v6 = vpop.permute.xlu0 %2360  ;;  %v2379_v13 = vsel %vm1547_vm4, %v2377_v5, 0.0 }
 0xeba   : > { %v2363_v9 = vsel %vm1547_vm4, %v2361_v6, 0.0 }
 0xebb   : > { %2364 = vadd.xlane.f32.xlu0 %v2363_v9 }
 0xebc   : > { %v2393_v10 = vpop.permute.xlu1 %2392 }
 0xebd   : > { %v2395_v60 = vsel %vm1547_vm4, %v2393_v10, 0.0  ;;  %v6882_v15 = vpop.permute.xlu0 %2230 }
 0xebe   : > { %v2240_v19 = vmul.f32 %v6882_v15, %v6813_v12 }
 0xebf   : > { %2380 = vadd.xlane.f32.xlu0 %v2379_v13 }
 0xec0   : > { %v6876_v57 = vpop.permute.xlu1 %2232 }
 0xec1   : > { %v2241_v58 = vmul.f32 %v6876_v57, %v6813_v12  ;;  %v6892_v28 = vpop.permute.xlu0 %2226 }
 0xec2   : > { %v2238_v29 = vmul.f32 %v6892_v28, %v6813_v12 }
 0xec3   : > { %2396 = vadd.xlane.f32.xlu0 %v2395_v60  ;;  %2413 = vrot.lane.b32.xlu1 %v2241_v58, %s7240_s0  ;;  %v2609_v58 = vld [vmem:[%s7342_s23 + $0x18] sm:$0xff]  ;;  %v2608_v60 = vld [vmem:[%s7343_s9 + $0x10] sm:$0xff] }
 0xec4   : > { %v6888_v25 = vpop.permute.xlu1 %2228  ;;  %4896 = vmatpush3.msra.mxu1 %v2609_v58 }
 0xec5   : > { %v2239_v27 = vmul.f32 %v6888_v25, %v6813_v12  ;;  %4897 = vmatprep.subr.mxu1 %v6156_v0 }
 0xec6   : > { %4898 = vmatpush3.msra.mxu1 %v2608_v60  ;;  %v4569_v60 = vld [vmem:[#allocation35] ss:$0 sm:$0xff] }
 0xec7   : > { %4899 = vmatprep.subr.mxu1 %v6156_v0 }
 0xed9   : > { %2411 = vrot.lane.b32.xlu0 %v2240_v19, %s7240_s0 }
 0xee7   : > { %2348 = vadd.xlane.f32.xlu1 %v2347_v23 }
 0xef8   : > { %2409 = vrot.lane.b32.xlu1 %v2239_v27, %s7240_s0  ;;  %v4562_v27 = vld [vmem:[#allocation31] ss:$0 sm:$0xff] }
 0xefc   : > { %2407 = vrot.lane.b32.xlu1 %v2238_v29, %s7240_s0  ;;  %s7344_s0 = sld [smem:[#allocation70_spill]] }
 0xf02   : > { %s7345_s2 = smov %s7344_s0 }
 0xf35   : > { %v2414_v30 = vpop.permute.xlu1 %2413 }
 0xf36   : > { %4874 = vmatpush3.msra.mxu0 %v2414_v30  ;;  %v4563_v30 = vld [vmem:[#allocation29] ss:$0 sm:$0xff] }
 0xf37   : > { %4875 = vmatprep.subr.mxu0 %v6156_v0 }
 0xf44   : > { %v2365_v16 = vpop.xlane.xlu0 %2364 }
 0xf45   : > { %5392 = vrcp.f32 %v2365_v16 }
 0xf48   : > { %v2381_v31 = vpop.xlane.xlu0 %2380 }
 0xf49   : > { %5394 = vrcp.f32 %v2381_v31 }
 0xf4c   : > { %v2397_v33 = vpop.xlane.xlu0 %2396 }
 0xf4d   : > { %5396 = vrcp.f32 %v2397_v33  ;;  %v2704_v33 = vld [vmem:[%s7344_s0 + $0x38] sm:$0xff]  ;;  %s7346_s0 = smov 96  }
 0xf50   : > { %v2412_v34 = vpop.permute.xlu0 %2411 }
 0xf51   : > { %4876 = vmatpush3.msra.mxu0 %v2412_v34  ;;  %v2703_v34 = vld [vmem:[%s7345_s2 + $0x30] sm:$0xff] }
 0xf52   : > { %4877 = vmatprep.subr.mxu0 %v6156_v0  ;;  %v5393_v38 = vpop.eup %5392 }
 0xf53   : > { %v2367_v44 = vmul.f32 %v5393_v38, %v6856_v2  ;;  %v2699_v38 = vld [vmem:[%s7345_s2 + $0x10] sm:$0xff] }
 0xf56   : > { %v5395_v39 = vpop.eup %5394 }
 0xf57   : > { %v2383_v47 = vmul.f32 %v5395_v39, %v6854_v1  ;;  %v2698_v39 = vld [vmem:[%s7345_s2 + $0x8] sm:$0xff] }
 0xf5a   : > { %v5397_v40 = vpop.eup %5396 }
 0xf5b   : > { %v2399_v48 = vmul.f32 %v5397_v40, %v6862_v3  ;;  %v2697_v40 = vld [vmem:[%s7345_s2] sm:$0xff] }
 0xf70   : > { %v2349_v35 = vpop.xlane.xlu1 %2348 }
 0xf71   : > { %5398 = vrcp.f32 %v2349_v35  ;;  %v2702_v35 = vld [vmem:[%s7345_s2 + $0x28] sm:$0xff] }
 0xf74   : > { %v2410_v36 = vpop.permute.xlu1 %2409 }
 0xf75   : > { %4878 = vmatpush3.msra.mxu0 %v2410_v36  ;;  %v2701_v36 = vld [vmem:[%s7345_s2 + $0x20] sm:$0xff] }
 0xf76   : > { %4879 = vmatprep.subr.mxu0 %v6156_v0 }
 0xf78   : > { %v2408_v12 = vpop.permute.xlu1 %2407 }
 0xf79   : > { %4880 = vmatpush3.msra.mxu0 %v2408_v12  ;;  %v2700_v12 = vld [vmem:[%s7345_s2 + $0x18] sm:$0xff] }
 0xf7a   : > { %4884 = vmatprep.subr.mxu0 %v6156_v0 }
 0xf7e   : > { %v5399_v43 = vpop.eup %5398 }
 0xf7f   : > { %v2351_v45 = vmul.f32 %v5399_v43, %v5391_v21  ;;  %v4564_v43 = vld [vmem:[#allocation26] ss:$0 sm:$0xff] }
 0xf81   : > { %v2400_v49 = vsel %vm1547_vm4, %v2351_v45, %v2367_v44 }
 0xf82   : > { %v2401_v50 = vsel %vm1549_vm5, %v2400_v49, %v2383_v47 }
 0xf83   : > { %v2402_v53 = vsel %vm1551_vm6, %v2401_v50, %v2399_v48 }
 0xf84   : > { %4882 = vmatmul.mubr.msk.f32.vlgmr.msra.gmra.mxu0 %vm1457_vm0, %v2402_v53 }
 0xf85   : > { %4885 = vmatpush3.msra.mxu0 %v2495_v52  ;;  %4892 = vmatprep.mubr.msk.f32.mxu0 %vm6157_vm1, %v6156_v0 }
 0xf86   : > { %4886 = vmatprep.subr.mxu0 %v6156_v0 }
 0xf87   : > { %4887 = vmatpush3.msra.mxu0 %v2494_v54  ;;  %v4567_v54 = vld [vmem:[#allocation28] ss:$0 sm:$0xff] }
 0xf88   : > { %4888 = vmatprep.subr.mxu0 %v6156_v0 }
 0xf89   : > { %4889 = vmatpush3.msra.mxu0 %v2493_v55 }
 0xf8a   : > { %4890 = vmatprep.subr.mxu0 %v6156_v0 }
 0xf8b   : > { %4891 = vmatpush3.msra.mxu0 %v2492_v51 }
 0xf8c   : > { %4906 = vmatprep.subr.mxu0 %v6156_v0 }
0x1044   : > { %v2488_v56 = vpop.f32.mrf.mxu0 }
0x1045   : > { %4893 = vmatmul.mubr.msk.f32.vlgmr.msra.gmra.mxu0 %vm1457_vm0, %v2488_v56 }
0x1046   : > { %v4883_v61 = vpop.f32.mrf.mxu0  ;;  %4922 = vmatprep.mubr.msk.f32.mxu0 %vm6157_vm1, %v6156_v0  ;;  %4907 = vmatpush3.msra.mxu0 %v2704_v33  ;;  %v4574_v33 = vld [vmem:[%s7329_s5 + $0x28] sm:$0xff] }
0x1047   : > { %4908 = vmatprep.subr.mxu0 %v6156_v0 }
0x1048   : > { %4909 = vmatpush3.msra.mxu0 %v2703_v34  ;;  %v4573_v34 = vld [vmem:[%s7329_s5 + $0x20] sm:$0xff] }
0x1049   : > { %4910 = vmatprep.subr.mxu0 %v6156_v0 }
0x104a   : > { %4911 = vmatpush3.msra.mxu0 %v2702_v35 }
0x104b   : > { %4912 = vmatprep.subr.mxu0 %v6156_v0 }
0x104c   : > { %4913 = vmatpush3.msra.mxu0 %v2701_v36 }
0x104d   : > { %4914 = vmatprep.subr.mxu0 %v6156_v0 }
0x104e   : > { %4915 = vmatpush3.msra.mxu0 %v2700_v12 }
0x104f   : > { %4916 = vmatprep.subr.mxu0 %v6156_v0 }
0x1050   : > { %4917 = vmatpush3.msra.mxu0 %v2699_v38 }
0x1051   : > { %4918 = vmatprep.subr.mxu0 %v6156_v0 }
0x1052   : > { %4919 = vmatpush3.msra.mxu0 %v2698_v39  ;;  %v4571_v39 = vld [vmem:[#allocation25 + $0x1] ss:$0 sm:$0xff] }
0x1053   : > { %4920 = vmatprep.subr.mxu0 %v6156_v0 }
0x1054   : > { %4921 = vmatpush3.msra.mxu0 %v2697_v40 }
0x1055   : > { %4955 = vmatprep.subr.mxu0 %v6156_v0 }
0x1105   : > { %v2572_v63 = vpop.f32.mrf.mxu0 }
0x1106   : > { %v2573_v1 = vadd.f32 %v4560_v62, %v2572_v63 }
0x1107   : > { %v4894_v2 = vpop.f32.mrf.mxu0 }
0x1108   : > { %v6923_v3 = vadd.f32 %v2573_v1, %v6774_v46  ;;  %v2607_v46 = vld [vmem:[%s7343_s9 + $0x8] sm:$0xff] }
0x1109   : > { %4900 = vmatpush3.msra.mxu1 %v2607_v46 }
0x110a   : > { %v2579_v4 = vsel %vm1457_vm0, %v6923_v3, 0.0  ;;  %4901 = vmatprep.subr.mxu1 %v6156_v0 }
0x110b   : > { %2580 = vadd.xlane.f32.xlu1 %v2579_v4  ;;  %4902 = vmatpush3.msra.mxu1 %v2606_v59 }
0x110c   : > { %4925 = vmatprep.subr.mxu1 %v6156_v0 }
0x1194   : > { %v2581_v5 = vpop.xlane.xlu1 %2580 }
0x1195   : > { %v2582_v6 = vmul.f32 0.03125, %v2581_v5 }
0x1197   : > { %v2583_v9 = vsub.f32 %v6923_v3, %v2582_v6 }
0x1199   : > { %v2584_v10 = vmul.f32 %v2583_v9, %v2583_v9 }
0x119b   : > { %v2585_v13 = vsel %vm1457_vm0, %v2584_v10, 0.0 }
0x119c   : > { %2586 = vadd.xlane.f32.xlu0 %v2585_v13 }
0x1225   : > { %v2587_v14 = vpop.xlane.xlu0 %2586 }
0x1226   : > { %v2588_v19 = vmul.f32 0.03125, %v2587_v14 }
0x1228   : > { %v2589_v21 = vadd.f32 1e-05, %v2588_v19 }
0x122a   : > { %5400 = vrsqrt.f32 %v2589_v21 }
0x1237   : > { %v5401_v23 = vpop.eup %5400 }
0x1238   : > { %v2591_v29 = vmul.f32 %v5401_v23, %v2583_v9 }
0x123a   : > { %v2598_v16 = vmul.f32 %v4562_v27, %v2591_v29 }
0x123c   : > { %v2605_v31 = vadd.f32 %v4563_v30, %v2598_v16  ;;  %v4576_v16 = vld [vmem:[%s7329_s5 + $0x38] sm:$0xff] }
0x123e   : > { %4904 = vmatmul.mubr.msk.f32.vlgmr.msra.gmra.mxu1 %vm1457_vm0, %v2605_v31  ;;  %v4575_v31 = vld [vmem:[%s7329_s5 + $0x30] sm:$0xff]  ;;  %s7350_s5 = smov 64  }
0x123f   : > { %4933 = vmatprep.mubr.msk.f32.mxu1 %vm6157_vm1, %v6156_v0  ;;  %4926 = vmatpush3.msra.mxu1 %v4576_v16 }
0x1240   : > { %4927 = vmatprep.subr.mxu1 %v6156_v0 }
0x1241   : > { %4928 = vmatpush3.msra.mxu1 %v4575_v31 }
0x1242   : > { %4929 = vmatprep.subr.mxu1 %v6156_v0 }
0x1243   : > { %4930 = vmatpush3.msra.mxu1 %v4574_v33 }
0x1244   : > { %4931 = vmatprep.subr.mxu1 %v6156_v0 }
0x1245   : > { %4932 = vmatpush3.msra.mxu1 %v4573_v34 }
0x1246   : > { %4936 = vmatprep.subr.mxu1 %v6156_v0 }
0x12fe   : > { %v2686_v44 = vpop.f32.mrf.mxu1 }
0x12ff   : > { %v2687_v45 = vadd.f32 %v4564_v43, %v2686_v44  ;;  %v4572_v43 = vld [vmem:[#allocation23 + $0x1] ss:$0 sm:$0xff] }
0x1300   : > { %v4905_v47 = vpop.f32.mrf.mxu1 }
0x1301   : > { %v4566_v48 = vmul.f32 -1.442695, %v2687_v45  ;;  %v4587_v47 = vld [vmem:[%s7331_s28 + $0x78] sm:$0xff] }
0x1303   : > { %5402 = vpow2.f32 %v4566_v48  ;;  %v4586_v48 = vld [vmem:[%s7331_s28 + $0x70] sm:$0xff] }
0x1310   : > { %v5403_v49 = vpop.eup %5402 }
0x1311   : > { %v2693_v50 = vadd.f32 1.0, %v5403_v49  ;;  %v4585_v49 = vld [vmem:[%s7331_s28 + $0x68] sm:$0xff] }
0x1313   : > { %5404 = vrcp.f32 %v2693_v50  ;;  %v4584_v50 = vld [vmem:[%s7331_s28 + $0x60] sm:$0xff] }
0x1320   : > { %v5405_v52 = vpop.eup %5404 }
0x1321   : > { %v2696_v53 = vmul.f32 %v5405_v52, %v2687_v45  ;;  %v4583_v52 = vld [vmem:[%s7331_s28 + $0x58] sm:$0xff] }
0x1323   : > { %4923 = vmatmul.mubr.msk.f32.vlgmr.msra.gmra.mxu0 %vm1696_vm2, %v2696_v53  ;;  %v4582_v53 = vld [vmem:[%s7331_s28 + $0x50] sm:$0xff] }
0x1324   : > { %4963 = vmatprep.mubr.msk.f32.mxu0 %vm6157_vm1, %v6156_v0 }
0x13e3   : > { %v2781_v55 = vpop.f32.mrf.mxu0 }
0x13e4   : > { %v2782_v51 = vadd.f32 %v4567_v54, %v2781_v55  ;;  %v4581_v54 = vld [vmem:[%s7331_s28 + $0x48] sm:$0xff]  ;;  %v4580_v55 = vld [vmem:[%s7331_s28 + $0x40] sm:$0xff] }
0x13e5   : > { %v4924_v56 = vpop.f32.mrf.mxu0 }
0x13e6   : > { %v2785_v61 = vmul.f32 0.5, %v2782_v51  ;;  %v4577_v51 = vld [vmem:[#allocation20 + $0x1] ss:$0 sm:$0xff] }
0x13e8   : > { %v2786_v62 = vadd.f32 %v2785_v61, %v6923_v3  ;;  %v4570_v3 = vld [vmem:[#allocation34] ss:$0 sm:$0xff] }
0x13ea   : > { %v2789_v63 = vsel %vm1457_vm0, %v2786_v62, 0.0 }
0x13eb   : > { %2790 = vadd.xlane.f32.xlu0 %v2789_v63 }
0x1474   : > { %v2791_v1 = vpop.xlane.xlu0 %2790 }
0x1475   : > { %v2792_v2 = vmul.f32 0.03125, %v2791_v1 }
0x1477   : > { %v2793_v4 = vsub.f32 %v2786_v62, %v2792_v2 }
0x1479   : > { %v2794_v5 = vmul.f32 %v2793_v4, %v2793_v4 }
0x147b   : > { %v2795_v6 = vsel %vm1457_vm0, %v2794_v5, 0.0 }
0x147c   : > { %2796 = vadd.xlane.f32.xlu0 %v2795_v6  ;;  %v4588_v6 = vld [vmem:[#allocation22 + $0x1] ss:$0 sm:$0xff] }
0x1505   : > { %v2797_v9 = vpop.xlane.xlu0 %2796 }
0x1506   : > { %v2798_v10 = vmul.f32 0.03125, %v2797_v9 }
0x1508   : > { %v2799_v13 = vadd.f32 1e-05, %v2798_v10 }
0x150a   : > { %5406 = vrsqrt.f32 %v2799_v13 }
0x1517   : > { %v5407_v58 = vpop.eup %5406 }
0x1518   : > { %v2801_v46 = vmul.f32 %v5407_v58, %v2793_v4 }
0x151a   : > { %v2808_v59 = vmul.f32 %v4569_v60, %v2801_v46 }
0x151c   : > { %v6962_v14 = vadd.f32 %v4570_v3, %v2808_v59 }
0x151e   : > { %v2820_v19 = vsel %vm1457_vm0, %v6962_v14, 0.0 }
0x151f   : > { %2821 = vadd.xlane.f32.xlu1 %v2820_v19 }
0x15a8   : > { %v2822_v21 = vpop.xlane.xlu1 %2821 }
0x15a9   : > { %v2823_v23 = vmul.f32 0.03125, %v2822_v21 }
0x15ab   : > { %v2824_v27 = vsub.f32 %v6962_v14, %v2823_v23 }
0x15ad   : > { %v2825_v29 = vmul.f32 %v2824_v27, %v2824_v27 }
0x15af   : > { %v2826_v30 = vsel %vm1457_vm0, %v2825_v29, 0.0  ;;  %v4594_v29 = vld [vmem:[%s7332_s3 + $0x30] sm:$0xff] }
0x15b0   : > { %2827 = vadd.xlane.f32.xlu0 %v2826_v30  ;;  %v4592_v30 = vld [vmem:[%s7332_s3 + $0x20] sm:$0xff] }
0x1639   : > { %v2828_v35 = vpop.xlane.xlu0 %2827 }
0x163a   : > { %v2829_v36 = vmul.f32 0.03125, %v2828_v35  ;;  %v4590_v35 = vld [vmem:[#allocation17 + $0x1] ss:$0 sm:$0xff] }
0x163c   : > { %v2830_v12 = vadd.f32 1e-05, %v2829_v36 }
0x163e   : > { %5408 = vrsqrt.f32 %v2830_v12  ;;  %v4591_v12 = vld [vmem:[#allocation16 + $0x1] ss:$0 sm:$0xff] }
0x164b   : > { %v5409_v38 = vpop.eup %5408 }
0x164c   : > { %v2832_v40 = vmul.f32 %v5409_v38, %v2824_v27  ;;  %v4595_v27 = vld [vmem:[%s7332_s3 + $0x38] sm:$0xff] }
0x164d   : > { %4956 = vmatpush3.msra.mxu0 %v4595_v27 }
0x164e   : > { %v2839_v44 = vmul.f32 %v4571_v39, %v2832_v40  ;;  %4957 = vmatprep.subr.mxu0 %v6156_v0  ;;  %v4597_v40 = vld [vmem:[%s7333_s11 + $0x1] ss:$0 sm:$0xff] }
0x164f   : > { %4958 = vmatpush3.msra.mxu0 %v4594_v29 }
0x1650   : > { %v2846_v45 = vadd.f32 %v4572_v43, %v2839_v44  ;;  %4959 = vmatprep.subr.mxu0 %v6156_v0 }
0x1652   : > { %4934 = vmatmul.mubr.msk.f32.vlgmr.msra.gmra.mxu1 %vm1457_vm0, %v2846_v45 }
0x1653   : > { %4952 = vmatprep.mubr.msk.f32.mxu1 %vm6157_vm1, %v6156_v0  ;;  %4937 = vmatpush3.msra.mxu1 %v4587_v47 }
0x1654   : > { %4938 = vmatprep.subr.mxu1 %v6156_v0 }
0x1655   : > { %4939 = vmatpush3.msra.mxu1 %v4586_v48 }
0x1656   : > { %4940 = vmatprep.subr.mxu1 %v6156_v0 }
0x1657   : > { %4941 = vmatpush3.msra.mxu1 %v4585_v49 }
0x1658   : > { %4942 = vmatprep.subr.mxu1 %v6156_v0 }
0x1659   : > { %4943 = vmatpush3.msra.mxu1 %v4584_v50 }
0x165a   : > { %4944 = vmatprep.subr.mxu1 %v6156_v0 }
0x165b   : > { %4945 = vmatpush3.msra.mxu1 %v4583_v52 }
0x165c   : > { %4946 = vmatprep.subr.mxu1 %v6156_v0 }
0x165d   : > { %4947 = vmatpush3.msra.mxu1 %v4582_v53 }
0x165e   : > { %4948 = vmatprep.subr.mxu1 %v6156_v0 }
0x165f   : > { %4949 = vmatpush3.msra.mxu1 %v4581_v54  ;;  %v4600_v54 = vld [vmem:[%s7334_s8 + $0x8] sm:$0x7f] }
0x1660   : > { %4950 = vmatprep.subr.mxu1 %v6156_v0 }
0x1661   : > { %4951 = vmatpush3.msra.mxu1 %v4580_v55  ;;  %v3176_v55 = vrot.slane %v4600_v54, %v6736_v20  ;;  %v3204_v20 = vrot.slane %v4600_v54, %v1937_v32 }
0x1662   : > { %4977 = vmatprep.subr.mxu1 %v6156_v0 }
0x1712   : > { %v2929_v56 = vpop.f32.mrf.mxu1 }
0x1713   : > { %v2930_v61 = vadd.f32 %v4577_v51, %v2929_v56  ;;  %v3183_v51 = vrot.slane %v4600_v54, %v1916_v22  ;;  %v4601_v56 = vld [vmem:[#allocation19 + $0x1] ss:$0 sm:$0xff] }
0x1714   : > { %v4935_v62 = vpop.f32.mrf.mxu1 }
0x1715   : > { %v4579_v63 = vmul.f32 -1.442695, %v2930_v61 }
0x1717   : > { %5410 = vpow2.f32 %v4579_v63 }
0x1724   : > { %v5411_v1 = vpop.eup %5410 }
0x1725   : > { %v2936_v2 = vadd.f32 1.0, %v5411_v1  ;;  %v3190_v1 = vrot.slane %v4600_v54, %v1923_v24 }
0x1727   : > { %5412 = vrcp.f32 %v2936_v2 }
0x1734   : > { %v5413_v4 = vpop.eup %5412 }
0x1735   : > { %v2939_v5 = vmul.f32 %v5413_v4, %v2930_v61 }
0x1737   : > { %4953 = vmatmul.mubr.msk.f32.vlgmr.msra.gmra.mxu1 %vm1696_vm2, %v2939_v5 }
0x1738   : > { %4985 = vmatprep.mubr.msk.f32.mxu1 %vm6157_vm1, %v6156_v0 }
0x17f7   : > { %v3026_v9 = vpop.f32.mrf.mxu1 }
0x17f8   : > { %v3027_v10 = vadd.f32 %v4588_v6, %v3026_v9  ;;  %v3197_v6 = vrot.slane %v4600_v54, %v1930_v26 }
0x17f9   : > { %v4954_v13 = vpop.f32.mrf.mxu1 }
0x17fa   : > { %v3030_v58 = vmul.f32 0.5, %v3027_v10 }
0x17fc   : > { %v6999_v60 = vadd.f32 %v3030_v58, %v6962_v14  ;;  %v4593_v14 = vld [vmem:[%s7332_s3 + $0x28] sm:$0xff]  ;;  %s7349_s3 = smov 104  }
0x17fd   : > { %4960 = vmatpush3.msra.mxu0 %v4593_v14 }
0x17fe   : > { %v3036_v46 = vsel %vm1457_vm0, %v6999_v60, 0.0  ;;  %4961 = vmatprep.subr.mxu0 %v6156_v0 }
0x17ff   : > { %3037 = vadd.xlane.f32.xlu1 %v3036_v46  ;;  %4962 = vmatpush3.msra.mxu0 %v4592_v30 }
0x1800   : > { %4966 = vmatprep.subr.mxu0 %v6156_v0 }
0x1888   : > { %v3038_v3 = vpop.xlane.xlu1 %3037 }
0x1889   : > { %v3039_v59 = vmul.f32 0.03125, %v3038_v3  ;;  %v3211_v3 = vrot.slane %v4600_v54, %v1944_v37 }
0x188b   : > { %v3040_v19 = vsub.f32 %v6999_v60, %v3039_v59 }
0x188d   : > { %v3041_v21 = vmul.f32 %v3040_v19, %v3040_v19 }
0x188f   : > { %v3042_v23 = vsel %vm1457_vm0, %v3041_v21, 0.0  ;;  %v3218_v21 = vrot.slane %v4600_v54, %v1951_v42 }
0x1890   : > { %3043 = vadd.xlane.f32.xlu0 %v3042_v23 }
0x1919   : > { %v3044_v16 = vpop.xlane.xlu0 %3043 }
0x191a   : > { %v3045_v31 = vmul.f32 0.03125, %v3044_v16 }
0x191c   : > { %v3046_v33 = vadd.f32 1e-05, %v3045_v31 }
0x191e   : > { %5414 = vrsqrt.f32 %v3046_v33 }
0x192b   : > { %v5415_v34 = vpop.eup %5414 }
0x192c   : > { %v3048_v36 = vmul.f32 %v5415_v34, %v3040_v19 }
0x192e   : > { %v3055_v38 = vmul.f32 %v4590_v35, %v3048_v36 }
0x1930   : > { %v3062_v39 = vadd.f32 %v4591_v12, %v3055_v38 }
0x1932   : > { %4964 = vmatmul.mubr.msk.f32.vlgmr.msra.gmra.mxu0 %vm1457_vm0, %v3062_v39 }
0x1933   : > { %4974 = vmatprep.mubr.msk.f32.mxu0 %vm6157_vm1, %v6156_v0 }
0x19f2   : > { %v3145_v43 = vpop.f32.mrf.mxu0 }
0x19f3   : > { %v3146_v44 = vadd.f32 %v4597_v40, %v3145_v43  ;;  %v4609_v40 = vld [vmem:[%s7335_s21 + $0x38] sm:$0xff]  ;;  %v4608_v43 = vld [vmem:[%s7335_s21 + $0x30] sm:$0xff] }
0x19f4   : > { %v4965_v45 = vpop.f32.mrf.mxu0  ;;  %4967 = vmatpush3.msra.mxu0 %v4609_v40 }
0x19f5   : > { %v4599_v47 = vmul.f32 -1.442695, %v3146_v44  ;;  %4968 = vmatprep.subr.mxu0 %v6156_v0  ;;  %v4606_v45 = vld [vmem:[%s7335_s21 + $0x20] sm:$0xff] }
0x19f6   : > { %4969 = vmatpush3.msra.mxu0 %v4608_v43 }
0x19f7   : > { %5416 = vpow2.f32 %v4599_v47  ;;  %4970 = vmatprep.subr.mxu0 %v6156_v0 }
0x1a04   : > { %v5417_v48 = vpop.eup %5416 }
0x1a05   : > { %v3152_v49 = vadd.f32 1.0, %v5417_v48 }
0x1a07   : > { %5418 = vrcp.f32 %v3152_v49 }
0x1a14   : > { %v5419_v50 = vpop.eup %5418 }
0x1a15   : > { %3156 = vrot.lane.b32.xlu1 %v5419_v50, %s7346_s0 }
0x1a87   : > { %v3157_v52 = vpop.permute.xlu1 %3156 }
0x1a88   : > { %v3159_v53 = vmul.f32 %v3157_v52, %v3146_v44  ;;  %v4607_v44 = vld [vmem:[%s7335_s21 + $0x28] sm:$0xff] }
0x1a89   : > { %4971 = vmatpush3.msra.mxu0 %v4607_v44 }
0x1a8a   : > { %3160 = vst.msk [vmem:[#allocation2 + $0x8] sm:$0xff] %vm1457_vm0, %v3159_v53  ;;  %4972 = vmatprep.subr.mxu0 %v6156_v0 }
0x1a8b   : > { %4973 = vmatpush3.msra.mxu0 %v4606_v45 }
0x1a8c   : > { %4988 = vmatprep.subr.mxu0 %v6156_v0 }
0x1a91   : > { %v3172_v61 = vld [vmem:[#allocation2 + $0x5] sm:$0xff] }
0x1a92   : > { %v3179_v62 = vld [vmem:[#allocation2 + $0x6] sm:$0xff]  ;;  %v3177_v63 = vmul.f32 %v3176_v55, %v3172_v61 }
0x1a93   : > { %v3186_v2 = vld [vmem:[#allocation2 + $0x7] sm:$0xff]  ;;  %v3184_v5 = vmul.f32 %v3183_v51, %v3179_v62  ;;  %v4602_v62 = vld [vmem:[#allocation32 + $0x1] ss:$0 sm:$0xff] }
0x1a94   : > { %v3178_v4 = vadd.f32 %v4601_v56, %v3177_v63  ;;  %v3193_v9 = vld [vmem:[#allocation2 + $0x8] sm:$0xff]  ;;  %v3191_v13 = vmul.f32 %v3190_v1, %v3186_v2  ;;  %v4604_v1 = vld [vmem:[%s7336_s16 + $0x1] ss:$0 sm:$0xff] }
0x1a95   : > { %v3200_v22 = vld [vmem:[#allocation2 + $0x9] sm:$0xff]  ;;  %v3198_v46 = vmul.f32 %v3197_v6, %v3193_v9 }
0x1a96   : > { %v3185_v10 = vadd.f32 %v3184_v5, %v3178_v4  ;;  %v3207_v59 = vld [vmem:[#allocation2 + $0xa] sm:$0xff]  ;;  %v3205_v19 = vmul.f32 %v3204_v20, %v3200_v22  ;;  %v4611_v20 = vld [vmem:[%s7337_s7 + $0x1] ss:$0 sm:$0xff] }
0x1a97   : > { %v3214_v23 = vld [vmem:[#allocation2 + $0xb] sm:$0xff]  ;;  %v3212_v27 = vmul.f32 %v3211_v3, %v3207_v59 }
0x1a98   : > { %v3192_v58 = vadd.f32 %v3191_v13, %v3185_v10  ;;  %v3219_v14 = vmul.f32 %v3218_v21, %v3214_v23 }
0x1a9a   : > { %v3199_v24 = vadd.f32 %v3198_v46, %v3192_v58 }
0x1a9c   : > { %v3206_v26 = vadd.f32 %v3205_v19, %v3199_v24 }
0x1a9e   : > { %v3213_v29 = vadd.f32 %v3212_v27, %v3206_v26  ;;  %v4618_v27 = vld [vmem:[%s7339_s22 + $0x38] sm:$0xff] }
0x1a9f   : > { %4978 = vmatpush3.msra.mxu1 %v4618_v27 }
0x1aa0   : > { %v3220_v30 = vadd.f32 %v3219_v14, %v3213_v29  ;;  %v4617_v29 = vld [vmem:[%s7339_s22 + $0x30] sm:$0xff]  ;;  %4979 = vmatprep.subr.mxu1 %v6156_v0  ;;  %v4615_v14 = vld [vmem:[%s7339_s22 + $0x20] sm:$0xff] }
0x1aa1   : > { %4980 = vmatpush3.msra.mxu1 %v4617_v29 }
0x1aa2   : > { %v3221_v32 = vsel %vm1457_vm0, %v3220_v30, 0.0  ;;  %4981 = vmatprep.subr.mxu1 %v6156_v0 }
0x1aa3   : > { %3222 = vadd.xlane.f32.xlu0 %v3221_v32 }
0x1b2c   : > { %v3223_v16 = vpop.xlane.xlu0 %3222 }
0x1b2d   : > { %v3224_v31 = vrot.slane %v3223_v16, 4 }
0x1b2f   : > { %v3225_v37 = vadd.f32 %v3224_v31, %v3223_v16 }
0x1b31   : > { %v3226_v33 = vrot.slane %v3225_v37, 2 }
0x1b33   : > { %v3227_v34 = vadd.f32 %v3226_v33, %v3225_v37  ;;  %v4613_v37 = vld [vmem:[#allocation13 + $0x1] ss:$0 sm:$0xff] }
0x1b35   : > { %v3228_v35 = vrot.slane %v3227_v34, 1 }
0x1b37   : > { %v3229_v17 = vadd.f32 %v3228_v35, %v3227_v34  ;;  %v4614_v34 = vld [vmem:[#allocation11 + $0x1] ss:$0 sm:$0xff] }
0x1b39   : > { %5066 = vpush %v3229_v17 }
0x1b6a   : > { %s5067_s23 = spop %5066 }
0x1b6b   : > { %v3231_v42 = vstv %s5067_s23 }
0x1b6c   : > { %v3232_v36 = vmul.f32 0.00390625, %v3231_v42  ;;  %v4619_v42 = vld [vmem:[#allocation10 + $0x1] ss:$0 sm:$0xff] }
0x1b6e   : > { %v3233_v12 = vsub.f32 %v3220_v30, %v3232_v36 }
0x1b70   : > { %v3234_v38 = vmul.f32 %v3233_v12, %v3233_v12 }
0x1b72   : > { %v3235_v39 = vsel %vm1457_vm0, %v3234_v38, 0.0 }
0x1b73   : > { %3236 = vadd.xlane.f32.xlu0 %v3235_v39 }
0x1bfc   : > { %v3237_v47 = vpop.xlane.xlu0 %3236 }
0x1bfd   : > { %v3238_v48 = vrot.slane %v3237_v47, 4 }
0x1bff   : > { %v3239_v49 = vadd.f32 %v3238_v48, %v3237_v47 }
0x1c01   : > { %v3240_v50 = vrot.slane %v3239_v49, 2 }
0x1c03   : > { %v3241_v52 = vadd.f32 %v3240_v50, %v3239_v49 }
0x1c05   : > { %v3242_v53 = vrot.slane %v3241_v52, 1 }
0x1c07   : > { %v3243_v54 = vadd.f32 %v3242_v53, %v3241_v52 }
0x1c09   : > { %5068 = vpush %v3243_v54 }
0x1c3a   : > { %s5069_s23 = spop %5068 }
0x1c3b   : > { %v3245_v55 = vstv %s5069_s23  ;;  %s7348_s23 = smov 120  }
0x1c3c   : > { %v3246_v51 = vmul.f32 0.00390625, %v3245_v55 }
0x1c3e   : > { %v3247_v56 = vadd.f32 1e-05, %v3246_v51 }
0x1c40   : > { %5420 = vrsqrt.f32 %v3247_v56 }
0x1c4d   : > { %v5421_v61 = vpop.eup %5420 }
0x1c4e   : > { %v3249_v63 = vmul.f32 %v5421_v61, %v3233_v12 }
0x1c50   : > { %v3258_v2 = vmul.f32 %v4602_v62, %v3249_v63 }
0x1c52   : > { %v3267_v4 = vadd.f32 %v4604_v1, %v3258_v2 }
0x1c54   : > { %v4605_v5 = vmul.f32 -1.442695, %v3267_v4 }
0x1c56   : > { %5422 = vpow2.f32 %v4605_v5 }
0x1c63   : > { %v5423_v6 = vpop.eup %5422 }
0x1c64   : > { %v3271_v9 = vadd.f32 1.0, %v5423_v6 }
0x1c66   : > { %5424 = vrcp.f32 %v3271_v9 }
0x1c73   : > { %v5425_v10 = vpop.eup %5424 }
0x1c74   : > { %v3274_v13 = vmul.f32 %v5425_v10, %v3267_v4 }
0x1c76   : > { %4975 = vmatmul.mubr.msk.f32.vlgmr.msra.gmra.mxu0 %vm1457_vm0, %v3274_v13 }
0x1c77   : > { %4996 = vmatprep.mubr.msk.f32.mxu0 %vm6157_vm1, %v6156_v0 }
0x1d36   : > { %v3357_v22 = vpop.f32.mrf.mxu0 }
0x1d37   : > { %v3358_v58 = vadd.f32 %v4611_v20, %v3357_v22 }
0x1d38   : > { %v4976_v46 = vpop.f32.mrf.mxu0 }
0x1d39   : > { %v7049_v3 = vadd.f32 %v3358_v58, %v6999_v60  ;;  %v4616_v60 = vld [vmem:[%s7339_s22 + $0x28] sm:$0xff] }
0x1d3a   : > { %4982 = vmatpush3.msra.mxu1 %v4616_v60 }
0x1d3b   : > { %v3366_v59 = vsel %vm1457_vm0, %v7049_v3, 0.0  ;;  %4983 = vmatprep.subr.mxu1 %v6156_v0 }
0x1d3c   : > { %3367 = vadd.xlane.f32.xlu0 %v3366_v59  ;;  %4984 = vmatpush3.msra.mxu1 %v4615_v14 }
0x1d3d   : > { %4999 = vmatprep.subr.mxu1 %v6156_v0 }
0x1dc5   : > { %v3368_v24 = vpop.xlane.xlu0 %3367 }
0x1dc6   : > { %v3369_v19 = vmul.f32 0.03125, %v3368_v24 }
0x1dc8   : > { %v3370_v21 = vsub.f32 %v7049_v3, %v3369_v19 }
0x1dca   : > { %v3371_v23 = vmul.f32 %v3370_v21, %v3370_v21 }
0x1dcc   : > { %v3372_v26 = vsel %vm1457_vm0, %v3371_v23, 0.0 }
0x1dcd   : > { %3373 = vadd.xlane.f32.xlu0 %v3372_v26 }
0x1e56   : > { %v3374_v30 = vpop.xlane.xlu0 %3373 }
0x1e57   : > { %v3375_v32 = vmul.f32 0.03125, %v3374_v30 }
0x1e59   : > { %v3376_v16 = vadd.f32 1e-05, %v3375_v32 }
0x1e5b   : > { %5426 = vrsqrt.f32 %v3376_v16 }
0x1e68   : > { %v5427_v31 = vpop.eup %5426 }
0x1e69   : > { %v3378_v33 = vmul.f32 %v5427_v31, %v3370_v21 }
0x1e6b   : > { %v3385_v35 = vmul.f32 %v4613_v37, %v3378_v33 }
0x1e6d   : > { %v3392_v17 = vadd.f32 %v4614_v34, %v3385_v35 }
0x1e6f   : > { %4986 = vmatmul.mubr.msk.f32.vlgmr.msra.gmra.mxu1 %vm1457_vm0, %v3392_v17 }
0x1e70   : > { %5007 = vmatprep.mubr.msk.f32.mxu1 %vm6157_vm1, %v6156_v0 }
0x1f2f   : > { %v3475_v36 = vpop.f32.mrf.mxu1 }
0x1f30   : > { %v7066_v12 = vadd.f32 %v4619_v42, %v3475_v36 }
0x1f31   : > { %v4987_v38 = vpop.f32.mrf.mxu1 }
0x1f32   : > { %v3482_v39 = vmul.f32 %v7066_v12, %v6811_v11  ;;  %v3481_v40 = vmul.f32 %v7066_v12, %v6807_v7  ;;  %v3480_v43 = vmul.f32 %v7066_v12, %v6809_v8  ;;  %v3479_v44 = vmul.f32 %v7066_v12, %v6819_v18  ;;  %v4630_v38 = vld [vmem:[%s7341_s6 + $0x38] sm:$0xff] }
0x1f33   : > { %v3486_v9 = vmul.f32 %v7066_v12, %v6876_v57  ;;  %v3484_v46 = vmul.f32 %v7066_v12, %v6888_v25  ;;  %v3483_v59 = vmul.f32 %v7066_v12, %v6892_v28  ;;  %v3485_v28 = vmul.f32 %v7066_v12, %v6882_v15 }
0x1f34   : > { %3497 = vrot.lane.b32.xlu1 %v3482_v39, %s7346_s0  ;;  %3495 = vrot.lane.b32.xlu0 %v3481_v40, %s7346_s0  ;;  %v4629_v40 = vld [vmem:[%s7341_s6 + $0x30] sm:$0xff] }
0x1f38   : > { %3493 = vrot.lane.b32.xlu1 %v3480_v43, %s7346_s0  ;;  %v4628_v43 = vld [vmem:[%s7341_s6 + $0x28] sm:$0xff] }
0x1f3c   : > { %3491 = vrot.lane.b32.xlu1 %v3479_v44, %s7346_s0  ;;  %s7347_s0 = smov 112   ;;  %v4627_v44 = vld [vmem:[%s7341_s6 + $0x20] sm:$0xff] }
0x1fa6   : > { %v3498_v45 = vpop.permute.xlu1 %3497  ;;  %v3496_v7 = vpop.permute.xlu0 %3495 }
0x1fa7   : > { %4989 = vmatpush3.xpose.msk.msra.mxu0 %vm1457_vm0, %v3498_v45 }
0x1fa8   : > { %4990 = vmatprep.subr.mxu0 %v6156_v0 }
0x1faa   : > { %v3494_v11 = vpop.permute.xlu1 %3493 }
0x1fab   : > { %4991 = vmatpush3.xpose.msk.msra.mxu0 %vm1457_vm0, %v3496_v7 }
0x1fac   : > { %4992 = vmatprep.subr.mxu0 %v6156_v0 }
0x1fae   : > { %v3492_v8 = vpop.permute.xlu1 %3491 }
0x1faf   : > { %4993 = vmatpush3.xpose.msk.msra.mxu0 %vm1457_vm0, %v3494_v11  ;;  %v4631_v11 = vld [vmem:[#allocation14 + $0x1] ss:$0 sm:$0xff] }
0x1fb0   : > { %4994 = vmatprep.subr.mxu0 %v6156_v0 }
0x1fb3   : > { %4995 = vmatpush3.xpose.msk.msra.mxu0 %vm1457_vm0, %v3492_v8 }
0x1fb4   : > { %5021 = vmatprep.subr.mxu0 %v6156_v0 }
0x1fb6   : > { %4997 = vmatmul.mubr.msk.f32.vlgmr.msra.gmra.mxu0 %vm1457_vm0, %v7066_v12 }
0x1fb7   : > { %5029 = vmatprep.mubr.msk.f32.mxu0 %vm6157_vm1, %v6156_v0 }
0x2076   : > { %v3576_v18 = vpop.f32.mrf.mxu0 }
0x2077   : > { %v3580_v47 = vmul.f32 0.35355338, %v3576_v18 }
0x2078   : > { %v4998_v48 = vpop.f32.mrf.mxu0 }
0x2079   : > { %v3581_v49 = vadd.f32 %v3580_v47, %v6847_v41 }
0x207b   : > { %v3608_v50 = vsel %vm2368_vm7, %v3581_v49, -inf  ;;  %v3593_v52 = vsel %vm2352_vm8, %v3581_v49, -inf  ;;  %v3623_v53 = vsel %vm2384_vm9, %v3581_v49, -inf  ;;  %v3582_v54 = vsel %vm1547_vm4, %v3581_v49, -inf }
0x207c   : > { %3609 = vmax.xlane.f32.xlu0 %v3608_v50  ;;  %3594 = vmax.xlane.f32.xlu1 %v3593_v52 }
0x2080   : > { %3624 = vmax.xlane.f32.xlu1 %v3623_v53 }
0x2084   : > { %3583 = vmax.xlane.f32.xlu1 %v3582_v54 }
0x2105   : > { %v3610_v55 = vpop.xlane.xlu0 %3609  ;;  %v3595_v51 = vpop.xlane.xlu1 %3594 }
0x2106   : > { %v3611_v56 = vsub.f32 %v3581_v49, %v3610_v55  ;;  %v3596_v61 = vsub.f32 %v3581_v49, %v3595_v51  ;;  %v4638_v51 = vld [vmem:[%s7343_s9 + $0x38] sm:$0xff] }
0x2107   : > { %5022 = vmatpush3.msra.mxu0 %v4638_v51 }
0x2108   : > { %v3612_v62 = vmul.f32 1.442695, %v3611_v56  ;;  %v3597_v63 = vmul.f32 1.442695, %v3596_v61  ;;  %v4637_v56 = vld [vmem:[%s7343_s9 + $0x30] sm:$0xff]  ;;  %5023 = vmatprep.subr.mxu0 %v6156_v0  ;;  %v4635_v61 = vld [vmem:[%s7343_s9 + $0x20] sm:$0xff] }
0x2109   : > { %v3625_v1 = vpop.xlane.xlu1 %3624  ;;  %5024 = vmatpush3.msra.mxu0 %v4637_v56 }
0x210a   : > { %5428 = vpow2.f32 %v3612_v62  ;;  %v3626_v41 = vsub.f32 %v3581_v49, %v3625_v1  ;;  %5025 = vmatprep.subr.mxu0 %v6156_v0 }
0x210b   : > { %5430 = vpow2.f32 %v3597_v63 }
0x210c   : > { %v3627_v2 = vmul.f32 1.442695, %v3626_v41 }
0x210d   : > { %v3584_v10 = vpop.xlane.xlu1 %3583 }
0x210e   : > { %5432 = vpow2.f32 %v3627_v2  ;;  %v3585_v13 = vsub.f32 %v3581_v49, %v3584_v10  ;;  %v4633_v2 = vld [vmem:[#allocation31 + $0x1] ss:$0 sm:$0xff] }
0x210f   : > { %v4649_v10 = vld [vmem:[%s7345_s2 + $0x78] sm:$0xff] }
0x2110   : > { %v3586_v20 = vmul.f32 1.442695, %v3585_v13  ;;  %v4648_v13 = vld [vmem:[%s7345_s2 + $0x70] sm:$0xff] }
0x2112   : > { %5434 = vpow2.f32 %v3586_v20  ;;  %v4647_v20 = vld [vmem:[%s7345_s2 + $0x68] sm:$0xff] }
0x2117   : > { %v5429_v4 = vpop.eup %5428 }
0x2118   : > { %v5431_v5 = vpop.eup %5430  ;;  %3615 = vrot.lane.b32.xlu1 %v5429_v4, %s7347_s0 }
0x2119   : > { %3600 = vrot.lane.b32.xlu0 %v5431_v5, %s7348_s23  ;;  %s4659_s23 = sshll.u32 %s6396_s4, 7 }
0x211a   : > { %s4191_s6 = scalar_lea.hbm %s6373_s24, %s4659_s23 }
0x211b   : > { %v5433_v6 = vpop.eup %5432 }
0x211c   : > { %3630 = vrot.lane.b32.xlu1 %v5433_v6, %s7349_s3  ;;  %s1438_s3 = sand.u32 1, %s6084_s12  }
0x211d   : > { %s4528_s0 = sshll.u32 %s1438_s3, 3  ;;  %s4180_s7 = scalar_lea.sflag [#allocation7], %s1438_s3 }
0x211f   : > { %v5435_v22 = vpop.eup %5434 }
0x2120   : > { %3651 = vrot.lane.b32.xlu1 %v3486_v9, %s7350_s5  ;;  %v3588_v58 = vsel %vm1547_vm4, %v5435_v22, 0.0 }
0x2144   : > { %3589 = vadd.xlane.f32.xlu1 %v3588_v58  ;;  %v4645_v58 = vld [vmem:[%s7345_s2 + $0x58] sm:$0xff] }
0x2155   : > { %3647 = vrot.lane.b32.xlu1 %v3484_v46, %s7350_s5  ;;  %v4644_v46 = vld [vmem:[%s7345_s2 + $0x50] sm:$0xff] }
0x2159   : > { %3645 = vrot.lane.b32.xlu1 %v3483_v59, %s7350_s5  ;;  %v4643_v59 = vld [vmem:[%s7345_s2 + $0x48] sm:$0xff] }
0x218a   : > { %v3616_v57 = vpop.permute.xlu1 %3615 }
0x218b   : > { %v3601_v24 = vpop.permute.xlu0 %3600  ;;  %v3618_v23 = vsel %vm1547_vm4, %v3616_v57, 0.0  ;;  %v4642_v57 = vld [vmem:[%s7345_s2 + $0x40] sm:$0xff] }
0x218c   : > { %v3603_v19 = vsel %vm1547_vm4, %v3601_v24, 0.0  ;;  %v4639_v24 = vld [vmem:[#allocation26 + $0x1] ss:$0 sm:$0xff] }
0x218d   : > { %3604 = vadd.xlane.f32.xlu0 %v3603_v19 }
0x218e   : > { %v3631_v21 = vpop.permute.xlu1 %3630 }
0x218f   : > { %v3633_v25 = vsel %vm1547_vm4, %v3631_v21, 0.0 }
0x2191   : > { %3619 = vadd.xlane.f32.xlu0 %v3618_v23 }
0x2192   : > { %v3652_v26 = vpop.permute.xlu1 %3651 }
0x2193   : > { %5000 = vmatpush3.msra.mxu1 %v3652_v26 }
0x2194   : > { %5001 = vmatprep.subr.mxu1 %v6156_v0 }
0x2195   : > { %3634 = vadd.xlane.f32.xlu0 %v3633_v25 }
0x21ab   : > { %3649 = vrot.lane.b32.xlu0 %v3485_v28, %s7350_s5  ;;  %s7352_s5 = sld [smem:[#allocation52_spill]] }
0x21cd   : > { %v3590_v29 = vpop.xlane.xlu1 %3589 }
0x21d1   : > { %v3648_v30 = vpop.permute.xlu1 %3647 }
0x21d5   : > { %v3646_v31 = vpop.permute.xlu1 %3645 }
0x2216   : > { %v3605_v27 = vpop.xlane.xlu0 %3604 }
0x2217   : > { %5436 = vrcp.f32 %v3605_v27 }
0x2218   : > { %5438 = vrcp.f32 %v3590_v29 }
0x221a   : > { %v3620_v60 = vpop.xlane.xlu0 %3619 }
0x221b   : > { %5440 = vrcp.f32 %v3620_v60  ;;  %v4650_v60 = vld [vmem:[#allocation28 + $0x1] ss:$0 sm:$0xff] }
0x221e   : > { %v3635_v14 = vpop.xlane.xlu0 %3634 }
0x221f   : > { %5442 = vrcp.f32 %v3635_v14 }
0x2222   : > { %v3650_v32 = vpop.permute.xlu0 %3649 }
0x2223   : > { %5002 = vmatpush3.msra.mxu1 %v3650_v32 }
0x2224   : > { %5003 = vmatprep.subr.mxu1 %v6156_v0  ;;  %v5437_v16 = vpop.eup %5436 }
0x2225   : > { %5004 = vmatpush3.msra.mxu1 %v3648_v30  ;;  %v5439_v15 = vpop.eup %5438  ;;  %v3607_v33 = vmul.f32 %v5437_v16, %v5431_v5  ;;  %v4634_v5 = vld [vmem:[#allocation29 + $0x1] ss:$0 sm:$0xff] }
0x2226   : > { %5005 = vmatprep.subr.mxu1 %v6156_v0  ;;  %v3592_v35 = vmul.f32 %v5439_v15, %v5435_v22  ;;  %v4646_v22 = vld [vmem:[%s7345_s2 + $0x60] sm:$0xff] }
0x2227   : > { %5006 = vmatpush3.msra.mxu1 %v3646_v31 }
0x2228   : > { %v5441_v37 = vpop.eup %5440  ;;  %5010 = vmatprep.subr.mxu1 %v6156_v0  ;;  %v3638_v36 = vsel %vm1547_vm4, %v3592_v35, %v3607_v33 }
0x2229   : > { %v3622_v34 = vmul.f32 %v5441_v37, %v5429_v4 }
0x222b   : > { %v3639_v12 = vsel %vm1549_vm5, %v3638_v36, %v3622_v34  ;;  %v4066_v36 = vld [vmem:[%s7282_s10 + $0x10] sm:$0xff] }
0x222c   : > { %v5443_v17 = vpop.eup %5442 }
0x222d   : > { %v3637_v42 = vmul.f32 %v5443_v17, %v5433_v6 }
0x222f   : > { %v3640_v39 = vsel %vm1551_vm6, %v3639_v12, %v3637_v42  ;;  %v4067_v42 = vld [vmem:[%s7282_s10 + $0x18] sm:$0xff]  ;;  %v4065_v12 = vld [vmem:[%s7282_s10 + $0x8] sm:$0xff] }
0x2230   : > { %5008 = vmatmul.mubr.msk.f32.vlgmr.msra.gmra.mxu1 %vm1457_vm0, %v3640_v39 }
0x2231   : > { %5011 = vmatpush3.msra.mxu1 %v4630_v38  ;;  %5018 = vmatprep.mubr.msk.f32.mxu1 %vm6157_vm1, %v6156_v0  ;;  %v4064_v38 = vld [vmem:[%s7282_s10] sm:$0xff] }
0x2232   : > { %5012 = vmatprep.subr.mxu1 %v6156_v0 }
0x2233   : > { %5013 = vmatpush3.msra.mxu1 %v4629_v40 }
0x2234   : > { %5014 = vmatprep.subr.mxu1 %v6156_v0 }
0x2235   : > { %5015 = vmatpush3.msra.mxu1 %v4628_v43 }
0x2236   : > { %5016 = vmatprep.subr.mxu1 %v6156_v0 }
0x2237   : > { %5017 = vmatpush3.msra.mxu1 %v4627_v44 }
0x2238   : > { %5032 = vmatprep.subr.mxu1 %v6156_v0 }
0x22f0   : > { %v3726_v45 = vpop.f32.mrf.mxu1 }
0x22f1   : > { %5019 = vmatmul.mubr.msk.f32.vlgmr.msra.gmra.mxu1 %vm1457_vm0, %v3726_v45  ;;  %v4652_v45 = vld [vmem:[#allocation35 + $0x1] ss:$0 sm:$0xff] }
0x22f2   : > { %v5009_v7 = vpop.f32.mrf.mxu1  ;;  %5048 = vmatprep.mubr.msk.f32.mxu1 %vm6157_vm1, %v6156_v0  ;;  %5033 = vmatpush3.msra.mxu1 %v4649_v10 }
0x22f3   : > { %5034 = vmatprep.subr.mxu1 %v6156_v0 }
0x22f4   : > { %5035 = vmatpush3.msra.mxu1 %v4648_v13 }
0x22f5   : > { %5036 = vmatprep.subr.mxu1 %v6156_v0 }
0x22f6   : > { %5037 = vmatpush3.msra.mxu1 %v4647_v20 }
0x22f7   : > { %5038 = vmatprep.subr.mxu1 %v6156_v0 }
0x22f8   : > { %5039 = vmatpush3.msra.mxu1 %v4646_v22 }
0x22f9   : > { %5040 = vmatprep.subr.mxu1 %v6156_v0 }
0x22fa   : > { %5041 = vmatpush3.msra.mxu1 %v4645_v58 }
0x22fb   : > { %5042 = vmatprep.subr.mxu1 %v6156_v0 }
0x22fc   : > { %5043 = vmatpush3.msra.mxu1 %v4644_v46 }
0x22fd   : > { %5044 = vmatprep.subr.mxu1 %v6156_v0 }
0x22fe   : > { %5045 = vmatpush3.msra.mxu1 %v4643_v59 }
0x22ff   : > { %5046 = vmatprep.subr.mxu1 %v6156_v0 }
0x2300   : > { %5047 = vmatpush3.msra.mxu1 %v4642_v57 }
0x23b1   : > { %v3812_v8 = vpop.f32.mrf.mxu1 }
0x23b2   : > { %v3813_v18 = vadd.f32 %v4631_v11, %v3812_v8  ;;  %v4653_v11 = vld [vmem:[#allocation34 + $0x1] ss:$0 sm:$0xff] }
0x23b3   : > { %v5020_v47 = vpop.f32.mrf.mxu1 }
0x23b4   : > { %v7138_v48 = vadd.f32 %v3813_v18, %v7049_v3  ;;  %v4636_v3 = vld [vmem:[%s7343_s9 + $0x28] sm:$0xff]  ;;  %v4654_v47 = vld [vmem:[%s7351_s1] ss:$0 sm:$0xff]  ;;  %s1440_s1 = scalar_lea.vmem [#allocation37], %s4528_s0  ;;  %s6168_s9 = smov [#allocation37]  }
0x23b5   : > { %5026 = vmatpush3.msra.mxu0 %v4636_v3  ;;  %s4193_s2 = sshll.u32 %s1440_s1, 4  ;;  %s5990_s10 = sshll.u32 %s6168_s9, 4  ;;  %s4194_s2 = int_to_ptr.vmem [resolvable:$true] %s4193_s2  ;;  %s5991_s10 = int_to_ptr.vmem [resolvable:$false] %s5990_s10 }
0x23b6   : > { %v3821_v49 = vsel %vm1457_vm0, %v7138_v48, 0.0  ;;  %5027 = vmatprep.subr.mxu0 %v6156_v0  ;;  %s5986_s8 = scalar_lea.vmem %s4194_s2, 128  ;;  %s5992_s11 = scalar_lea.vmem %s5991_s10, 256 }
0x23b7   : > { %3822 = vadd.xlane.f32.xlu1 %v3821_v49  ;;  %5028 = vmatpush3.msra.mxu0 %v4635_v61  ;;  %p5987_p13 = scmp.ne.s32.totalorder %s4194_s2, %s5986_s8  ;;  %p5993_p6 = scmp.lt.s32.totalorder %s4194_s2, %s5991_s10 }
0x23b8   : > { %5051 = vmatprep.subr.mxu0 %v6156_v0  ;;  %p5994_p1 = scmp.lt.s32.totalorder %s5992_s11, %s5986_s8 }
0x23b9   : > { %p5988_p5 = pnand %p5987_p13, %p7353_p2 }
0x23ba   : > { %p5995_p4 = por %p5994_p1, %p5993_p6 }
0x23bb   : > { %p5989_p8 = pneg %p5988_p5 }
0x23bd   : > { %p5996_p0 = pnand %p5995_p4, %p5989_p8 }
0x2440   : > { %v3823_v50 = vpop.xlane.xlu1 %3822 }
0x2441   : > { %v3824_v52 = vmul.f32 0.03125, %v3823_v50 }
0x2443   : > { %v3825_v53 = vsub.f32 %v7138_v48, %v3824_v52 }
0x2445   : > { %v3826_v54 = vmul.f32 %v3825_v53, %v3825_v53 }
0x2447   : > { %v3827_v55 = vsel %vm1457_vm0, %v3826_v54, 0.0 }
0x2448   : > { %3828 = vadd.xlane.f32.xlu0 %v3827_v55 }
0x24d1   : > { %v3829_v62 = vpop.xlane.xlu0 %3828 }
0x24d2   : > { %v3830_v63 = vmul.f32 0.03125, %v3829_v62 }
0x24d4   : > { %v3831_v1 = vadd.f32 1e-05, %v3830_v63  ;;  %v4656_v63 = vld [vmem:[#allocation5] ss:$0 sm:$0xff] }
0x24d6   : > { %5444 = vrsqrt.f32 %v3831_v1 }
0x24e3   : > { %v5445_v41 = vpop.eup %5444 }
0x24e4   : > { %v3833_v4 = vmul.f32 %v5445_v41, %v3825_v53  ;;  %v4657_v41 = vld [vmem:[%s7352_s5] ss:$0 sm:$0xff] }
0x24e6   : > { %v3840_v6 = vmul.f32 %v4633_v2, %v3833_v4 }
0x24e8   : > { %v3847_v9 = vadd.f32 %v4634_v5, %v3840_v6 }
0x24ea   : > { %5030 = vmatmul.mubr.msk.f32.vlgmr.msra.gmra.mxu0 %vm1457_vm0, %v3847_v9 }
0x24eb   : > { %5059 = vmatprep.mubr.msk.f32.mxu0 %vm6157_vm1, %v6156_v0  ;;  %5052 = vmatpush3.msra.mxu0 %v4067_v42 }
0x24ec   : > { %5053 = vmatprep.subr.mxu0 %v6156_v0 }
0x24ed   : > { %5054 = vmatpush3.msra.mxu0 %v4066_v36 }
0x24ee   : > { %5055 = vmatprep.subr.mxu0 %v6156_v0 }
0x24ef   : > { %5056 = vmatpush3.msra.mxu0 %v4065_v12 }
0x24f0   : > { %5057 = vmatprep.subr.mxu0 %v6156_v0 }
0x24f1   : > { %5058 = vmatpush3.msra.mxu0 %v4064_v38 }
0x25aa   : > { %v3930_v19 = vpop.f32.mrf.mxu0 }
0x25ab   : > { %v3931_v21 = vadd.f32 %v4639_v24, %v3930_v19 }
0x25ac   : > { %v5031_v23 = vpop.f32.mrf.mxu0 }
0x25ad   : > { %v4641_v26 = vmul.f32 -1.442695, %v3931_v21 }
0x25af   : > { %5446 = vpow2.f32 %v4641_v26 }
0x25bc   : > { %v5447_v25 = vpop.eup %5446 }
0x25bd   : > { %v3937_v28 = vadd.f32 1.0, %v5447_v25 }
0x25bf   : > { %5448 = vrcp.f32 %v3937_v28 }
0x25cc   : > { %v5449_v27 = vpop.eup %5448 }
0x25cd   : > { %v3940_v29 = vmul.f32 %v5449_v27, %v3931_v21 }
0x25cf   : > { %5049 = vmatmul.mubr.msk.f32.vlgmr.msra.gmra.mxu1 %vm1696_vm2, %v3940_v29 }
0x268f   : > { %v4027_v14 = vpop.f32.mrf.mxu1 }
0x2690   : > { %v4028_v30 = vadd.f32 %v4650_v60, %v4027_v14 }
0x2691   : > { %v5050_v32 = vpop.f32.mrf.mxu1 }
0x2692   : > { %v4031_v16 = vmul.f32 0.5, %v4028_v30 }
0x2694   : > { %v4032_v31 = vadd.f32 %v4031_v16, %v7138_v48 }
0x2696   : > { %v4037_v15 = vsel %vm1457_vm0, %v4032_v31, 0.0 }
0x2697   : > { %4038 = vadd.xlane.f32.xlu0 %v4037_v15 }
0x2720   : > { %v4039_v37 = vpop.xlane.xlu0 %4038 }
0x2721   : > { %v4040_v33 = vmul.f32 0.03125, %v4039_v37 }
0x2723   : > { %v4041_v34 = vsub.f32 %v4032_v31, %v4040_v33 }
0x2725   : > { %v4042_v35 = vmul.f32 %v4041_v34, %v4041_v34 }
0x2727   : > { %v4043_v17 = vsel %vm1457_vm0, %v4042_v35, 0.0 }
0x2728   : > { %4044 = vadd.xlane.f32.xlu0 %v4043_v17 }
0x27b1   : > { %v4045_v39 = vpop.xlane.xlu0 %4044 }
0x27b2   : > { %v4046_v40 = vmul.f32 0.03125, %v4045_v39 }
0x27b4   : > { %v4047_v43 = vadd.f32 1e-05, %v4046_v40 }
0x27b6   : > { %5450 = vrsqrt.f32 %v4047_v43 }
0x27c3   : > { %v5451_v44 = vpop.eup %5450 }
0x27c4   : > { %v4049_v7 = vmul.f32 %v5451_v44, %v4041_v34 }
0x27c6   : > { %v4056_v8 = vmul.f32 %v4652_v45, %v4049_v7 }
0x27c8   : > { %v4063_v18 = vadd.f32 %v4653_v11, %v4056_v8 }
0x27ca   : > { %5060 = vmatmul.mubr.msk.f32.vlgmr.msra.gmra.mxu0 %vm1457_vm0, %v4063_v18 }
0x288a   : > { %v4144_v48 = vpop.f32.mrf.mxu0 }
0x288b   : > { %v4145_v49 = vadd.f32 %v4654_v47, %v4144_v48 }
0x288c   : > { %v5061_v50 = vpop.f32.mrf.mxu0 }
0x288d   : > { %v4150_v0 = vsel %vm1551_vm6, %v4145_v49, 0.0 }
0x288e   : > { %4151 = vadd.xlane.f32.xlu1 %v4150_v0 }
0x2917   : > { %v4152_v52 = vpop.xlane.xlu1 %4151 }
0x2918   : > { %v4154_v53 = vmul.f32 0.041666668, %v4152_v52 }
0x291a   : > { %v4155_v54 = vsub.f32 %v4145_v49, %v4154_v53 }
0x291c   : > { %v4156_v55 = vmul.f32 %v4155_v54, %v4155_v54 }
0x291e   : > { %v4157_v51 = vsel %vm1551_vm6, %v4156_v55, 0.0 }
0x291f   : > { %4158 = vadd.xlane.f32.xlu0 %v4157_v51 }
0x29a8   : > { %v4159_v56 = vpop.xlane.xlu0 %4158 }
0x29a9   : > { %v4160_v3 = vmul.f32 0.041666668, %v4159_v56 }
0x29ab   : > { %v4161_v61 = vadd.f32 1e-05, %v4160_v3 }
0x29ad   : > { %5452 = vrsqrt.f32 %v4161_v61 }
0x29ba   : > { %v5453_v62 = vpop.eup %5452 }
0x29bb   : > { %v4163_v1 = vmul.f32 %v5453_v62, %v4155_v54 }
0x29bd   : > { %v4170_v2 = vmul.f32 %v4656_v63, %v4163_v1 }
0x29bf   : > { %v4177_v4 = vadd.f32 %v4657_v41, %v4170_v2 }
0x29c1   : > { %4178 = vst.msk [vmem:[%s1440_s1] sm:$0xff] %vm1551_vm6, %v4177_v4 }
0x29c2   : > { %5999 = shalt.err (!%p5996_p0)
}
0x29c3   : > { %s6000_s4 = scalar_lea.hbm %s4191_s6, 128  ;;  %s6004_s1 = scalar_lea.hbm %s6373_s24, 256 }
0x29c4   : > { %p6001_p9 = scmp.ne.s32.totalorder %s4191_s6, %s6000_s4  ;;  %p6005_p11 = scmp.lt.s32.totalorder %s4191_s6, %s6373_s24 }
0x29c5   : > { %p6006_p12 = scmp.lt.s32.totalorder %s6004_s1, %s6000_s4 }
0x29c6   : > { %p6002_p7 = pnand %p6001_p9, %p7353_p2 }
0x29c7   : > { %p6007_p10 = por %p6006_p12, %p6005_p11 }
0x29c8   : > { %p6003_p3 = pneg %p6002_p7 }
0x29ca   : > { %p6008_p13 = pnand %p6007_p10, %p6003_p3 }
0x29cc   : > { %6011 = shalt.err (!%p6008_p13)
}
0x29cd   : > { %5150 = dma.vmem_to_hbm [thread:$0]  (%p7353_p2), %s4194_s2, 128, %s4191_s6, %s4180_s7  }
0x29ce PF: > { %s7354_s10 = sld [smem:[#allocation80_spill]]  ;;  %p5257_p5 = scmp.ge.s32.totalorder %s6092_s26, 2 }
0x29cf   : > { %s7355_s11 = sld [smem:[#allocation84_spill]] }
0x29d4   : > { %s4205_s8 = sand.u32 1, %s7354_s10  }
0x29d5   : > { %p7356_p8 = scmp.ne.s32.totalorder %s7355_s11, 0  ;;  %s4206_s9 = scalar_lea.sflag [#allocation7], %s4205_s8 }
0x29d7   : > { %p5214_p6 = pnand %p5257_p5, %p7356_p8 }
0x29d9   : > { %p5215_p1 = pneg %p5214_p6 }
0x29db   : > { %6075 = dma.done.wait (%p5215_p1), %s4206_s9, 128  }
0x29dc   : > { %6077 = vsyncadd (%p5215_p1), %s4206_s9, 4294967168  ;;  %s7357_s26 = sld [smem:[#allocation82_spill]]  ;;  %s7360_s0 = smov %s6084_s12 }
0x29dd   : > { %s7358_s5 = sld [smem:[#allocation81_spill]] }
0x29de   : > { %s7359_s23 = sld [smem:[#allocation83_spill]] }
0x29e2   : > { %p106_p4 = scmp.ge.s32.totalorder %s7357_s26, 4  }
0x29e3   : > { %s7361_s12 = smov %s7358_s5 }
0x29e4   :  { %108 = sbr.rel (!%p106_p4) target bundleno = 93 (0x5d), region = 357 }
0x29e9   :  { %4211 = vsyncpa [#allocation6], 1 }
0x29ea   :  { %4213 = vsyncpa [#allocation6 + $0x1], 1 }
0x29eb   :  { %4214 = vsyncpa [#allocation9], 1 }
0x29ec   :  { %4215 = vsyncpa [#allocation12], 1 }
0x29ed   :  { %4216 = vsyncpa [#allocation15], 1 }
0x29ee   :  { %4217 = vsyncpa [#allocation18], 1 }
0x29ef   :  { %4218 = vsyncpa [#allocation21], 1 }
0x29f0   :  { %4219 = vsyncpa [#allocation24], 1 }
0x29f1   :  { %4220 = vsyncpa [#allocation27], 1 }
0x29f2   :  { %4221 = vsyncpa [#allocation30], 1 }
0x29f3   :  { %4222 = vsyncpa [#allocation33], 1 }
0x29f4   :  { %4223 = vsyncpa [#allocation36], 1 }
0x29f5   :  { %4224 = vsyncpa [#allocation7], 1 }
0x29f6   :  { %4226 = vsyncpa [#allocation7 + $0x1], 1 }

</bundles_post_ra>
